<compile_context>
chip_gen: v5e
topology: v5e:2x2
jax: 0.10.0
libtpu: 0.0.40
codegen_flags: <defaults>
</compile_context>

<pallas_src>
import jax
import jax.numpy as jnp
from jax.experimental import pallas as pl
from jax.experimental.pallas import tpu as pltpu


# ---------------------------------------------------------------------------
# Fused kernel: one batch element per grid step, everything stays in VMEM.
# ---------------------------------------------------------------------------
def _fused_kernel(x_ref,
                  w1_ref, b1_ref, w2_ref, b2_ref,
                  w3_ref, b3_ref, w4_ref, b4_ref,
                  wf_ref, bf_ref,
                  o_ref,
                  pad1, pad2, pad3, pad4):
    """4x (conv3x3 im2col matmul + 2x2 sum-pool + bias + ReLU) -> GAP -> FC."""

    def conv_pool_relu(x, pad_ref, w_ref, b_ref):
        # x: (H, W, Cin) f32
        # w_ref: (9*Cin, Cout) im2col weights with the 0.25 pool scale folded in
        # b_ref: (1, Cout)
        # returns: (H//2, W//2, Cout)
        H, W, Cin = x.shape
        Cout = w_ref.shape[-1]

        # In-kernel zero padding: zero the (H+2, W+2, Cin) scratch, write interior.
        pad_ref[...] = jnp.zeros_like(pad_ref)
        pad_ref[1:H + 1, 1:W + 1, :] = x
        xp = pad_ref[...]

        # im2col: nine shifted views concatenated on the channel (lane) axis,
        # then one MXU matmul per layer.
        cols = [xp[kh:kh + H, kw:kw + W, :]
                for kh in range(3) for kw in range(3)]            # 9 x (H, W, Cin)
        patches = jnp.concatenate(cols, axis=-1).reshape(H * W, 9 * Cin)
        acc = jnp.dot(patches, w_ref[...],
                      preferred_element_type=jnp.float32)         # (H*W, Cout)

        # 2x2 sum pool, stride 2 (the 1/4 average factor lives in the weights).
        acc = acc.reshape(H // 2, 2, W, Cout).sum(axis=1)         # (H/2, W, Cout)
        acc = acc.reshape(H // 2, W // 2, 2, Cout).sum(axis=2)    # (H/2, W/2, Cout)

        # Bias after the pool (avg-pool-invariant, mathematically identical) + ReLU.
        return jnp.maximum(acc + b_ref[...], 0.0)

    x = x_ref[0]                                     # (16, 16, 1)
    x = conv_pool_relu(x, pad1, w1_ref, b1_ref)      # (8, 8, 16)
    x = conv_pool_relu(x, pad2, w2_ref, b2_ref)      # (4, 4, 32)
    x = conv_pool_relu(x, pad3, w3_ref, b3_ref)      # (2, 2, 64)
    x = conv_pool_relu(x, pad4, w4_ref, b4_ref)      # (1, 1, 128)

    # Global average pool + FC head (spatial is 1x1 for 16x16 inputs -> reshape).
    Hf, Wf, C = x.shape
    feat = x.reshape(Hf * Wf, C)
    if Hf * Wf > 1:                                  # static shape check
        feat = jnp.mean(feat, axis=0, keepdims=True)
    logits = jnp.dot(feat, wf_ref[...],
                     preferred_element_type=jnp.float32) + bf_ref[...]
    o_ref[...] = logits.reshape(1, 1, -1)


# ---------------------------------------------------------------------------
# Wrapper: weight prep (im2col reshape + pool-scale folding) and pallas_call.
# ---------------------------------------------------------------------------
def fancy_forward_impl(params, x_nchw):
    # NCHW (PyTorch convention) -> NHWC for the TPU kernel.
    x = jnp.transpose(x_nchw, (0, 2, 3, 1)).astype(jnp.float32)
    N, H, W, Cin0 = x.shape
    num_classes = params["fc_b"].shape[0]

    conv_ws, conv_bs, pad_scratch = [], [], []
    h, w = H, W
    for layer in range(4):
        wk = params[f"conv{layer + 1}_w"]            # (3, 3, Cin, Cout) HWIO
        bk = params[f"conv{layer + 1}_b"]            # (Cout,)
        cin, cout = wk.shape[2], wk.shape[3]
        # Fold the 2x2 average-pool 1/4 into the weights (exact: power of two)
        # and flatten to im2col layout (9*Cin, Cout).
        conv_ws.append((wk * 0.25).reshape(9 * cin, cout))
        conv_bs.append(bk.reshape(1, cout))
        pad_scratch.append(pltpu.VMEM((h + 2, w + 2, cin), jnp.float32))
        h, w = h // 2, w // 2

    wf = params["fc_w_t"]                            # (C_feat, num_classes)
    bf = params["fc_b"].reshape(1, num_classes)

    def _full(a):                                    # replicated full-array block
        nd = a.ndim
        return pl.BlockSpec(a.shape, lambda n, _nd=nd: (0,) * _nd)

    inputs = [x]
    in_specs = [pl.BlockSpec((1, H, W, Cin0), lambda n: (n, 0, 0, 0))]
    for wl, bl in zip(conv_ws, conv_bs):
        inputs += [wl, bl]
        in_specs += [_full(wl), _full(bl)]
    inputs += [wf, bf]
    in_specs += [_full(wf), _full(bf)]

    out = pl.pallas_call(
        _fused_kernel,
        out_shape=jax.ShapeDtypeStruct((N, 1, num_classes), jnp.float32),
        grid=(N,),
        in_specs=in_specs,
        out_specs=pl.BlockSpec((1, 1, num_classes), lambda n: (n, 0, 0)),
        scratch_shapes=pad_scratch,
        compiler_params=pltpu.CompilerParams(
            dimension_semantics=("parallel",)),
    )(*inputs)
    return out.reshape(N, num_classes)


fancy_forward = jax.jit(fancy_forward_impl)


# ---------------------------------------------------------------------------
# Deterministic parameters (in-script) and a pure-JAX reference for checking.
# ---------------------------------------------------------------------------
def init_params(key, num_classes=3, initial_channels=16):
    chans = [1,
             initial_channels,
             initial_channels * 2,
             initial_channels * 4,
             initial_channels * 8]
    params = {}
    keys = jax.random.split(key, 10)
    for layer in range(4):
        cin, cout = chans[layer], chans[layer + 1]
        fan_in = cin * 3 * 3
        params[f"conv{layer + 1}_w"] = (
            jax.random.normal(keys[2 * layer], (3, 3, cin, cout), jnp.float32)
            * (2.0 / fan_in) ** 0.5)
        params[f"conv{layer + 1}_b"] = (
            jax.random.normal(keys[2 * layer + 1], (cout,), jnp.float32) * 0.01)
    feat = chans[-1]
    # fc weight stored pre-transposed as (feat, num_classes) == W^T
    params["fc_w_t"] = (jax.random.normal(keys[8], (feat, num_classes),
                                          jnp.float32) * (1.0 / feat) ** 0.5)
    params["fc_b"] = jax.random.normal(keys[9], (num_classes,),
                                       jnp.float32) * 0.01
    return params


def reference_forward(params, x_nchw):
    """Plain-JAX reference matching the PyTorch module semantics."""
    x = x_nchw.astype(jnp.float32)
    for layer in range(1, 5):
        wk = params[f"conv{layer}_w"]                # (3, 3, Cin, Cout) HWIO
        bk = params[f"conv{layer}_b"]
        x = jax.lax.conv_general_dilated(
            x, wk, window_strides=(1, 1), padding=((1, 1), (1, 1)),
            dimension_numbers=("NCHW", "HWIO", "NCHW"))
        x = x + bk[None, :, None, None]
        n_, c_, hh, ww = x.shape
        x = x.reshape(n_, c_, hh // 2, 2, ww // 2, 2).mean(axis=(3, 5))
        x = jnp.maximum(x, 0.0)
    feat = jnp.mean(x, axis=(2, 3))                  # AdaptiveAvgPool2d(1)
    return feat @ params["fc_w_t"] + params["fc_b"]


if __name__ == "__main__":
    key = jax.random.PRNGKey(0)
    kp, kx = jax.random.split(key)
    params = init_params(kp, num_classes=3)
    # Module takes single-channel images; 16x16 so four 2x pools -> 1x1 spatial.
    x = jax.random.normal(kx, (2, 1, 16, 16), jnp.float32)
    out = fancy_forward(params, x)
    jax.block_until_ready(out)
    assert out.shape == (2, 3) and out.dtype == jnp.float32
    ref = reference_forward(params, x)
    assert jnp.allclose(out, ref, rtol=1e-3, atol=1e-3)
    print("KERNEL_OK")
</pallas_src>

<mosaic_0001>
module attributes {stable_mosaic.version = 11 : i64} {
  func.func @_fused_kernel(%arg0: i32, %arg1: memref<1x16x16x1xf32, #tpu.memory_space<vmem>>, %arg2: memref<9x16xf32, #tpu.memory_space<vmem>>, %arg3: memref<1x16xf32, #tpu.memory_space<vmem>>, %arg4: memref<144x32xf32, #tpu.memory_space<vmem>>, %arg5: memref<1x32xf32, #tpu.memory_space<vmem>>, %arg6: memref<288x64xf32, #tpu.memory_space<vmem>>, %arg7: memref<1x64xf32, #tpu.memory_space<vmem>>, %arg8: memref<576x128xf32, #tpu.memory_space<vmem>>, %arg9: memref<1x128xf32, #tpu.memory_space<vmem>>, %arg10: memref<128x3xf32, #tpu.memory_space<vmem>>, %arg11: memref<1x3xf32, #tpu.memory_space<vmem>>, %arg12: memref<1x1x3xf32, #tpu.memory_space<vmem>>, %arg13: memref<18x18x1xf32, #tpu.memory_space<vmem>>, %arg14: memref<10x10x16xf32, #tpu.memory_space<vmem>>, %arg15: memref<6x6x32xf32, #tpu.memory_space<vmem>>, %arg16: memref<4x4x64xf32, #tpu.memory_space<vmem>>) attributes {dimension_semantics = [#tpu.dimension_semantics<parallel>], iteration_bounds = array<i64: 2>, scalar_prefetch = 0 : i64, scratch_operands = 4 : i64, tpu.core_type = #tpu.core_type<tc>, window_params = [{transform_indices = @transform_0, window_bounds = array<i64: 1, 16, 16, 1>}, {pipeline_mode = #tpu.pipeline_mode<synchronous>, transform_indices = @transform_1, window_bounds = array<i64: 9, 16>}, {pipeline_mode = #tpu.pipeline_mode<synchronous>, transform_indices = @transform_2, window_bounds = array<i64: 1, 16>}, {pipeline_mode = #tpu.pipeline_mode<synchronous>, transform_indices = @transform_3, window_bounds = array<i64: 144, 32>}, {pipeline_mode = #tpu.pipeline_mode<synchronous>, transform_indices = @transform_4, window_bounds = array<i64: 1, 32>}, {pipeline_mode = #tpu.pipeline_mode<synchronous>, transform_indices = @transform_5, window_bounds = array<i64: 288, 64>}, {pipeline_mode = #tpu.pipeline_mode<synchronous>, transform_indices = @transform_6, window_bounds = array<i64: 1, 64>}, {pipeline_mode = #tpu.pipeline_mode<synchronous>, transform_indices = @transform_7, window_bounds = array<i64: 576, 128>}, {pipeline_mode = #tpu.pipeline_mode<synchronous>, transform_indices = @transform_8, window_bounds = array<i64: 1, 128>}, {pipeline_mode = #tpu.pipeline_mode<synchronous>, transform_indices = @transform_9, window_bounds = array<i64: 128, 3>}, {pipeline_mode = #tpu.pipeline_mode<synchronous>, transform_indices = @transform_10, window_bounds = array<i64: 1, 3>}, {transform_indices = @transform_11, window_bounds = array<i64: 1, 1, 3>}]} {
    %c0 = arith.constant 0 : index
    %c0_0 = arith.constant 0 : index
    %c0_1 = arith.constant 0 : index
    %c0_2 = arith.constant 0 : index
    %0 = vector.load %arg1[%c0, %c0_0, %c0_1, %c0_2] : memref<1x16x16x1xf32, #tpu.memory_space<vmem>>, vector<1x16x16x1xf32>
    %1 = vector.shape_cast %0 : vector<1x16x16x1xf32> to vector<16x16x1xf32>
    %cst = arith.constant 0.000000e+00 : f32
    %2 = vector.broadcast %cst : f32 to vector<18x18x1xf32>
    %c0_3 = arith.constant 0 : index
    %c0_4 = arith.constant 0 : index
    %c0_5 = arith.constant 0 : index
    %3 = vector.load %arg13[%c0_3, %c0_4, %c0_5] : memref<18x18x1xf32, #tpu.memory_space<vmem>>, vector<18x18x1xf32>
    tpu.vector_store %arg13[%c0_3, %c0_4, %c0_5], %2 {strides = array<i32>} : memref<18x18x1xf32, #tpu.memory_space<vmem>>, vector<18x18x1xf32>,
    %c1 = arith.constant 1 : index
    %c1_6 = arith.constant 1 : index
    %c0_7 = arith.constant 0 : index
    %4 = vector.load %arg13[%c1, %c1_6, %c0_7] : memref<18x18x1xf32, #tpu.memory_space<vmem>>, vector<16x16x1xf32>
    tpu.vector_store %arg13[%c1, %c1_6, %c0_7], %1 {strides = array<i32>} : memref<18x18x1xf32, #tpu.memory_space<vmem>>, vector<16x16x1xf32>,
    %c0_8 = arith.constant 0 : index
    %c0_9 = arith.constant 0 : index
    %c0_10 = arith.constant 0 : index
    %5 = vector.load %arg13[%c0_8, %c0_9, %c0_10] : memref<18x18x1xf32, #tpu.memory_space<vmem>>, vector<18x18x1xf32>
    %6 = vector.extract_strided_slice %5 {offsets = [0, 0, 0], sizes = [16, 16, 1], strides = [1, 1, 1]} : vector<18x18x1xf32> to vector<16x16x1xf32>
    %7 = vector.extract_strided_slice %5 {offsets = [0, 1, 0], sizes = [16, 16, 1], strides = [1, 1, 1]} : vector<18x18x1xf32> to vector<16x16x1xf32>
    %8 = vector.extract_strided_slice %5 {offsets = [0, 2, 0], sizes = [16, 16, 1], strides = [1, 1, 1]} : vector<18x18x1xf32> to vector<16x16x1xf32>
    %9 = vector.extract_strided_slice %5 {offsets = [1, 0, 0], sizes = [16, 16, 1], strides = [1, 1, 1]} : vector<18x18x1xf32> to vector<16x16x1xf32>
    %10 = vector.extract_strided_slice %5 {offsets = [1, 1, 0], sizes = [16, 16, 1], strides = [1, 1, 1]} : vector<18x18x1xf32> to vector<16x16x1xf32>
    %11 = vector.extract_strided_slice %5 {offsets = [1, 2, 0], sizes = [16, 16, 1], strides = [1, 1, 1]} : vector<18x18x1xf32> to vector<16x16x1xf32>
    %12 = vector.extract_strided_slice %5 {offsets = [2, 0, 0], sizes = [16, 16, 1], strides = [1, 1, 1]} : vector<18x18x1xf32> to vector<16x16x1xf32>
    %13 = vector.extract_strided_slice %5 {offsets = [2, 1, 0], sizes = [16, 16, 1], strides = [1, 1, 1]} : vector<18x18x1xf32> to vector<16x16x1xf32>
    %14 = vector.extract_strided_slice %5 {offsets = [2, 2, 0], sizes = [16, 16, 1], strides = [1, 1, 1]} : vector<18x18x1xf32> to vector<16x16x1xf32>
    %15 = tpu.concatenate %6, %7, %8, %9, %10, %11, %12, %13, %14 in 2 : vector<16x16x1xf32>, vector<16x16x1xf32>, vector<16x16x1xf32>, vector<16x16x1xf32>, vector<16x16x1xf32>, vector<16x16x1xf32>, vector<16x16x1xf32>, vector<16x16x1xf32>, vector<16x16x1xf32> -> vector<16x16x9xf32>
    %16 = vector.shape_cast %15 : vector<16x16x9xf32> to vector<256x9xf32>
    %c0_11 = arith.constant 0 : index
    %c0_12 = arith.constant 0 : index
    %17 = vector.load %arg2[%c0_11, %c0_12] : memref<9x16xf32, #tpu.memory_space<vmem>>, vector<9x16xf32>
    %cst_13 = arith.constant dense<0.000000e+00> : vector<256x16xf32>
    %18 = tpu.matmul %16, %17, %cst_13 {dimension_numbers = #tpu.dot_dimension_numbers<[1], [0], [0], [1], [0, 0, 1, 1], [], []>} : vector<256x9xf32>, vector<9x16xf32>, vector<256x16xf32> -> vector<256x16xf32>
    %19 = vector.shape_cast %18 : vector<256x16xf32> to vector<8x2x16x16xf32>
    %cst_14 = arith.constant dense<0.000000e+00> : vector<8x16x16xf32>
    %20 = vector.multi_reduction <add>, %19, %cst_14 [1] : vector<8x2x16x16xf32> to vector<8x16x16xf32>
    %21 = vector.shape_cast %20 : vector<8x16x16xf32> to vector<8x8x2x16xf32>
    %cst_15 = arith.constant dense<0.000000e+00> : vector<8x8x16xf32>
    %22 = vector.multi_reduction <add>, %21, %cst_15 [2] : vector<8x8x2x16xf32> to vector<8x8x16xf32>
    %c0_16 = arith.constant 0 : index
    %c0_17 = arith.constant 0 : index
    %23 = vector.load %arg3[%c0_16, %c0_17] : memref<1x16xf32, #tpu.memory_space<vmem>>, vector<1x16xf32>
    %24 = vector.shape_cast %23 : vector<1x16xf32> to vector<1x1x16xf32>
    %25 = vector.broadcast %24 : vector<1x1x16xf32> to vector<8x8x16xf32>
    %26 = arith.addf %22, %25 : vector<8x8x16xf32>
    %cst_18 = arith.constant 0.000000e+00 : f32
    %27 = vector.broadcast %cst_18 : f32 to vector<8x8x16xf32>
    %28 = arith.maximumf %26, %27 : vector<8x8x16xf32>
    %cst_19 = arith.constant 0.000000e+00 : f32
    %29 = vector.broadcast %cst_19 : f32 to vector<10x10x16xf32>
    %c0_20 = arith.constant 0 : index
    %c0_21 = arith.constant 0 : index
    %c0_22 = arith.constant 0 : index
    %30 = vector.load %arg14[%c0_20, %c0_21, %c0_22] : memref<10x10x16xf32, #tpu.memory_space<vmem>>, vector<10x10x16xf32>
    tpu.vector_store %arg14[%c0_20, %c0_21, %c0_22], %29 {strides = array<i32>} : memref<10x10x16xf32, #tpu.memory_space<vmem>>, vector<10x10x16xf32>,
    %c1_23 = arith.constant 1 : index
    %c1_24 = arith.constant 1 : index
    %c0_25 = arith.constant 0 : index
    %31 = vector.load %arg14[%c1_23, %c1_24, %c0_25] : memref<10x10x16xf32, #tpu.memory_space<vmem>>, vector<8x8x16xf32>
    tpu.vector_store %arg14[%c1_23, %c1_24, %c0_25], %28 {strides = array<i32>} : memref<10x10x16xf32, #tpu.memory_space<vmem>>, vector<8x8x16xf32>,
    %c0_26 = arith.constant 0 : index
    %c0_27 = arith.constant 0 : index
    %c0_28 = arith.constant 0 : index
    %32 = vector.load %arg14[%c0_26, %c0_27, %c0_28] : memref<10x10x16xf32, #tpu.memory_space<vmem>>, vector<10x10x16xf32>
    %33 = vector.extract_strided_slice %32 {offsets = [0, 0, 0], sizes = [8, 8, 16], strides = [1, 1, 1]} : vector<10x10x16xf32> to vector<8x8x16xf32>
    %34 = vector.extract_strided_slice %32 {offsets = [0, 1, 0], sizes = [8, 8, 16], strides = [1, 1, 1]} : vector<10x10x16xf32> to vector<8x8x16xf32>
    %35 = vector.extract_strided_slice %32 {offsets = [0, 2, 0], sizes = [8, 8, 16], strides = [1, 1, 1]} : vector<10x10x16xf32> to vector<8x8x16xf32>
    %36 = vector.extract_strided_slice %32 {offsets = [1, 0, 0], sizes = [8, 8, 16], strides = [1, 1, 1]} : vector<10x10x16xf32> to vector<8x8x16xf32>
    %37 = vector.extract_strided_slice %32 {offsets = [1, 1, 0], sizes = [8, 8, 16], strides = [1, 1, 1]} : vector<10x10x16xf32> to vector<8x8x16xf32>
    %38 = vector.extract_strided_slice %32 {offsets = [1, 2, 0], sizes = [8, 8, 16], strides = [1, 1, 1]} : vector<10x10x16xf32> to vector<8x8x16xf32>
    %39 = vector.extract_strided_slice %32 {offsets = [2, 0, 0], sizes = [8, 8, 16], strides = [1, 1, 1]} : vector<10x10x16xf32> to vector<8x8x16xf32>
    %40 = vector.extract_strided_slice %32 {offsets = [2, 1, 0], sizes = [8, 8, 16], strides = [1, 1, 1]} : vector<10x10x16xf32> to vector<8x8x16xf32>
    %41 = vector.extract_strided_slice %32 {offsets = [2, 2, 0], sizes = [8, 8, 16], strides = [1, 1, 1]} : vector<10x10x16xf32> to vector<8x8x16xf32>
    %42 = tpu.concatenate %33, %34, %35, %36, %37, %38, %39, %40, %41 in 2 : vector<8x8x16xf32>, vector<8x8x16xf32>, vector<8x8x16xf32>, vector<8x8x16xf32>, vector<8x8x16xf32>, vector<8x8x16xf32>, vector<8x8x16xf32>, vector<8x8x16xf32>, vector<8x8x16xf32> -> vector<8x8x144xf32>
    %43 = vector.shape_cast %42 : vector<8x8x144xf32> to vector<64x144xf32>
    %c0_29 = arith.constant 0 : index
    %c0_30 = arith.constant 0 : index
    %44 = vector.load %arg4[%c0_29, %c0_30] : memref<144x32xf32, #tpu.memory_space<vmem>>, vector<144x32xf32>
    %cst_31 = arith.constant dense<0.000000e+00> : vector<64x32xf32>
    %45 = tpu.matmul %43, %44, %cst_31 {dimension_numbers = #tpu.dot_dimension_numbers<[1], [0], [0], [1], [0, 0, 1, 1], [], []>} : vector<64x144xf32>, vector<144x32xf32>, vector<64x32xf32> -> vector<64x32xf32>
    %46 = vector.shape_cast %45 : vector<64x32xf32> to vector<4x2x8x32xf32>
    %cst_32 = arith.constant dense<0.000000e+00> : vector<4x8x32xf32>
    %47 = vector.multi_reduction <add>, %46, %cst_32 [1] : vector<4x2x8x32xf32> to vector<4x8x32xf32>
    %48 = vector.shape_cast %47 : vector<4x8x32xf32> to vector<4x4x2x32xf32>
    %cst_33 = arith.constant dense<0.000000e+00> : vector<4x4x32xf32>
    %49 = vector.multi_reduction <add>, %48, %cst_33 [2] : vector<4x4x2x32xf32> to vector<4x4x32xf32>
    %c0_34 = arith.constant 0 : index
    %c0_35 = arith.constant 0 : index
    %50 = vector.load %arg5[%c0_34, %c0_35] : memref<1x32xf32, #tpu.memory_space<vmem>>, vector<1x32xf32>
    %51 = vector.shape_cast %50 : vector<1x32xf32> to vector<1x1x32xf32>
    %52 = vector.broadcast %51 : vector<1x1x32xf32> to vector<4x4x32xf32>
    %53 = arith.addf %49, %52 : vector<4x4x32xf32>
    %cst_36 = arith.constant 0.000000e+00 : f32
    %54 = vector.broadcast %cst_36 : f32 to vector<4x4x32xf32>
    %55 = arith.maximumf %53, %54 : vector<4x4x32xf32>
    %cst_37 = arith.constant 0.000000e+00 : f32
    %56 = vector.broadcast %cst_37 : f32 to vector<6x6x32xf32>
    %c0_38 = arith.constant 0 : index
    %c0_39 = arith.constant 0 : index
    %c0_40 = arith.constant 0 : index
    %57 = vector.load %arg15[%c0_38, %c0_39, %c0_40] : memref<6x6x32xf32, #tpu.memory_space<vmem>>, vector<6x6x32xf32>
    tpu.vector_store %arg15[%c0_38, %c0_39, %c0_40], %56 {strides = array<i32>} : memref<6x6x32xf32, #tpu.memory_space<vmem>>, vector<6x6x32xf32>,
    %c1_41 = arith.constant 1 : index
    %c1_42 = arith.constant 1 : index
    %c0_43 = arith.constant 0 : index
    %58 = vector.load %arg15[%c1_41, %c1_42, %c0_43] : memref<6x6x32xf32, #tpu.memory_space<vmem>>, vector<4x4x32xf32>
    tpu.vector_store %arg15[%c1_41, %c1_42, %c0_43], %55 {strides = array<i32>} : memref<6x6x32xf32, #tpu.memory_space<vmem>>, vector<4x4x32xf32>,
    %c0_44 = arith.constant 0 : index
    %c0_45 = arith.constant 0 : index
    %c0_46 = arith.constant 0 : index
    %59 = vector.load %arg15[%c0_44, %c0_45, %c0_46] : memref<6x6x32xf32, #tpu.memory_space<vmem>>, vector<6x6x32xf32>
    %60 = vector.extract_strided_slice %59 {offsets = [0, 0, 0], sizes = [4, 4, 32], strides = [1, 1, 1]} : vector<6x6x32xf32> to vector<4x4x32xf32>
    %61 = vector.extract_strided_slice %59 {offsets = [0, 1, 0], sizes = [4, 4, 32], strides = [1, 1, 1]} : vector<6x6x32xf32> to vector<4x4x32xf32>
    %62 = vector.extract_strided_slice %59 {offsets = [0, 2, 0], sizes = [4, 4, 32], strides = [1, 1, 1]} : vector<6x6x32xf32> to vector<4x4x32xf32>
    %63 = vector.extract_strided_slice %59 {offsets = [1, 0, 0], sizes = [4, 4, 32], strides = [1, 1, 1]} : vector<6x6x32xf32> to vector<4x4x32xf32>
    %64 = vector.extract_strided_slice %59 {offsets = [1, 1, 0], sizes = [4, 4, 32], strides = [1, 1, 1]} : vector<6x6x32xf32> to vector<4x4x32xf32>
    %65 = vector.extract_strided_slice %59 {offsets = [1, 2, 0], sizes = [4, 4, 32], strides = [1, 1, 1]} : vector<6x6x32xf32> to vector<4x4x32xf32>
    %66 = vector.extract_strided_slice %59 {offsets = [2, 0, 0], sizes = [4, 4, 32], strides = [1, 1, 1]} : vector<6x6x32xf32> to vector<4x4x32xf32>
    %67 = vector.extract_strided_slice %59 {offsets = [2, 1, 0], sizes = [4, 4, 32], strides = [1, 1, 1]} : vector<6x6x32xf32> to vector<4x4x32xf32>
    %68 = vector.extract_strided_slice %59 {offsets = [2, 2, 0], sizes = [4, 4, 32], strides = [1, 1, 1]} : vector<6x6x32xf32> to vector<4x4x32xf32>
    %69 = tpu.concatenate %60, %61, %62, %63, %64, %65, %66, %67, %68 in 2 : vector<4x4x32xf32>, vector<4x4x32xf32>, vector<4x4x32xf32>, vector<4x4x32xf32>, vector<4x4x32xf32>, vector<4x4x32xf32>, vector<4x4x32xf32>, vector<4x4x32xf32>, vector<4x4x32xf32> -> vector<4x4x288xf32>
    %70 = vector.shape_cast %69 : vector<4x4x288xf32> to vector<16x288xf32>
    %c0_47 = arith.constant 0 : index
    %c0_48 = arith.constant 0 : index
    %71 = vector.load %arg6[%c0_47, %c0_48] : memref<288x64xf32, #tpu.memory_space<vmem>>, vector<288x64xf32>
    %cst_49 = arith.constant dense<0.000000e+00> : vector<16x64xf32>
    %72 = tpu.matmul %70, %71, %cst_49 {dimension_numbers = #tpu.dot_dimension_numbers<[1], [0], [0], [1], [0, 0, 1, 1], [], []>} : vector<16x288xf32>, vector<288x64xf32>, vector<16x64xf32> -> vector<16x64xf32>
    %73 = vector.shape_cast %72 : vector<16x64xf32> to vector<2x2x4x64xf32>
    %cst_50 = arith.constant dense<0.000000e+00> : vector<2x4x64xf32>
    %74 = vector.multi_reduction <add>, %73, %cst_50 [1] : vector<2x2x4x64xf32> to vector<2x4x64xf32>
    %75 = vector.shape_cast %74 : vector<2x4x64xf32> to vector<2x2x2x64xf32>
    %cst_51 = arith.constant dense<0.000000e+00> : vector<2x2x64xf32>
    %76 = vector.multi_reduction <add>, %75, %cst_51 [2] : vector<2x2x2x64xf32> to vector<2x2x64xf32>
    %c0_52 = arith.constant 0 : index
    %c0_53 = arith.constant 0 : index
    %77 = vector.load %arg7[%c0_52, %c0_53] : memref<1x64xf32, #tpu.memory_space<vmem>>, vector<1x64xf32>
    %78 = vector.shape_cast %77 : vector<1x64xf32> to vector<1x1x64xf32>
    %79 = vector.broadcast %78 : vector<1x1x64xf32> to vector<2x2x64xf32>
    %80 = arith.addf %76, %79 : vector<2x2x64xf32>
    %cst_54 = arith.constant 0.000000e+00 : f32
    %81 = vector.broadcast %cst_54 : f32 to vector<2x2x64xf32>
    %82 = arith.maximumf %80, %81 : vector<2x2x64xf32>
    %cst_55 = arith.constant 0.000000e+00 : f32
    %83 = vector.broadcast %cst_55 : f32 to vector<4x4x64xf32>
    %c0_56 = arith.constant 0 : index
    %c0_57 = arith.constant 0 : index
    %c0_58 = arith.constant 0 : index
    %84 = vector.load %arg16[%c0_56, %c0_57, %c0_58] : memref<4x4x64xf32, #tpu.memory_space<vmem>>, vector<4x4x64xf32>
    tpu.vector_store %arg16[%c0_56, %c0_57, %c0_58], %83 {strides = array<i32>} : memref<4x4x64xf32, #tpu.memory_space<vmem>>, vector<4x4x64xf32>,
    %c1_59 = arith.constant 1 : index
    %c1_60 = arith.constant 1 : index
    %c0_61 = arith.constant 0 : index
    %85 = vector.load %arg16[%c1_59, %c1_60, %c0_61] : memref<4x4x64xf32, #tpu.memory_space<vmem>>, vector<2x2x64xf32>
    tpu.vector_store %arg16[%c1_59, %c1_60, %c0_61], %82 {strides = array<i32>} : memref<4x4x64xf32, #tpu.memory_space<vmem>>, vector<2x2x64xf32>,
    %c0_62 = arith.constant 0 : index
    %c0_63 = arith.constant 0 : index
    %c0_64 = arith.constant 0 : index
    %86 = vector.load %arg16[%c0_62, %c0_63, %c0_64] : memref<4x4x64xf32, #tpu.memory_space<vmem>>, vector<4x4x64xf32>
    %87 = vector.extract_strided_slice %86 {offsets = [0, 0, 0], sizes = [2, 2, 64], strides = [1, 1, 1]} : vector<4x4x64xf32> to vector<2x2x64xf32>
    %88 = vector.extract_strided_slice %86 {offsets = [0, 1, 0], sizes = [2, 2, 64], strides = [1, 1, 1]} : vector<4x4x64xf32> to vector<2x2x64xf32>
    %89 = vector.extract_strided_slice %86 {offsets = [0, 2, 0], sizes = [2, 2, 64], strides = [1, 1, 1]} : vector<4x4x64xf32> to vector<2x2x64xf32>
    %90 = vector.extract_strided_slice %86 {offsets = [1, 0, 0], sizes = [2, 2, 64], strides = [1, 1, 1]} : vector<4x4x64xf32> to vector<2x2x64xf32>
    %91 = vector.extract_strided_slice %86 {offsets = [1, 1, 0], sizes = [2, 2, 64], strides = [1, 1, 1]} : vector<4x4x64xf32> to vector<2x2x64xf32>
    %92 = vector.extract_strided_slice %86 {offsets = [1, 2, 0], sizes = [2, 2, 64], strides = [1, 1, 1]} : vector<4x4x64xf32> to vector<2x2x64xf32>
    %93 = vector.extract_strided_slice %86 {offsets = [2, 0, 0], sizes = [2, 2, 64], strides = [1, 1, 1]} : vector<4x4x64xf32> to vector<2x2x64xf32>
    %94 = vector.extract_strided_slice %86 {offsets = [2, 1, 0], sizes = [2, 2, 64], strides = [1, 1, 1]} : vector<4x4x64xf32> to vector<2x2x64xf32>
    %95 = vector.extract_strided_slice %86 {offsets = [2, 2, 0], sizes = [2, 2, 64], strides = [1, 1, 1]} : vector<4x4x64xf32> to vector<2x2x64xf32>
    %96 = tpu.concatenate %87, %88, %89, %90, %91, %92, %93, %94, %95 in 2 : vector<2x2x64xf32>, vector<2x2x64xf32>, vector<2x2x64xf32>, vector<2x2x64xf32>, vector<2x2x64xf32>, vector<2x2x64xf32>, vector<2x2x64xf32>, vector<2x2x64xf32>, vector<2x2x64xf32> -> vector<2x2x576xf32>
    %97 = vector.shape_cast %96 : vector<2x2x576xf32> to vector<4x576xf32>
    %c0_65 = arith.constant 0 : index
    %c0_66 = arith.constant 0 : index
    %98 = vector.load %arg8[%c0_65, %c0_66] : memref<576x128xf32, #tpu.memory_space<vmem>>, vector<576x128xf32>
    %cst_67 = arith.constant dense<0.000000e+00> : vector<4x128xf32>
    %99 = tpu.matmul %97, %98, %cst_67 {dimension_numbers = #tpu.dot_dimension_numbers<[1], [0], [0], [1], [0, 0, 1, 1], [], []>} : vector<4x576xf32>, vector<576x128xf32>, vector<4x128xf32> -> vector<4x128xf32>
    %100 = vector.shape_cast %99 : vector<4x128xf32> to vector<1x2x2x128xf32>
    %cst_68 = arith.constant dense<0.000000e+00> : vector<1x2x128xf32>
    %101 = vector.multi_reduction <add>, %100, %cst_68 [1] : vector<1x2x2x128xf32> to vector<1x2x128xf32>
    %102 = vector.shape_cast %101 : vector<1x2x128xf32> to vector<1x1x2x128xf32>
    %cst_69 = arith.constant dense<0.000000e+00> : vector<1x1x128xf32>
    %103 = vector.multi_reduction <add>, %102, %cst_69 [2] : vector<1x1x2x128xf32> to vector<1x1x128xf32>
    %c0_70 = arith.constant 0 : index
    %c0_71 = arith.constant 0 : index
    %104 = vector.load %arg9[%c0_70, %c0_71] : memref<1x128xf32, #tpu.memory_space<vmem>>, vector<1x128xf32>
    %105 = vector.shape_cast %104 : vector<1x128xf32> to vector<1x1x128xf32>
    %106 = arith.addf %103, %105 : vector<1x1x128xf32>
    %cst_72 = arith.constant 0.000000e+00 : f32
    %107 = vector.broadcast %cst_72 : f32 to vector<1x1x128xf32>
    %108 = arith.maximumf %106, %107 : vector<1x1x128xf32>
    %109 = vector.shape_cast %108 : vector<1x1x128xf32> to vector<1x128xf32>
    %c0_73 = arith.constant 0 : index
    %c0_74 = arith.constant 0 : index
    %110 = vector.load %arg10[%c0_73, %c0_74] : memref<128x3xf32, #tpu.memory_space<vmem>>, vector<128x3xf32>
    %cst_75 = arith.constant dense<0.000000e+00> : vector<1x3xf32>
    %111 = tpu.matmul %109, %110, %cst_75 {dimension_numbers = #tpu.dot_dimension_numbers<[1], [0], [0], [1], [0, 0, 1, 1], [], []>} : vector<1x128xf32>, vector<128x3xf32>, vector<1x3xf32> -> vector<1x3xf32>
    %c0_76 = arith.constant 0 : index
    %c0_77 = arith.constant 0 : index
    %112 = vector.load %arg11[%c0_76, %c0_77] : memref<1x3xf32, #tpu.memory_space<vmem>>, vector<1x3xf32>
    %113 = arith.addf %111, %112 : vector<1x3xf32>
    %114 = vector.shape_cast %113 : vector<1x3xf32> to vector<1x1x3xf32>
    %c0_78 = arith.constant 0 : index
    %c0_79 = arith.constant 0 : index
    %c0_80 = arith.constant 0 : index
    %115 = vector.load %arg12[%c0_78, %c0_79, %c0_80] : memref<1x1x3xf32, #tpu.memory_space<vmem>>, vector<1x1x3xf32>
    tpu.vector_store %arg12[%c0_78, %c0_79, %c0_80], %114 {strides = array<i32>} : memref<1x1x3xf32, #tpu.memory_space<vmem>>, vector<1x1x3xf32>,
    return
  }
  func.func @transform_0(%arg0: i32) -> (i32, i32, i32, i32) {
    %c0_i32 = arith.constant 0 : i32
    %c0_i32_0 = arith.constant 0 : i32
    %c0_i32_1 = arith.constant 0 : i32
    %c0_i32_2 = arith.constant 0 : i32
    return %arg0, %c0_i32, %c0_i32_0, %c0_i32_1 : i32, i32, i32, i32
  }
  func.func @transform_1(%arg0: i32) -> (i32, i32) {
    %c0_i32 = arith.constant 0 : i32
    %c0_i32_0 = arith.constant 0 : i32
    %c0_i32_1 = arith.constant 0 : i32
    return %c0_i32, %c0_i32_0 : i32, i32
  }
  func.func @transform_2(%arg0: i32) -> (i32, i32) {
    %c0_i32 = arith.constant 0 : i32
    %c0_i32_0 = arith.constant 0 : i32
    %c0_i32_1 = arith.constant 0 : i32
    return %c0_i32, %c0_i32_0 : i32, i32
  }
  func.func @transform_3(%arg0: i32) -> (i32, i32) {
    %c0_i32 = arith.constant 0 : i32
    %c0_i32_0 = arith.constant 0 : i32
    %c0_i32_1 = arith.constant 0 : i32
    return %c0_i32, %c0_i32_0 : i32, i32
  }
  func.func @transform_4(%arg0: i32) -> (i32, i32) {
    %c0_i32 = arith.constant 0 : i32
    %c0_i32_0 = arith.constant 0 : i32
    %c0_i32_1 = arith.constant 0 : i32
    return %c0_i32, %c0_i32_0 : i32, i32
  }
  func.func @transform_5(%arg0: i32) -> (i32, i32) {
    %c0_i32 = arith.constant 0 : i32
    %c0_i32_0 = arith.constant 0 : i32
    %c0_i32_1 = arith.constant 0 : i32
    return %c0_i32, %c0_i32_0 : i32, i32
  }
  func.func @transform_6(%arg0: i32) -> (i32, i32) {
    %c0_i32 = arith.constant 0 : i32
    %c0_i32_0 = arith.constant 0 : i32
    %c0_i32_1 = arith.constant 0 : i32
    return %c0_i32, %c0_i32_0 : i32, i32
  }
  func.func @transform_7(%arg0: i32) -> (i32, i32) {
    %c0_i32 = arith.constant 0 : i32
    %c0_i32_0 = arith.constant 0 : i32
    %c0_i32_1 = arith.constant 0 : i32
    return %c0_i32, %c0_i32_0 : i32, i32
  }
  func.func @transform_8(%arg0: i32) -> (i32, i32) {
    %c0_i32 = arith.constant 0 : i32
    %c0_i32_0 = arith.constant 0 : i32
    %c0_i32_1 = arith.constant 0 : i32
    return %c0_i32, %c0_i32_0 : i32, i32
  }
  func.func @transform_9(%arg0: i32) -> (i32, i32) {
    %c0_i32 = arith.constant 0 : i32
    %c0_i32_0 = arith.constant 0 : i32
    %c0_i32_1 = arith.constant 0 : i32
    return %c0_i32, %c0_i32_0 : i32, i32
  }
  func.func @transform_10(%arg0: i32) -> (i32, i32) {
    %c0_i32 = arith.constant 0 : i32
    %c0_i32_0 = arith.constant 0 : i32
    %c0_i32_1 = arith.constant 0 : i32
    return %c0_i32, %c0_i32_0 : i32, i32
  }
  func.func @transform_11(%arg0: i32) -> (i32, i32, i32) {
    %c0_i32 = arith.constant 0 : i32
    %c0_i32_0 = arith.constant 0 : i32
    %c0_i32_1 = arith.constant 0 : i32
    return %arg0, %c0_i32, %c0_i32_0 : i32, i32, i32
  }
}

</mosaic_0001>

<bundles_post_ra>
// kernel: fancy_forward_impl.1
= control target key start
LH: loop header
LB: loop body
LE: loop exit
PB: predicated region body
PF: predicated region fallthrough
CT: control target
= control target key end

     0   :  { %s7822_s0 = inlined_call_operand.vmem [shape: f32[2,16,16,1], index: 0, kind: input, shape index: {}]   ;;  %s7823_s1 = inlined_call_operand.vmem [shape: f32[9,16], index: 1, kind: input, shape index: {}]   ;;  %s7824_s2 = inlined_call_operand.vmem [shape: f32[1,16], index: 2, kind: input, shape index: {}]   ;;  %s7825_s3 = inlined_call_operand.vmem [shape: f32[144,32], index: 3, kind: input, shape index: {}]   ;;  %s7826_s4 = inlined_call_operand.vmem [shape: f32[1,32], index: 4, kind: input, shape index: {}]   ;;  %s7827_s5 = inlined_call_operand.vmem [shape: f32[288,64], index: 5, kind: input, shape index: {}]   ;;  %s7828_s6 = inlined_call_operand.vmem [shape: f32[1,64], index: 6, kind: input, shape index: {}]   ;;  %s7829_s7 = inlined_call_operand.vmem [shape: f32[576,128], index: 7, kind: input, shape index: {}]   ;;  %s7830_s8 = inlined_call_operand.vmem [shape: f32[1,128], index: 8, kind: input, shape index: {}]   ;;  %s7831_s9 = inlined_call_operand.vmem [shape: f32[128,3], index: 9, kind: input, shape index: {}]   ;;  %s7832_s10 = inlined_call_operand.vmem [shape: f32[1,3], index: 10, kind: input, shape index: {}]   ;;  %s7833_s11 = inlined_call_operand.hbm [shape: f32[2,1,3], index: 11, kind: output, shape index: {}]  }
   0x1   :  { %7881 = sst [smem:[#allocation14_spill]] %s7822_s0 }
   0x2   :  { %7882 = sst [smem:[#allocation15_spill]] %s7823_s1 }
   0x3   :  { %16 = vsyncpa [#allocation7], 0 }
   0x4   :  { %18 = vsyncpa [#allocation7 + $0x1], 0  ;;  %s4841_s17 = smov 0   ;;  %s4843_s18 = smov 0  }
   0x5   :  { %s4845_s19 = smov 0   ;;  %s4847_s20 = smov 0  }
   0x6 LB: > { %s4862_s21 = sadd.s32 4294967295, %s4763_s20   ;;  %s4435_s22 = sadd.s32 4294967294, %s4763_s20   ;;  %s4763_s20 = sphi %s4847_s20, %s8045_s20   ;;  %s4759_s19 = sphi %s4845_s19, %s8044_s19   ;;  %s4755_s18 = sphi %s4843_s18, %s8043_s18   ;;  %s4751_s17 = sphi %s4841_s17, %s8042_s17  }
   0x7   : > { %s4866_s23 = sadd.s32 1, %s4763_s20   ;;  %s267_s24 = sadd.s32 1, %s4759_s19 }
   0x8   : > { %s264_s25 = ssub.s32 %s4763_s20, %s4866_s23  ;;  %p277_p0 = scmp.ne.s32.totalorder %s4759_s19, %s4755_s18 }
   0x9   : > { %p265_p1 = scmp.eq.s32.totalorder %s264_s25, 0  ;;  %p278_p2 = scmp.eq.s32.totalorder %s4862_s21, 1 }
   0xa   : > { %p283_p3 = scmp.ne.s32.totalorder %s4755_s18, %s4751_s17  ;;  %p284_p4 = scmp.eq.s32.totalorder %s4435_s22, 1 }
   0xb   : > { %s4877_s26 = scalar_select %p265_p1, %s4759_s19, %s267_s24  }
   0xc   : > { %p4879_p5 = por %p278_p2, %p277_p0  ;;  %p4883_p6 = por %p284_p4, %p283_p3 }
   0xd   : > { %p4438_p7 = scmp.ge.s32.totalorder %s4763_s20, 1  ;;  %p340_p8 = scmp.lt.s32.totalorder %s4763_s20, 3 }
   0xf   : > { %p341_p9 = pnand %p4438_p7, %p340_p8 }
  0x11   : > { %344 = sbr.rel (%p341_p9) target bundleno = 2123 (0x84b), region = 64 }
  0x16   : > { %vm416_vm0 = vcmask 7168   ;;  %v7842_v0 = vmov 0.0   ;;  %vm607_vm1 = vcmask 1046528   ;;  %s7866_s29 = smov 1   ;;  %vm784_vm2 = vcmask 1045504   ;;  %p379_p10 = scmp.lt.s32.totalorder %s4862_s21, 1 }
  0x17   : > { %417 = vst.msk [vmem:[#allocation2] sm:$0xff] %vm416_vm0, %v7842_v0  ;;  %s7856_s30 = smov 2   ;;  %s7885_s0 = sld [smem:[#allocation14_spill]]  ;;  %vm419_vm3 = vcmask 1024   ;;  %vm1925_vm4 = vcmask 1040384   ;;  %vm1595_vm5 = vcmask 15360  }
  0x18   : > { %418 = vst.msk [vmem:[#allocation2 + $0x8] sm:$0xff] %vm416_vm0, %v7842_v0  ;;  %s380_s12 = scalar_select %p379_p10, %s4862_s21, 1  ;;  %vm1628_vm6 = vcmask 23552   ;;  %vm1661_vm7 = vcmask 31744   ;;  %vm1694_vm8 = vcmask 39936   ;;  %vm7850_vm9 = vcmask 48128  }
  0x19   : > { %421 = vst.msk [vmem:[#allocation2 + $0x18] sm:$0xff] %vm416_vm0, %v7842_v0  ;;  %s4768_s22 = smov 6   ;;  %s7838_s24 = smov 3   ;;  %vm1760_vm10 = vcmask 56320   ;;  %vm1793_vm11 = vcmask 64512   ;;  %vm1828_vm12 = vcmask 72704  }
  0x1a   : > { %422 = vst.msk [vmem:[#allocation2 + $0x20] sm:$0xff] %vm416_vm0, %v7842_v0  ;;  %s4487_s13 = sshll.u32 %s380_s12, 8  ;;  %s7836_s25 = smov 4   ;;  %vm2042_vm13 = vcmask 130048   ;;  %vm7848_vm14 = vcmask 123904   ;;  %vm7849_vm15 = vcmask 1041409  }
  0x1b   : > { %424 = vst.msk [vmem:[#allocation2 + $0x30] sm:$0xff] %vm416_vm0, %v7842_v0  ;;  %s7840_s12 = smov 5   ;;  %s4773_s14 = smov 8  }
  0x1c   : > { %425 = vst.msk [vmem:[#allocation2 + $0x38] sm:$0xff] %vm416_vm0, %v7842_v0  ;;  %s7886_s1 = sld [smem:[#allocation15_spill]]  ;;  %s8015_s15 = smov 80  }
  0x1d   : > { %427 = vst.msk [vmem:[#allocation2 + $0x48] sm:$0xff] %vm416_vm0, %v7842_v0  ;;  %s4972_s16 = scalar_lea.vmem %s7885_s0, %s4487_s13  ;;  %s7834_s13 = smov 7  }
  0x1e   : > { %v4903_v1 = vld [vmem:[#allocation2] sm:$0xff]  ;;  %428 = vst.msk [vmem:[#allocation2 + $0x50] sm:$0xff] %vm416_vm0, %v7842_v0  ;;  %v386_v9 = vld [vmem:[%s4972_s16 + $0x10] sm:$0xff]  ;;  %v384_v10 = vld [vmem:[%s4972_s16] sm:$0xff] }
  0x1f   : > { %v4907_v2 = vld [vmem:[#allocation2 + $0x8] sm:$0xff]  ;;  %v608_v3 = vrot.slane %v4903_v1, 1  ;;  %430 = vst.msk [vmem:[#allocation2 + $0x60] sm:$0xff] %vm416_vm0, %v7842_v0  ;;  %v785_v6 = vrot.slane %v4903_v1, 2  ;;  %v385_v16 = vld [vmem:[%s4972_s16 + $0x8] sm:$0xff]  ;;  %v387_v17 = vld [vmem:[%s4972_s16 + $0x18] sm:$0xff] }
  0x20   : > { %v609_v4 = vrot.slane %v4907_v2, 1  ;;  %431 = vst.msk [vmem:[#allocation2 + $0x68] sm:$0xff] %vm416_vm0, %v7842_v0  ;;  %v786_v7 = vrot.slane %v4907_v2, 2  ;;  %v388_v34 = vld [vmem:[%s4972_s16 + $0x20] sm:$0xff]  ;;  %v389_v35 = vld [vmem:[%s4972_s16 + $0x28] sm:$0xff]  ;;  %v390_v53 = vld [vmem:[%s4972_s16 + $0x30] sm:$0xff] }
  0x21   : > { %433 = vst.msk [vmem:[#allocation2 + $0x78] sm:$0xff] %vm416_vm0, %v7842_v0  ;;  %v391_v54 = vld [vmem:[%s4972_s16 + $0x38] sm:$0xff] }
  0x22   : > { %v610_v5 = vsel %vm607_vm1, %v608_v3, %v609_v4  ;;  %434 = vst.msk [vmem:[#allocation2 + $0x80] sm:$0xff] %vm416_vm0, %v7842_v0  ;;  %v787_v8 = vsel %vm784_vm2, %v785_v6, %v786_v7 }
  0x23   : > { %688 = vrot.lane.b32.xlu0 %v610_v5, %s7866_s29  ;;  %436 = vst.msk [vmem:[#allocation2 + $0x90] sm:$0xff] %vm416_vm0, %v7842_v0 }
  0x24   : > { %437 = vst.msk [vmem:[#allocation2 + $0x98] sm:$0xff] %vm416_vm0, %v7842_v0 }
  0x25   : > { %439 = vst.msk [vmem:[#allocation2 + $0xa8] sm:$0xff] %vm416_vm0, %v7842_v0 }
  0x26   : > { %440 = vst.msk [vmem:[#allocation2 + $0xb0] sm:$0xff] %vm416_vm0, %v7842_v0 }
  0x27   : > { %442 = vst.msk [vmem:[#allocation2 + $0xc0] sm:$0xff] %vm416_vm0, %v7842_v0 }
  0x28   : > { %443 = vst.msk [vmem:[#allocation2 + $0xc8] sm:$0xff] %vm416_vm0, %v7842_v0 }
  0x29   : > { %445 = vst.msk [vmem:[#allocation2 + $0xd8] sm:$0xff] %vm416_vm0, %v7842_v0 }
  0x2a   : > { %446 = vst.msk [vmem:[#allocation2 + $0xe0] sm:$0xff] %vm416_vm0, %v7842_v0 }
  0x2b   : > { %448 = vst.msk [vmem:[#allocation2 + $0xf0] sm:$0xff] %vm416_vm0, %v7842_v0  ;;  %865 = vrot.lane.b32.xlu0 %v787_v8, %s7856_s30 }
  0x2c   : > { %449 = vst.msk [vmem:[#allocation2 + $0xf8] sm:$0xff] %vm416_vm0, %v7842_v0 }
  0x2d   : > { %451 = vst.msk [vmem:[#allocation2 + $0x108] sm:$0xff] %vm416_vm0, %v7842_v0 }
  0x2e   : > { %452 = vst.msk [vmem:[#allocation2 + $0x110] sm:$0xff] %vm416_vm0, %v7842_v0 }
  0x2f   : > { %454 = vst.msk [vmem:[#allocation2 + $0x120] sm:$0xff] %vm416_vm0, %v7842_v0 }
  0x30   : > { %455 = vst.msk [vmem:[#allocation2 + $0x128] sm:$0xff] %vm416_vm0, %v7842_v0 }
  0x31   : > { %457 = vst.msk [vmem:[#allocation2 + $0x138] sm:$0xff] %vm416_vm0, %v7842_v0 }
  0x32   : > { %458 = vst.msk [vmem:[#allocation2 + $0x140] sm:$0xff] %vm416_vm0, %v7842_v0 }
  0x33   : > { %460 = vst.msk [vmem:[#allocation2 + $0x150] sm:$0xff] %vm416_vm0, %v7842_v0 }
  0x34   : > { %461 = vst.msk [vmem:[#allocation2 + $0x158] sm:$0xff] %vm416_vm0, %v7842_v0 }
  0x35   : > { %463 = vst.msk [vmem:[#allocation2 + $0x168] sm:$0xff] %vm416_vm0, %v7842_v0 }
  0x36   : > { %464 = vst.msk [vmem:[#allocation2 + $0x170] sm:$0xff] %vm416_vm0, %v7842_v0 }
  0x37   : > { %466 = vst.msk [vmem:[#allocation2 + $0x180] sm:$0xff] %vm416_vm0, %v7842_v0 }
  0x38   : > { %467 = vst.msk [vmem:[#allocation2 + $0x188] sm:$0xff] %vm416_vm0, %v7842_v0 }
  0x39   : > { %469 = vst.msk [vmem:[#allocation2 + $0x198] sm:$0xff] %vm416_vm0, %v7842_v0 }
  0x3a   : > { %470 = vst.msk [vmem:[#allocation2 + $0x1a0] sm:$0xff] %vm416_vm0, %v7842_v0 }
  0x3b   : > { %475 = vst.msk [vmem:[#allocation2 + $0x31] sm:$0xff] %vm416_vm0, %v386_v9 }
  0x3c   : > { %473 = vst.msk [vmem:[#allocation2 + $0x19] sm:$0xff] %vm416_vm0, %v384_v10  ;;  %v392_v10 = vld [vmem:[%s4972_s16 + $0x40] sm:$0xff] }
  0x3d   : > { %420 = vst.msk [vmem:[#allocation2 + $0x10] sm:$0x3] %vm419_vm3, %v7842_v0 }
  0x3e   : > { %423 = vst.msk [vmem:[#allocation2 + $0x28] sm:$0x3] %vm419_vm3, %v7842_v0 }
  0x3f   : > { %426 = vst.msk [vmem:[#allocation2 + $0x40] sm:$0x3] %vm419_vm3, %v7842_v0 }
  0x40   : > { %429 = vst.msk [vmem:[#allocation2 + $0x58] sm:$0x3] %vm419_vm3, %v7842_v0 }
  0x41   : > { %432 = vst.msk [vmem:[#allocation2 + $0x70] sm:$0x3] %vm419_vm3, %v7842_v0 }
  0x42   : > { %v4998_v11 = vld [vmem:[#allocation2 + $0x30] sm:$0xff]  ;;  %435 = vst.msk [vmem:[#allocation2 + $0x88] sm:$0x3] %vm419_vm3, %v7842_v0 }
  0x43   : > { %1264 = vrot.lane.b32.xlu2 %v4998_v11, %s4768_s22  ;;  %v5004_v12 = vld [vmem:[#allocation2 + $0x18] sm:$0xff]  ;;  %438 = vst.msk [vmem:[#allocation2 + $0xa0] sm:$0x3] %vm419_vm3, %v7842_v0  ;;  %v618_v21 = vrot.slane %v4998_v11, 1  ;;  %v795_v30 = vrot.slane %v4998_v11, 2 }
  0x44   : > { %963 = vrot.lane.b32.xlu1 %v5004_v12, %s7838_s24  ;;  %v507_v13 = vld [vmem:[#allocation2 + $0x10] sm:$0x3]  ;;  %441 = vst.msk [vmem:[#allocation2 + $0xb8] sm:$0x3] %vm419_vm3, %v7842_v0  ;;  %v613_v18 = vrot.slane %v5004_v12, 1  ;;  %v790_v19 = vrot.slane %v5004_v12, 2 }
  0x45   : > { %v611_v14 = vrot.slane %v507_v13, 1  ;;  %444 = vst.msk [vmem:[#allocation2 + $0xd0] sm:$0x3] %vm419_vm3, %v7842_v0  ;;  %v788_v33 = vrot.slane %v507_v13, 2  ;;  %v1827_v13 = vld [vmem:[%s7886_s1 + $0x8] sm:$0x1] }
  0x46   : > { %447 = vst.msk [vmem:[#allocation2 + $0xe8] sm:$0x3] %vm419_vm3, %v7842_v0  ;;  %4441 = vmatpush.msk.msra.mxu0 %vm1925_vm4, %v1827_v13  ;;  %4489 = vmatpush.msk.msra.mxu3 %vm1925_vm4, %v1827_v13 }
  0x47   : > { %450 = vst.msk [vmem:[#allocation2 + $0x100] sm:$0x3] %vm419_vm3, %v7842_v0  ;;  %v612_v15 = vsel %vm607_vm1, %v609_v4, %v611_v14  ;;  %v789_v38 = vsel %vm784_vm2, %v786_v7, %v788_v33  ;;  %v393_v14 = vld [vmem:[%s4972_s16 + $0x48] sm:$0xff]  ;;  %4488 = vmatpush.msk.msra.mxu1 %vm1925_vm4, %v1827_v13  ;;  %vm2875_vm4 = vcmask 1043459  }
  0x48   : > { %453 = vst.msk [vmem:[#allocation2 + $0x118] sm:$0x3] %vm419_vm3, %v7842_v0 }
  0x49   : > { %456 = vst.msk [vmem:[#allocation2 + $0x130] sm:$0x3] %vm419_vm3, %v7842_v0 }
  0x4a   : > { %459 = vst.msk [vmem:[#allocation2 + $0x148] sm:$0x3] %vm419_vm3, %v7842_v0 }
  0x4b   : > { %690 = vrot.lane.b32.xlu2 %v612_v15, %s7866_s29  ;;  %462 = vst.msk [vmem:[#allocation2 + $0x160] sm:$0x3] %vm419_vm3, %v7842_v0 }
  0x4c   : > { %465 = vst.msk [vmem:[#allocation2 + $0x178] sm:$0x3] %vm419_vm3, %v7842_v0 }
  0x4d   : > { %468 = vst.msk [vmem:[#allocation2 + $0x190] sm:$0x3] %vm419_vm3, %v7842_v0 }
  0x4e   : > { %471 = vst.msk [vmem:[#allocation2 + $0x1a8] sm:$0x3] %vm419_vm3, %v7842_v0  ;;  %vm7851_vm3 = vcmask 1042434  }
  0x4f   : > { %474 = vst.msk [vmem:[#allocation2 + $0x21] sm:$0xff] %vm416_vm0, %v385_v16  ;;  %v1826_v16 = vld [vmem:[%s7886_s1] sm:$0xff] }
  0x50   : > { %476 = vst.msk [vmem:[#allocation2 + $0x39] sm:$0xff] %vm416_vm0, %v387_v17  ;;  %1944 = vmatpush.msra.mxu0 %v1826_v16  ;;  %4491 = vmatpush.msra.mxu3 %v1826_v16 }
  0x51   : > { %477 = vst.msk [vmem:[#allocation2 + $0x49] sm:$0xff] %vm416_vm0, %v388_v34  ;;  %4490 = vmatpush.msra.mxu1 %v1826_v16 }
  0x52   : > { %478 = vst.msk [vmem:[#allocation2 + $0x51] sm:$0xff] %vm416_vm0, %v389_v35 }
  0x53   : > { %479 = vst.msk [vmem:[#allocation2 + $0x61] sm:$0xff] %vm416_vm0, %v390_v53 }
  0x54   : > { %480 = vst.msk [vmem:[#allocation2 + $0x69] sm:$0xff] %vm416_vm0, %v391_v54 }
  0x55   : > { %481 = vst.msk [vmem:[#allocation2 + $0x79] sm:$0xff] %vm416_vm0, %v392_v10 }
  0x56   : > { %v5042_v20 = vld [vmem:[#allocation2 + $0x20] sm:$0xff]  ;;  %v510_v26 = vld [vmem:[#allocation2 + $0x28] sm:$0x3]  ;;  %482 = vst.msk [vmem:[#allocation2 + $0x81] sm:$0xff] %vm416_vm0, %v393_v14 }
  0x57   : > { %v614_v22 = vrot.slane %v5042_v20, 1  ;;  %v5046_v23 = vld [vmem:[#allocation2 + $0x38] sm:$0xff]  ;;  %v791_v24 = vrot.slane %v5042_v20, 2  ;;  %v616_v32 = vrot.slane %v510_v26, 1  ;;  %v513_v39 = vld [vmem:[#allocation2 + $0x40] sm:$0x3] }
  0x58   : > { %v619_v25 = vrot.slane %v5046_v23, 1  ;;  %v796_v31 = vrot.slane %v5046_v23, 2  ;;  %v621_v40 = vrot.slane %v513_v39, 1  ;;  %v793_v41 = vrot.slane %v510_v26, 2  ;;  %v5084_v46 = vld [vmem:[#allocation2 + $0x48] sm:$0xff]  ;;  %2784 = vst.msk [vmem:[#allocation3] sm:$0xff] %vm2042_vm13, %v7842_v0 }
  0x59   : > { %v615_v27 = vsel %vm607_vm1, %v613_v18, %v614_v22  ;;  %v792_v28 = vsel %vm784_vm2, %v790_v19, %v791_v24  ;;  %v617_v37 = vsel %vm607_vm1, %v614_v22, %v616_v32  ;;  %v798_v44 = vrot.slane %v513_v39, 2  ;;  %v5086_v47 = vld [vmem:[#allocation2 + $0x50] sm:$0xff]  ;;  %v516_v56 = vld [vmem:[#allocation2 + $0x58] sm:$0x3]  ;;  %2786 = vst.msk [vmem:[#allocation3 + $0x10] sm:$0xff] %vm2042_vm13, %v7842_v0 }
  0x5a   : > { %1065 = vrot.lane.b32.xlu1 %v615_v27, %s7836_s25  ;;  %v620_v29 = vsel %vm607_vm1, %v618_v21, %v619_v25  ;;  %1166 = vrot.lane.b32.xlu2 %v792_v28, %s7840_s12  ;;  %v797_v36 = vsel %vm784_vm2, %v795_v30, %v796_v31  ;;  %v5071_v42 = vsel %vm607_vm1, %v619_v25, %v621_v40  ;;  %v800_v48 = vrot.slane %v5084_v46, 2  ;;  %v5133_v62 = vld [vmem:[#allocation2 + $0x60] sm:$0xff] }
  0x5b   : > { %1366 = vrot.lane.b32.xlu0 %v620_v29, %s7834_s13  ;;  %v794_v43 = vsel %vm784_vm2, %v791_v24, %v793_v41  ;;  %v799_v45 = vsel %vm784_vm2, %v796_v31, %v798_v44  ;;  %v801_v49 = vrot.slane %v5086_v47, 2  ;;  %v623_v51 = vrot.slane %v5084_v46, 1  ;;  %v5135_v63 = vld [vmem:[#allocation2 + $0x68] sm:$0xff]  ;;  %v519_v17 = vld [vmem:[#allocation2 + $0x70] sm:$0x3]  ;;  %2788 = vst.msk [vmem:[#allocation3 + $0x20] sm:$0xff] %vm2042_vm13, %v7842_v0 }
  0x5c   : > { %v624_v52 = vrot.slane %v5086_v47, 1  ;;  %v626_v57 = vrot.slane %v516_v56, 1  ;;  %v803_v59 = vrot.slane %v516_v56, 2  ;;  %v628_v3 = vrot.slane %v5133_v62, 1  ;;  %v5210_v35 = vld [vmem:[#allocation2 + $0x78] sm:$0xff]  ;;  %v395_v56 = vld [vmem:[%s4972_s16 + $0x58] sm:$0xff] }
  0x5d   : > { %v5095_v50 = vsel %vm784_vm2, %v800_v48, %v801_v49  ;;  %v629_v4 = vrot.slane %v5135_v63, 1  ;;  %v805_v7 = vrot.slane %v5133_v62, 2  ;;  %v806_v8 = vrot.slane %v5135_v63, 2  ;;  %484 = vst.msk [vmem:[#allocation2 + $0x99] sm:$0xff] %vm416_vm0, %v395_v56 }
  0x5e   : > { %v5107_v55 = vsel %vm607_vm1, %v623_v51, %v624_v52  ;;  %v5122_v58 = vsel %vm607_vm1, %v624_v52, %v626_v57  ;;  %v5129_v60 = vsel %vm784_vm2, %v801_v49, %v803_v59  ;;  %v808_v19 = vrot.slane %v519_v17, 2  ;;  %2790 = vst.msk [vmem:[#allocation3 + $0x30] sm:$0xff] %vm2042_vm13, %v7842_v0 }
  0x5f   : > { %v5145_v5 = vsel %vm607_vm1, %v628_v3, %v629_v4  ;;  %v5158_v9 = vsel %vm784_vm2, %v805_v7, %v806_v8  ;;  %v631_v26 = vrot.slane %v519_v17, 1  ;;  %v810_v49 = vrot.slane %v5210_v35, 2  ;;  %2792 = vst.msk [vmem:[#allocation3 + $0x40] sm:$0xff] %vm2042_vm13, %v7842_v0 }
  0x60   : > { %v5184_v22 = vsel %vm784_vm2, %v806_v8, %v808_v19  ;;  %2794 = vst.msk [vmem:[#allocation3 + $0x50] sm:$0xff] %vm2042_vm13, %v7842_v0 }
  0x61   : > { %v5198_v30 = vsel %vm607_vm1, %v629_v4, %v631_v26  ;;  %2796 = vst.msk [vmem:[#allocation3 + $0x60] sm:$0xff] %vm2042_vm13, %v7842_v0 }
  0x62   : > { %1467 = vrot.lane.b32.xlu1 %v797_v36, %s4773_s14  ;;  %1067 = vrot.lane.b32.xlu2 %v617_v37, %s7836_s25  ;;  %2798 = vst.msk [vmem:[#allocation3 + $0x70] sm:$0xff] %vm2042_vm13, %v7842_v0 }
  0x63   : > { %867 = vrot.lane.b32.xlu0 %v789_v38, %s7856_s30  ;;  %2800 = vst.msk [vmem:[#allocation3 + $0x80] sm:$0xff] %vm2042_vm13, %v7842_v0 }
  0x64   : > { %2802 = vst.msk [vmem:[#allocation3 + $0x90] sm:$0xff] %vm2042_vm13, %v7842_v0 }
  0x65   : > { %2785 = vst.msk [vmem:[#allocation3 + $0x8] sm:$0x3] %vm7848_vm14, %v7842_v0 }
  0x66   : > { %2787 = vst.msk [vmem:[#allocation3 + $0x18] sm:$0x3] %vm7848_vm14, %v7842_v0 }
  0x67   : > { %2789 = vst.msk [vmem:[#allocation3 + $0x28] sm:$0x3] %vm7848_vm14, %v7842_v0 }
  0x68   : > { %2791 = vst.msk [vmem:[#allocation3 + $0x38] sm:$0x3] %vm7848_vm14, %v7842_v0 }
  0x69   : > { %2793 = vst.msk [vmem:[#allocation3 + $0x48] sm:$0x3] %vm7848_vm14, %v7842_v0 }
  0x6a   : > { %965 = vrot.lane.b32.xlu1 %v5042_v20, %s7838_s24  ;;  %1368 = vrot.lane.b32.xlu2 %v5071_v42, %s7834_s13  ;;  %2795 = vst.msk [vmem:[#allocation3 + $0x58] sm:$0x3] %vm7848_vm14, %v7842_v0 }
  0x6b   : > { %1168 = vrot.lane.b32.xlu0 %v794_v43, %s7840_s12  ;;  %2797 = vst.msk [vmem:[#allocation3 + $0x68] sm:$0x3] %vm7848_vm14, %v7842_v0 }
  0x6c   : > { %2799 = vst.msk [vmem:[#allocation3 + $0x78] sm:$0x3] %vm7848_vm14, %v7842_v0 }
  0x6d   : > { %2801 = vst.msk [vmem:[#allocation3 + $0x88] sm:$0x3] %vm7848_vm14, %v7842_v0 }
  0x6e   : > { %2803 = vst.msk [vmem:[#allocation3 + $0x98] sm:$0x3] %vm7848_vm14, %v7842_v0 }
  0x72   : > { %1266 = vrot.lane.b32.xlu1 %v5046_v23, %s4768_s22  ;;  %869 = vrot.lane.b32.xlu2 %v792_v28, %s7856_s30 }
  0x73   : > { %1469 = vrot.lane.b32.xlu0 %v799_v45, %s4773_s14 }
  0x7a   : > { %692 = vrot.lane.b32.xlu1 %v615_v27, %s7866_s29  ;;  %1170 = vrot.lane.b32.xlu2 %v797_v36, %s7840_s12 }
  0x7b   : > { %967 = vrot.lane.b32.xlu0 %v4998_v11, %s7838_s24 }
  0x82   : > { %1069 = vrot.lane.b32.xlu1 %v620_v29, %s7836_s25  ;;  %1471 = vrot.lane.b32.xlu2 %v5095_v50, %s4773_s14 }
  0x83   : > { %1268 = vrot.lane.b32.xlu0 %v5084_v46, %s4768_s22 }
  0x8a   : > { %1370 = vrot.lane.b32.xlu1 %v5107_v55, %s7834_s13  ;;  %969 = vrot.lane.b32.xlu2 %v5046_v23, %s7838_s24 }
  0x8b   : > { %694 = vrot.lane.b32.xlu0 %v617_v37, %s7866_s29  ;;  %v5213_v37 = vld [vmem:[#allocation2 + $0x80] sm:$0xff] }
  0x92   : > { %871 = vrot.lane.b32.xlu1 %v794_v43, %s7856_s30  ;;  %1270 = vrot.lane.b32.xlu2 %v5086_v47, %s4768_s22  ;;  %v634_v43 = vrot.slane %v5213_v37, 1 }
  0x93   : > { %1071 = vrot.lane.b32.xlu0 %v5071_v42, %s7836_s25 }
  0x95   : > { %v689_v18 = vpop.permute.xlu0 %688 }
  0x96   : > { %v1563_v28 = vsel %vm416_vm0, %v4903_v1, %v689_v18 }
  0x9a   : > { %1172 = vrot.lane.b32.xlu1 %v799_v45, %s7840_s12  ;;  %696 = vrot.lane.b32.xlu2 %v620_v29, %s7866_s29 }
  0x9b   : > { %1372 = vrot.lane.b32.xlu0 %v5122_v58, %s7834_s13 }
  0x9d   : > { %v5131_v61 = vpop.permute.xlu2 %1264  ;;  %v866_v25 = vpop.permute.xlu0 %865 }
  0x9e   : > { %v1596_v29 = vsel %vm1595_vm5, %v1563_v28, %v866_v25 }
  0xa2   : > { %1473 = vrot.lane.b32.xlu1 %v5129_v60, %s4773_s14  ;;  %1073 = vrot.lane.b32.xlu2 %v5107_v55, %s7836_s25  ;;  %s7889_s25 = smov 7  }
  0xa3   : > { %873 = vrot.lane.b32.xlu0 %v797_v36, %s7856_s30 }
  0xa5   : > { %v5151_v6 = vpop.permute.xlu2 %690 }
  0xa6   : > { %v1564_v54 = vsel %vm416_vm0, %v4907_v2, %v5151_v6 }
  0xaa   : > { %971 = vrot.lane.b32.xlu1 %v5084_v46, %s7838_s24  ;;  %1374 = vrot.lane.b32.xlu2 %v5145_v5, %s7834_s13  ;;  %s7887_s13 = smov 3   ;;  %s7888_s24 = smov 4  }
  0xab   : > { %1174 = vrot.lane.b32.xlu0 %v5095_v50, %s7840_s12 }
  0xb2   : > { %1272 = vrot.lane.b32.xlu1 %v5133_v62, %s4768_s22  ;;  %875 = vrot.lane.b32.xlu2 %v799_v45, %s7856_s30 }
  0xb3   : > { %1475 = vrot.lane.b32.xlu0 %v5158_v9, %s4773_s14 }
  0xb4   : > { %v1167_v15 = vpop.permute.xlu2 %1166 }
  0xb6   : > { %v964_v24 = vpop.permute.xlu1 %963 }
  0xb7   : > { %v1629_v31 = vsel %vm1628_vm6, %v1596_v29, %v964_v24 }
  0xba   : > { %698 = vrot.lane.b32.xlu1 %v5071_v42, %s7866_s29  ;;  %1176 = vrot.lane.b32.xlu2 %v5129_v60, %s7840_s12  ;;  %v633_v42 = vrot.slane %v5210_v35, 1 }
  0xbb   : > { %973 = vrot.lane.b32.xlu0 %v5086_v47, %s7887_s13 }
  0xbc   : > { %v5181_v21 = vpop.permute.xlu2 %1067  ;;  %v5229_v48 = vsel %vm607_vm1, %v633_v42, %v634_v43 }
  0xc2   : > { %1075 = vrot.lane.b32.xlu1 %v5122_v58, %s7888_s24  ;;  %1477 = vrot.lane.b32.xlu2 %v5184_v22, %s4773_s14 }
  0xc3   : > { %1274 = vrot.lane.b32.xlu0 %v5135_v63, %s4768_s22 }
  0xc4   : > { %v5192_v27 = vpop.permute.xlu2 %1368 }
  0xca   : > { %1376 = vrot.lane.b32.xlu1 %v5198_v30, %s7889_s25  ;;  %975 = vrot.lane.b32.xlu2 %v5133_v62, %s7887_s13 }
  0xcb   : > { %700 = vrot.lane.b32.xlu0 %v5107_v55, %s7866_s29  ;;  %v394_v55 = vld [vmem:[%s4972_s16 + $0x50] sm:$0xff] }
  0xcc   : > { %v1066_v32 = vpop.permute.xlu1 %1065  ;;  %v5207_v1 = vpop.permute.xlu2 %869  ;;  %483 = vst.msk [vmem:[#allocation2 + $0x91] sm:$0xff] %vm416_vm0, %v394_v55 }
  0xcd   : > { %v1662_v33 = vsel %vm1661_vm7, %v1629_v31, %v1066_v32  ;;  %v1367_v34 = vpop.permute.xlu0 %1366 }
  0xce   : > { %v1695_v36 = vsel %vm1694_vm8, %v1662_v33, %v1167_v15 }
  0xcf   : > { %v1728_v38 = vsel %vm7850_vm9, %v1695_v36, %v5131_v61  ;;  %v522_v61 = vld [vmem:[#allocation2 + $0x88] sm:$0x3] }
  0xd0   : > { %v1761_v39 = vsel %vm1760_vm10, %v1728_v38, %v1367_v34  ;;  %v636_v3 = vrot.slane %v522_v61, 1  ;;  %v813_v17 = vrot.slane %v522_v61, 2  ;;  %v525_v61 = vld [vmem:[#allocation2 + $0xa0] sm:$0x3] }
  0xd2   : > { %877 = vrot.lane.b32.xlu1 %v5095_v50, %s7856_s30  ;;  %1276 = vrot.lane.b32.xlu2 %v5210_v35, %s4768_s22  ;;  %v811_v50 = vrot.slane %v5213_v37, 2  ;;  %v5267_v15 = vsel %vm607_vm1, %v634_v43, %v636_v3 }
  0xd3   : > { %1077 = vrot.lane.b32.xlu0 %v5145_v5, %s7888_s24  ;;  %v5293_v31 = vld [vmem:[#allocation2 + $0x98] sm:$0xff] }
  0xd4   : > { %v1468_v40 = vpop.permute.xlu1 %1467  ;;  %v1171_v41 = vpop.permute.xlu2 %1170  ;;  %v5277_v19 = vsel %vm784_vm2, %v811_v50, %v813_v17  ;;  %v639_v42 = vrot.slane %v5293_v31, 1 }
  0xd5   : > { %v1794_v44 = vsel %vm1793_vm11, %v1761_v39, %v1468_v40  ;;  %v868_v45 = vpop.permute.xlu0 %867 }
  0xd6   : > { %4442 = vmatmul.msk.f32.vlgmr.msra.gmra.mxu0 %vm1828_vm12, %v1794_v44  ;;  %v1597_v57 = vsel %vm1595_vm5, %v1564_v54, %v868_v45 }
  0xda   : > { %1178 = vrot.lane.b32.xlu1 %v5158_v9, %s7840_s12  ;;  %702 = vrot.lane.b32.xlu2 %v5122_v58, %s7866_s29  ;;  %v5246_v58 = vsel %vm784_vm2, %v810_v49, %v811_v50  ;;  %v396_v49 = vld [vmem:[%s4972_s16 + $0x60] sm:$0xff]  ;;  %v397_v50 = vld [vmem:[%s4972_s16 + $0x68] sm:$0xff] }
  0xdb   : > { %1378 = vrot.lane.b32.xlu0 %v5229_v48, %s7889_s25  ;;  %485 = vst.msk [vmem:[#allocation2 + $0xa9] sm:$0xff] %vm416_vm0, %v396_v49 }
  0xdc   : > { %v966_v51 = vpop.permute.xlu1 %965  ;;  %v1472_v52 = vpop.permute.xlu2 %1471  ;;  %486 = vst.msk [vmem:[#allocation2 + $0xb1] sm:$0xff] %vm416_vm0, %v397_v50 }
  0xdd   : > { %v1169_v53 = vpop.permute.xlu0 %1168  ;;  %v1630_v59 = vsel %vm1628_vm6, %v1597_v57, %v966_v51 }
  0xde   : > { %v1663_v2 = vsel %vm1661_vm7, %v1630_v59, %v5181_v21 }
  0xdf   : > { %v1696_v4 = vsel %vm1694_vm8, %v1663_v2, %v1169_v53 }
  0xe2   : > { %1479 = vrot.lane.b32.xlu1 %v5246_v58, %s4773_s14  ;;  %1079 = vrot.lane.b32.xlu2 %v5198_v30, %s7888_s24 }
  0xe3   : > { %879 = vrot.lane.b32.xlu0 %v5129_v60, %s7856_s30  ;;  %v528_v50 = vld [vmem:[#allocation2 + $0xb8] sm:$0x3] }
  0xe4   : > { %v1267_v6 = vpop.permute.xlu1 %1266  ;;  %v5260_v7 = vpop.permute.xlu2 %969 }
  0xe5   : > { %v1729_v8 = vsel %vm7850_vm9, %v1696_v4, %v1267_v6  ;;  %v1470_v10 = vpop.permute.xlu0 %1469  ;;  %v641_v4 = vrot.slane %v525_v61, 1 }
  0xe6   : > { %v1762_v13 = vsel %vm1760_vm10, %v1729_v8, %v5192_v27  ;;  %v818_v8 = vrot.slane %v525_v61, 2  ;;  %v646_v61 = vrot.slane %v528_v50, 1 }
  0xe7   : > { %v1795_v14 = vsel %vm1793_vm11, %v1762_v13, %v1470_v10 }
  0xe8   : > { %4443 = vmatmul.msk.f32.gmra.mxu0 %vm1828_vm12, %v1795_v14 }
  0xea   : > { %977 = vrot.lane.b32.xlu1 %v5135_v63, %s7887_s13  ;;  %1380 = vrot.lane.b32.xlu2 %v5267_v15, %s7889_s25 }
  0xeb   : > { %1180 = vrot.lane.b32.xlu0 %v5184_v22, %s7840_s12 }
  0xec   : > { %v693_v60 = vpop.permute.xlu1 %692  ;;  %v1271_v16 = vpop.permute.xlu2 %1270 }
  0xed   : > { %v968_v18 = vpop.permute.xlu0 %967  ;;  %v1565_v21 = vsel %vm416_vm0, %v5004_v12, %v693_v60  ;;  %v5291_v12 = vld [vmem:[#allocation2 + $0x90] sm:$0xff] }
  0xee   : > { %v1598_v24 = vsel %vm1595_vm5, %v1565_v21, %v5207_v1  ;;  %v815_v32 = vrot.slane %v5291_v12, 2  ;;  %v816_v1 = vrot.slane %v5293_v31, 2  ;;  %v5371_v21 = vld [vmem:[#allocation2 + $0xa8] sm:$0xff] }
  0xef   : > { %v1631_v28 = vsel %vm1628_vm6, %v1598_v24, %v968_v18  ;;  %v643_v24 = vrot.slane %v5371_v21, 1 }
  0xf0   : > { %v5309_v40 = vsel %vm784_vm2, %v815_v32, %v816_v1  ;;  %v5368_v17 = vsel %vm784_vm2, %v816_v1, %v818_v8 }
  0xf2   : > { %1278 = vrot.lane.b32.xlu1 %v5213_v37, %s4768_s22  ;;  %881 = vrot.lane.b32.xlu2 %v5158_v9, %s7856_s30 }
  0xf3   : > { %1481 = vrot.lane.b32.xlu0 %v5277_v19, %s4773_s14 }
  0xf4   : > { %v1070_v25 = vpop.permute.xlu1 %1069  ;;  %v697_v26 = vpop.permute.xlu2 %696 }
  0xf5   : > { %v1269_v27 = vpop.permute.xlu0 %1268  ;;  %v1664_v29 = vsel %vm1661_vm7, %v1631_v28, %v1070_v25  ;;  %v1567_v10 = vsel %vm416_vm0, %v4998_v11, %v697_v26 }
  0xf6   : > { %v1697_v9 = vsel %vm1694_vm8, %v1664_v29, %v1171_v41  ;;  %v638_v41 = vrot.slane %v5291_v12, 1 }
  0xf7   : > { %v1730_v33 = vsel %vm7850_vm9, %v1697_v9, %v1269_v27 }
  0xf8   : > { %v5322_v51 = vsel %vm607_vm1, %v638_v41, %v639_v42 }
  0xfa   : > { %704 = vrot.lane.b32.xlu1 %v5145_v5, %s7866_s29  ;;  %1182 = vrot.lane.b32.xlu2 %v5246_v58, %s7840_s12 }
  0xfb   : > { %979 = vrot.lane.b32.xlu0 %v5210_v35, %s7887_s13 }
  0xfc   : > { %v1371_v34 = vpop.permute.xlu1 %1370  ;;  %v1074_v36 = vpop.permute.xlu2 %1073 }
  0xfd   : > { %v1763_v5 = vsel %vm1760_vm10, %v1730_v33, %v1371_v34  ;;  %v695_v38 = vpop.permute.xlu0 %694 }
  0xfe   : > { %v1796_v39 = vsel %vm1793_vm11, %v1763_v5, %v1472_v52  ;;  %v1566_v52 = vsel %vm416_vm0, %v5042_v20, %v695_v38 }
  0xff   : > { %4444 = vmatmul.msk.f32.gmra.mxu0 %vm1828_vm12, %v1796_v39 }
 0x102   : > { %1081 = vrot.lane.b32.xlu1 %v5229_v48, %s7888_s24  ;;  %1483 = vrot.lane.b32.xlu2 %v5309_v40, %s4773_s14 }
 0x103   : > { %1280 = vrot.lane.b32.xlu0 %v5291_v12, %s4768_s22 }
 0x104   : > { %v872_v43 = vpop.permute.xlu1 %871  ;;  %v1375_v44 = vpop.permute.xlu2 %1374 }
 0x105   : > { %v1072_v45 = vpop.permute.xlu0 %1071  ;;  %v1599_v53 = vsel %vm1595_vm5, %v1566_v52, %v872_v43 }
 0x106   : > { %v1632_v57 = vsel %vm1628_vm6, %v1599_v53, %v5260_v7  ;;  %v823_v53 = vrot.slane %v528_v50, 2 }
 0x107   : > { %v1665_v20 = vsel %vm1661_vm7, %v1632_v57, %v1072_v45 }
 0x10a   : > { %1382 = vrot.lane.b32.xlu1 %v5322_v51, %s7889_s25  ;;  %981 = vrot.lane.b32.xlu2 %v5213_v37, %s7887_s13 }
 0x10b   : > { %706 = vrot.lane.b32.xlu0 %v5198_v30, %s7866_s29 }
 0x10c   : > { %v1173_v54 = vpop.permute.xlu1 %1172  ;;  %v5335_v55 = vpop.permute.xlu2 %875 }
 0x10d   : > { %v1373_v56 = vpop.permute.xlu0 %1372  ;;  %v1698_v59 = vsel %vm1694_vm8, %v1665_v20, %v1173_v54  ;;  %v399_v54 = vld [vmem:[%s4972_s16 + $0x78] sm:$0xff] }
 0x10e   : > { %v1731_v30 = vsel %vm7850_vm9, %v1698_v59, %v1271_v16  ;;  %488 = vst.msk [vmem:[#allocation2 + $0xc9] sm:$0xff] %vm416_vm0, %v399_v54 }
 0x10f   : > { %v1764_v37 = vsel %vm1760_vm10, %v1731_v30, %v1373_v56 }
 0x112   : > { %883 = vrot.lane.b32.xlu1 %v5184_v22, %s7856_s30  ;;  %1282 = vrot.lane.b32.xlu2 %v5293_v31, %s4768_s22  ;;  %v5354_v22 = vsel %vm607_vm1, %v639_v42, %v641_v4  ;;  %v398_v42 = vld [vmem:[%s4972_s16 + $0x70] sm:$0xff] }
 0x113   : > { %1083 = vrot.lane.b32.xlu0 %v5267_v15, %s7888_s24  ;;  %487 = vst.msk [vmem:[#allocation2 + $0xc1] sm:$0xff] %vm416_vm0, %v398_v42 }
 0x114   : > { %v1474_v2 = vpop.permute.xlu1 %1473  ;;  %v5349_v3 = vpop.permute.xlu2 %1176 }
 0x115   : > { %v1797_v6 = vsel %vm1793_vm11, %v1764_v37, %v1474_v2  ;;  %v874_v7 = vpop.permute.xlu0 %873 }
 0x116   : > { %4445 = vmatmul.msk.f32.gmra.mxu0 %vm1828_vm12, %v1797_v6  ;;  %v1600_v16 = vsel %vm1595_vm5, %v1567_v10, %v874_v7 }
 0x11a   : > { %1184 = vrot.lane.b32.xlu1 %v5277_v19, %s7840_s12  ;;  %708 = vrot.lane.b32.xlu2 %v5229_v48, %s7866_s29  ;;  %v5373_v48 = vld [vmem:[#allocation2 + $0xb0] sm:$0xff] }
 0x11b   : > { %1384 = vrot.lane.b32.xlu0 %v5354_v22, %s7889_s25  ;;  %v644_v25 = vrot.slane %v5373_v48, 1  ;;  %v821_v5 = vrot.slane %v5373_v48, 2 }
 0x11c   : > { %v972_v13 = vpop.permute.xlu1 %971  ;;  %v5364_v14 = vpop.permute.xlu2 %1477 }
 0x11d   : > { %v1175_v60 = vpop.permute.xlu0 %1174  ;;  %v1633_v18 = vsel %vm1628_vm6, %v1600_v16, %v972_v13  ;;  %v5463_v59 = vsel %vm784_vm2, %v821_v5, %v823_v53  ;;  %v5495_v16 = vld [vmem:[#allocation2 + $0xc8] sm:$0xff]  ;;  %v409_v53 = vld [vmem:[%s4972_s16 + $0xc8] sm:$0xff] }
 0x11e   : > { %v1666_v11 = vsel %vm1661_vm7, %v1633_v18, %v1074_v36  ;;  %v820_v36 = vrot.slane %v5371_v21, 2  ;;  %v406_v18 = vld [vmem:[%s4972_s16 + $0xb0] sm:$0xff]  ;;  %498 = vst.msk [vmem:[#allocation2 + $0x141] sm:$0xff] %vm416_vm0, %v409_v53 }
 0x11f   : > { %v1699_v26 = vsel %vm1694_vm8, %v1666_v11, %v1175_v60  ;;  %495 = vst.msk [vmem:[#allocation2 + $0x121] sm:$0xff] %vm416_vm0, %v406_v18 }
 0x120   : > { %v5407_v39 = vsel %vm784_vm2, %v820_v36, %v821_v5 }
 0x122   : > { %1485 = vrot.lane.b32.xlu1 %v5368_v17, %s4773_s14  ;;  %1085 = vrot.lane.b32.xlu2 %v5322_v51, %s7888_s24 }
 0x123   : > { %885 = vrot.lane.b32.xlu0 %v5246_v58, %s7856_s30  ;;  %v5393_v58 = vsel %vm607_vm1, %v643_v24, %v644_v25 }
 0x124   : > { %v1273_v27 = vpop.permute.xlu1 %1272  ;;  %v5385_v28 = vpop.permute.xlu2 %975 }
 0x125   : > { %v1732_v29 = vsel %vm7850_vm9, %v1699_v26, %v1273_v27  ;;  %v1476_v9 = vpop.permute.xlu0 %1475 }
 0x126   : > { %v1765_v32 = vsel %vm1760_vm10, %v1732_v29, %v1375_v44 }
 0x127   : > { %v1798_v1 = vsel %vm1793_vm11, %v1765_v32, %v1476_v9  ;;  %v826_v32 = vrot.slane %v5495_v16, 2 }
 0x128   : > { %4446 = vmatmul.msk.f32.gmra.mxu0 %vm1828_vm12, %v1798_v1 }
 0x12a   : > { %983 = vrot.lane.b32.xlu1 %v5291_v12, %s7887_s13  ;;  %1386 = vrot.lane.b32.xlu2 %v5393_v58, %s7889_s25 }
 0x12b   : > { %1186 = vrot.lane.b32.xlu0 %v5309_v40, %s7840_s12 }
 0x12c   : > { %v699_v33 = vpop.permute.xlu1 %698  ;;  %v5402_v34 = vpop.permute.xlu2 %1276 }
 0x12d   : > { %v974_v38 = vpop.permute.xlu0 %973  ;;  %v1568_v41 = vsel %vm416_vm0, %v5046_v23, %v699_v33 }
 0x12e   : > { %v1601_v43 = vsel %vm1595_vm5, %v1568_v41, %v5335_v55  ;;  %v531_v41 = vld [vmem:[#allocation2 + $0xd0] sm:$0x3] }
 0x12f   : > { %v651_v42 = vrot.slane %v531_v41, 1 }
 0x132   : > { %1284 = vrot.lane.b32.xlu1 %v5371_v21, %s4768_s22  ;;  %887 = vrot.lane.b32.xlu2 %v5277_v19, %s7856_s30  ;;  %v1634_v19 = vsel %vm1628_vm6, %v1601_v43, %v974_v38 }
 0x133   : > { %1487 = vrot.lane.b32.xlu0 %v5407_v39, %s4773_s14 }
 0x134   : > { %v1076_v44 = vpop.permute.xlu1 %1075  ;;  %v5421_v45 = vpop.permute.xlu2 %702 }
 0x135   : > { %v1275_v23 = vpop.permute.xlu0 %1274  ;;  %v1667_v49 = vsel %vm1661_vm7, %v1634_v19, %v1076_v44  ;;  %v1570_v1 = vsel %vm416_vm0, %v5086_v47, %v5421_v45 }
 0x136   : > { %v1700_v52 = vsel %vm1694_vm8, %v1667_v49, %v5349_v3  ;;  %v5476_v3 = vsel %vm607_vm1, %v644_v25, %v646_v61 }
 0x137   : > { %v1733_v55 = vsel %vm7850_vm9, %v1700_v52, %v1275_v23  ;;  %v408_v52 = vld [vmem:[%s4972_s16 + $0xc0] sm:$0xff] }
 0x138   : > { %497 = vst.msk [vmem:[#allocation2 + $0x139] sm:$0xff] %vm416_vm0, %v408_v52 }
 0x13a   : > { %710 = vrot.lane.b32.xlu1 %v5267_v15, %s7866_s29  ;;  %1188 = vrot.lane.b32.xlu2 %v5368_v17, %s7840_s12 }
 0x13b   : > { %985 = vrot.lane.b32.xlu0 %v5293_v31, %s7887_s13 }
 0x13c   : > { %v1377_v15 = vpop.permute.xlu1 %1376  ;;  %v5451_v56 = vpop.permute.xlu2 %1079 }
 0x13d   : > { %v1766_v57 = vsel %vm1760_vm10, %v1733_v55, %v1377_v15  ;;  %v701_v20 = vpop.permute.xlu0 %700  ;;  %v400_v55 = vld [vmem:[%s4972_s16 + $0x80] sm:$0xff] }
 0x13e   : > { %v1799_v31 = vsel %vm1793_vm11, %v1766_v57, %v5364_v14  ;;  %v1569_v4 = vsel %vm416_vm0, %v5084_v46, %v701_v20  ;;  %v5492_v14 = vld [vmem:[#allocation2 + $0xc0] sm:$0xff]  ;;  %v828_v57 = vrot.slane %v531_v41, 2  ;;  %489 = vst.msk [vmem:[#allocation2 + $0xd9] sm:$0xff] %vm416_vm0, %v400_v55 }
 0x13f   : > { %4447 = vmatmul.msk.f32.gmra.mxu0 %vm1828_vm12, %v1799_v31  ;;  %v648_v26 = vrot.slane %v5492_v14, 1  ;;  %v825_v9 = vrot.slane %v5492_v14, 2  ;;  %v401_v20 = vld [vmem:[%s4972_s16 + $0x88] sm:$0xff] }
 0x140   : > { %490 = vst.msk [vmem:[#allocation2 + $0xe1] sm:$0xff] %vm416_vm0, %v401_v20  ;;  %v5593_v31 = vsel %vm784_vm2, %v826_v32, %v828_v57 }
 0x141   : > { %v5534_v38 = vsel %vm784_vm2, %v825_v9, %v826_v32 }
 0x142   : > { %1087 = vrot.lane.b32.xlu1 %v5354_v22, %s7888_s24  ;;  %1489 = vrot.lane.b32.xlu2 %v5463_v59, %s4773_s14 }
 0x143   : > { %1286 = vrot.lane.b32.xlu0 %v5373_v48, %s4768_s22 }
 0x144   : > { %v878_v30 = vpop.permute.xlu1 %877  ;;  %v5471_v37 = vpop.permute.xlu2 %1380 }
 0x145   : > { %v1078_v2 = vpop.permute.xlu0 %1077  ;;  %v1602_v6 = vsel %vm1595_vm5, %v1569_v4, %v878_v30  ;;  %v5597_v30 = vld [vmem:[#allocation2 + $0x120] sm:$0xff] }
 0x146   : > { %v1635_v46 = vsel %vm1628_vm6, %v1602_v6, %v5385_v28  ;;  %v845_v4 = vrot.slane %v5597_v30, 2  ;;  %v410_v6 = vld [vmem:[%s4972_s16 + $0xd0] sm:$0xff] }
 0x147   : > { %v1668_v13 = vsel %vm1661_vm7, %v1635_v46, %v1078_v2  ;;  %499 = vst.msk [vmem:[#allocation2 + $0x151] sm:$0xff] %vm416_vm0, %v410_v6 }
 0x14a   : > { %1388 = vrot.lane.b32.xlu1 %v5476_v3, %s7889_s25  ;;  %987 = vrot.lane.b32.xlu2 %v5371_v21, %s7887_s13  ;;  %v407_v21 = vld [vmem:[%s4972_s16 + $0xb8] sm:$0xff] }
 0x14b   : > { %712 = vrot.lane.b32.xlu0 %v5322_v51, %s7866_s29  ;;  %496 = vst.msk [vmem:[#allocation2 + $0x129] sm:$0xff] %vm416_vm0, %v407_v21 }
 0x14c   : > { %v1179_v7 = vpop.permute.xlu1 %1178  ;;  %v5487_v8 = vpop.permute.xlu2 %881 }
 0x14d   : > { %v1379_v10 = vpop.permute.xlu0 %1378  ;;  %v1701_v60 = vsel %vm1694_vm8, %v1668_v13, %v1179_v7  ;;  %v668_v13 = vrot.slane %v5597_v30, 1 }
 0x14e   : > { %v1734_v51 = vsel %vm7850_vm9, %v1701_v60, %v5402_v34 }
 0x14f   : > { %v1767_v11 = vsel %vm1760_vm10, %v1734_v51, %v1379_v10 }
 0x152   : > { %889 = vrot.lane.b32.xlu1 %v5309_v40, %s7856_s30  ;;  %1288 = vrot.lane.b32.xlu2 %v5492_v14, %s4768_s22  ;;  %v649_v40 = vrot.slane %v5495_v16, 1 }
 0x153   : > { %1089 = vrot.lane.b32.xlu0 %v5393_v58, %s7888_s24  ;;  %v1946_v54 = vpop.f32.mrf.mxu0 }
 0x154   : > { %v1480_v24 = vpop.permute.xlu1 %1479  ;;  %v5508_v25 = vpop.permute.xlu2 %1182  ;;  %v5517_v29 = vsel %vm607_vm1, %v648_v26, %v649_v40  ;;  %v5567_v50 = vsel %vm607_vm1, %v649_v40, %v651_v42  ;;  %v5651_v42 = vld [vmem:[#allocation2 + $0x140] sm:$0xff] }
 0x155   : > { %v1800_v27 = vsel %vm1793_vm11, %v1767_v11, %v1480_v24  ;;  %v880_v28 = vpop.permute.xlu0 %879  ;;  %v411_v11 = vld [vmem:[%s4972_s16 + $0xd8] sm:$0xff]  ;;  %v674_v55 = vrot.slane %v5651_v42, 1 }
 0x156   : > { %4448 = vmatmul.msk.f32.gmra.mxu0 %vm1828_vm12, %v1800_v27  ;;  %v1603_v5 = vsel %vm1595_vm5, %v1570_v1, %v880_v28  ;;  %500 = vst.msk [vmem:[#allocation2 + $0x159] sm:$0xff] %vm416_vm0, %v411_v11  ;;  %v2043_v28 = vsel %vm2042_vm13, %v1946_v54, 0.0 }
 0x15a   : > { %1190 = vrot.lane.b32.xlu1 %v5407_v39, %s7840_s12  ;;  %714 = vrot.lane.b32.xlu2 %v5354_v22, %s7866_s29 }
 0x15b   : > { %1390 = vrot.lane.b32.xlu0 %v5517_v29, %s7889_s25 }
 0x15c   : > { %v978_v33 = vpop.permute.xlu1 %977  ;;  %v5530_v34 = vpop.permute.xlu2 %1483 }
 0x15d   : > { %v1181_v36 = vpop.permute.xlu0 %1180  ;;  %v1636_v22 = vsel %vm1628_vm6, %v1603_v5, %v978_v33 }
 0x15e   : > { %v1669_v47 = vsel %vm1661_vm7, %v1636_v22, %v5451_v56 }
 0x15f   : > { %v1702_v43 = vsel %vm1694_vm8, %v1669_v47, %v1181_v36  ;;  %v544_v47 = vld [vmem:[#allocation2 + $0x138] sm:$0xff] }
 0x160   : > { %v673_v54 = vrot.slane %v544_v47, 1 }
 0x162   : > { %1491 = vrot.lane.b32.xlu1 %v5534_v38, %s4773_s14  ;;  %1091 = vrot.lane.b32.xlu2 %v5476_v3, %s7888_s24 }
 0x163   : > { %891 = vrot.lane.b32.xlu0 %v5368_v17, %s7856_s30 }
 0x164   : > { %v1279_v44 = vpop.permute.xlu1 %1278  ;;  %v5554_v45 = vpop.permute.xlu2 %981 }
 0x165   : > { %v1735_v23 = vsel %vm7850_vm9, %v1702_v43, %v1279_v44  ;;  %v1482_v19 = vpop.permute.xlu0 %1481  ;;  %v5605_v2 = vpop.f32.mrf.mxu0 }
 0x166   : > { %v1768_v17 = vsel %vm1760_vm10, %v1735_v23, %v5471_v37  ;;  %v5599_v37 = vld [vmem:[#allocation2 + $0x128] sm:$0xff] }
 0x167   : > { %v1801_v49 = vsel %vm1793_vm11, %v1768_v17, %v1482_v19 }
 0x168   : > { %4449 = vmatmul.msk.f32.gmra.mxu0 %vm1828_vm12, %v1801_v49  ;;  %v851_v49 = vrot.slane %v5651_v42, 2 }
 0x16a   : > { %989 = vrot.lane.b32.xlu1 %v5373_v48, %s7887_s13  ;;  %1392 = vrot.lane.b32.xlu2 %v5567_v50, %s7889_s25 }
 0x16b   : > { %1192 = vrot.lane.b32.xlu0 %v5463_v59, %s7840_s12 }
 0x16c   : > { %v705_v15 = vpop.permute.xlu1 %704  ;;  %v5587_v56 = vpop.permute.xlu2 %1282 }
 0x16d   : > { %v980_v48 = vpop.permute.xlu0 %979  ;;  %v1571_v61 = vsel %vm416_vm0, %v5133_v62, %v705_v15  ;;  %v846_v62 = vrot.slane %v5599_v37, 2 }
 0x16e   : > { %v1604_v7 = vsel %vm1595_vm5, %v1571_v61, %v5487_v8 }
 0x16f   : > { %v1637_v51 = vsel %vm1628_vm6, %v1604_v7, %v980_v48  ;;  %v5623_v18 = vsel %vm784_vm2, %v845_v4, %v846_v62  ;;  %v5674_v7 = vsel %vm607_vm1, %v673_v54, %v674_v55 }
 0x170   : > { %7891 = vst [vmem:[#allocation10_spill] sm:$0xff] %v5674_v7 }
 0x172   : > { %1290 = vrot.lane.b32.xlu1 %v5495_v16, %s4768_s22  ;;  %893 = vrot.lane.b32.xlu2 %v5407_v39, %s7856_s30  ;;  %v669_v39 = vrot.slane %v5599_v37, 1 }
 0x173   : > { %1493 = vrot.lane.b32.xlu0 %v5593_v31, %s4773_s14 }
 0x174   : > { %v1082_v10 = vpop.permute.xlu1 %1081  ;;  %v5614_v46 = vpop.permute.xlu2 %708  ;;  %v5629_v8 = vsel %vm607_vm1, %v668_v13, %v669_v39 }
 0x175   : > { %v1281_v60 = vpop.permute.xlu0 %1280  ;;  %v1670_v21 = vsel %vm1661_vm7, %v1637_v51, %v1082_v10  ;;  %v5676_v10 = vld [vmem:[#allocation2 + $0xe0] sm:$0xff] }
 0x176   : > { %v1703_v24 = vsel %vm1694_vm8, %v1670_v21, %v5508_v25  ;;  %v5683_v21 = vld [vmem:[#allocation2 + $0xd8] sm:$0xff] }
 0x177   : > { %v1736_v26 = vsel %vm7850_vm9, %v1703_v24, %v1281_v60 }
 0x17a   : > { %716 = vrot.lane.b32.xlu1 %v5393_v58, %s7866_s29  ;;  %913 = vrot.lane.b32.xlu2 %v5623_v18, %s7856_s30 }
 0x17b   : > { %736 = vrot.lane.b32.xlu0 %v5629_v8, %s7866_s29 }
 0x17c   : > { %v1952_v40 = vpop.f32.mrf.mxu0  ;;  %v1383_v27 = vpop.permute.xlu1 %1382 }
 0x17d   : > { %v2044_v9 = vsel %vm2042_vm13, %v1952_v40, 0.0  ;;  %v1769_v32 = vsel %vm1760_vm10, %v1736_v26, %v1383_v27  ;;  %v707_v58 = vpop.permute.xlu0 %706  ;;  %v5645_v1 = vpop.permute.xlu2 %1085  ;;  %v830_v26 = vrot.slane %v5683_v21, 2  ;;  %v7845_v40 = vrot.slane %v5676_v10, 2 }
 0x17e   : > { %v2045_v33 = vadd.f32 %v2044_v9, %v2043_v28  ;;  %v1802_v25 = vsel %vm1793_vm11, %v1769_v32, %v5530_v34  ;;  %v850_v34 = vrot.slane %v544_v47, 2  ;;  %v1572_v51 = vsel %vm416_vm0, %v5135_v63, %v707_v58 }
 0x17f   : > { %4450 = vmatmul.msk.f32.gmra.mxu0 %vm1828_vm12, %v1802_v25  ;;  %v653_v63 = vrot.slane %v5683_v21, 1  ;;  %v7847_v9 = vrot.slane %v5676_v10, 1 }
 0x180   : > { %v2107_v36 = vrot.slane %v2045_v33, 2  ;;  %v2108_v5 = vrot.slane %v2045_v33, 4  ;;  %v2109_v22 = vrot.slane %v2045_v33, 6  ;;  %v2204_v41 = vsel %vm7848_vm14, %v2045_v33, 0.0 }
 0x181   : > { %v2205_v52 = vrot.slane %v2204_v41, 4  ;;  %v5669_v4 = vsel %vm784_vm2, %v850_v34, %v851_v49 }
 0x182   : > { %v2211_v43 = vsel %vm7848_vm14, %v2107_v36, 0.0  ;;  %v2218_v44 = vsel %vm7848_vm14, %v2108_v5, 0.0  ;;  %991 = vrot.lane.b32.xlu1 %v5492_v14, %s7887_s13  ;;  %1194 = vrot.lane.b32.xlu2 %v5534_v38, %s7840_s12  ;;  %v2225_v17 = vsel %vm7848_vm14, %v2109_v22, 0.0  ;;  %7890 = vst [vmem:[#allocation9_spill] sm:$0xff] %v5669_v4 }
 0x183   : > { %v2212_v23 = vrot.slane %v2211_v43, 4  ;;  %v2219_v19 = vrot.slane %v2218_v44, 4  ;;  %1093 = vrot.lane.b32.xlu0 %v5517_v29, %s7888_s24  ;;  %v2226_v20 = vrot.slane %v2225_v17, 4  ;;  %v2206_v6 = vadd.f32 %v2205_v52, %v2204_v41  ;;  %v5716_v52 = vld [vmem:[#allocation2 + $0x158] sm:$0xff] }
 0x184   : > { %v884_v53 = vpop.permute.xlu1 %883  ;;  %v5700_v41 = vsel %vm784_vm2, %v830_v26, %v7845_v40 }
 0x185   : > { %v2213_v15 = vadd.f32 %v2212_v23, %v2211_v43  ;;  %v1084_v14 = vpop.permute.xlu0 %1083  ;;  %v5664_v57 = vpop.permute.xlu2 %1386  ;;  %v2220_v48 = vadd.f32 %v2219_v19, %v2218_v44  ;;  %v2227_v60 = vadd.f32 %v2226_v20, %v2225_v17  ;;  %v1605_v24 = vsel %vm1595_vm5, %v1572_v51, %v884_v53  ;;  %v5725_v20 = vld [vmem:[%s7824_s2] ss:$0 sm:$0xff] }
 0x186   : > { %v2207_v27 = vrot.slane %v2206_v6, 2  ;;  %v1638_v36 = vsel %vm1628_vm6, %v1605_v24, %v5554_v45  ;;  %v5706_v44 = vsel %vm607_vm1, %v653_v63, %v7847_v9  ;;  %v2046_v53 = vsel %vm2042_vm13, %v5605_v2, 0.0 }
 0x187   : > { %v2214_v61 = vrot.slane %v2213_v15, 2  ;;  %v2221_v13 = vrot.slane %v2220_v48, 2  ;;  %v2228_v25 = vrot.slane %v2227_v60, 2  ;;  %v1671_v22 = vsel %vm1661_vm7, %v1638_v36, %v1084_v14 }
 0x188   : > { %v7846_v24 = vrot.slane %v5716_v52, 1 }
 0x189   : > { %v2215_v11 = vadd.f32 %v2214_v61, %v2213_v15  ;;  %v2222_v33 = vadd.f32 %v2221_v13, %v2220_v48  ;;  %v2229_v23 = vadd.f32 %v2228_v25, %v2227_v60  ;;  %v5728_v13 = vld [vmem:[#allocation2 + $0x150] sm:$0xff] }
 0x18a   : > { %1011 = vrot.lane.b32.xlu1 %v544_v47, %s7887_s13  ;;  %1214 = vrot.lane.b32.xlu2 %v5669_v4, %s7840_s12  ;;  %v2208_v47 = vadd.f32 %v2207_v27, %v2206_v6  ;;  %v855_v36 = vrot.slane %v5728_v13, 2  ;;  %s7892_s12 = smov 5  }
 0x18b   : > { %1113 = vrot.lane.b32.xlu0 %v5674_v7, %s7888_s24  ;;  %v2216_v5 = vrot.slane %v2215_v11, 1  ;;  %v2223_v34 = vrot.slane %v2222_v33, 1  ;;  %v2230_v51 = vrot.slane %v2229_v23, 1 }
 0x18c   : > { %v1185_v28 = vpop.permute.xlu1 %1184  ;;  %v2209_v54 = vrot.slane %v2208_v47, 1 }
 0x18d   : > { %v1385_v32 = vpop.permute.xlu0 %1384  ;;  %v5692_v58 = vpop.permute.xlu2 %887  ;;  %v1704_v43 = vsel %vm1694_vm8, %v1671_v22, %v1185_v28  ;;  %v2217_v45 = vadd.f32 %v2216_v5, %v2215_v11  ;;  %v2224_v2 = vadd.f32 %v2223_v34, %v2222_v33  ;;  %v678_v11 = vrot.slane %v5728_v13, 1 }
 0x18e   : > { %v1737_v19 = vsel %vm7850_vm9, %v1704_v43, %v5587_v56  ;;  %v7844_v33 = vrot.slane %v5716_v52, 2 }
 0x18f   : > { %v1770_v15 = vsel %vm1760_vm10, %v1737_v19, %v1385_v32  ;;  %v2657_v26 = vadd.f32 %v5725_v20, %v2217_v45  ;;  %v2210_v32 = vadd.f32 %v2209_v54, %v2208_v47  ;;  %v2231_v19 = vadd.f32 %v2230_v51, %v2229_v23 }
 0x190   : > { %v1573_v47 = vsel %vm416_vm0, %v5210_v35, %v5614_v46  ;;  %v2658_v54 = vadd.f32 %v5725_v20, %v2224_v2  ;;  %v5756_v35 = vsel %vm607_vm1, %v678_v11, %v7846_v24 }
 0x191   : > { %v2656_v51 = vadd.f32 %v5725_v20, %v2210_v32  ;;  %v2659_v2 = vadd.f32 %v5725_v20, %v2231_v19  ;;  %v543_v32 = vld [vmem:[#allocation2 + $0x130] sm:$0x3] }
 0x192   : > { %1292 = vrot.lane.b32.xlu1 %v5683_v21, %s4768_s22  ;;  %1495 = vrot.lane.b32.xlu2 %v5700_v41, %s4773_s14  ;;  %v671_v0 = vrot.slane %v543_v32, 1 }
 0x193   : > { %v1955_v17 = vpop.f32.mrf.mxu0  ;;  %1394 = vrot.lane.b32.xlu0 %v5706_v44, %s7889_s25  ;;  %v2723_v19 = vmax.f32 %v2659_v2, 0.0 }
 0x194   : > { %v2047_v14 = vsel %vm2042_vm13, %v1955_v17, 0.0  ;;  %v1486_v48 = vpop.permute.xlu1 %1485  ;;  %v5783_v2 = vsel %vm607_vm1, %v669_v39, %v671_v0 }
 0x195   : > { %v2048_v56 = vadd.f32 %v2047_v14, %v2046_v53  ;;  %v1803_v61 = vsel %vm1793_vm11, %v1770_v15, %v1486_v48  ;;  %v886_v6 = vpop.permute.xlu0 %885  ;;  %v5730_v60 = vpop.permute.xlu2 %1188  ;;  %v2721_v15 = vmax.f32 %v2657_v26, 0.0 }
 0x196   : > { %4451 = vmatmul.msk.f32.gmra.mxu0 %vm1828_vm12, %v1803_v61  ;;  %v1606_v11 = vsel %vm1595_vm5, %v1573_v47, %v886_v6 }
 0x197   : > { %v2110_v27 = vrot.slane %v2048_v56, 2  ;;  %v2111_v28 = vrot.slane %v2048_v56, 4  ;;  %v2112_v63 = vrot.slane %v2048_v56, 6  ;;  %v2232_v25 = vsel %vm7848_vm14, %v2048_v56, 0.0 }
 0x198   : > { %v2233_v5 = vrot.slane %v2232_v25, 4 }
 0x199   : > { %v2239_v22 = vsel %vm7848_vm14, %v2110_v27, 0.0  ;;  %v2246_v43 = vsel %vm7848_vm14, %v2111_v28, 0.0  ;;  %v2253_v34 = vsel %vm7848_vm14, %v2112_v63, 0.0  ;;  %vm7855_vm14 = vcmask 1044484  }
 0x19a   : > { %v2240_v45 = vrot.slane %v2239_v22, 4  ;;  %v2247_v17 = vrot.slane %v2246_v43, 4  ;;  %v2254_v53 = vrot.slane %v2253_v34, 4  ;;  %1312 = vrot.lane.b32.xlu1 %v5728_v13, %s4768_s22  ;;  %895 = vrot.lane.b32.xlu2 %v5463_v59, %s7856_s30  ;;  %v2234_v14 = vadd.f32 %v2233_v5, %v2232_v25 }
 0x19b   : > { %718 = vrot.lane.b32.xlu0 %v5476_v3, %s7866_s29  ;;  %v5763_v3 = vsel %vm784_vm2, %v855_v36, %v7844_v33  ;;  %v2722_v25 = vmax.f32 %v2658_v54, 0.0  ;;  %v2868_v5 = vrot.slane %v2721_v15, 7  ;;  %v848_v33 = vrot.slane %v543_v32, 2 }
 0x19c   : > { %v2241_v23 = vadd.f32 %v2240_v45, %v2239_v22  ;;  %v2248_v48 = vadd.f32 %v2247_v17, %v2246_v43  ;;  %v2255_v56 = vadd.f32 %v2254_v53, %v2253_v34  ;;  %v984_v61 = vpop.permute.xlu1 %983  ;;  %v2235_v27 = vrot.slane %v2234_v14, 2 }
 0x19d   : > { %v1187_v59 = vpop.permute.xlu0 %1186  ;;  %v5758_v46 = vpop.permute.xlu2 %1489  ;;  %v1639_v17 = vsel %vm1628_vm6, %v1606_v11, %v984_v61  ;;  %v2720_v53 = vmax.f32 %v2656_v51, 0.0  ;;  %v2871_v47 = vrot.slane %v2722_v25, 6 }
 0x19e   : > { %v2242_v26 = vrot.slane %v2241_v23, 2  ;;  %v2249_v28 = vrot.slane %v2248_v48, 2  ;;  %v2256_v63 = vrot.slane %v2255_v56, 2  ;;  %v2236_v22 = vadd.f32 %v2235_v27, %v2234_v14 }
 0x19f   : > { %v2870_v6 = vsel %vm7849_vm15, %v2868_v5, %v2720_v53  ;;  %v1672_v15 = vsel %vm1661_vm7, %v1639_v17, %v5645_v1  ;;  %vm7854_vm15 = vcmask 1045509  }
 0x1a0   : > { %v2243_v43 = vadd.f32 %v2242_v26, %v2241_v23  ;;  %v2250_v34 = vadd.f32 %v2249_v28, %v2248_v48  ;;  %v2257_v45 = vadd.f32 %v2256_v63, %v2255_v56  ;;  %v2237_v36 = vrot.slane %v2236_v22, 1 }
 0x1a1   : > { %v1705_v56 = vsel %vm1694_vm8, %v1672_v15, %v1187_v59  ;;  %v5793_v59 = vsel %vm784_vm2, %v846_v62, %v848_v33  ;;  %v2873_v26 = vsel %vm7851_vm3, %v2871_v47, %v2870_v6  ;;  %v2874_v28 = vrot.slane %v2723_v19, 5  ;;  %v546_v19 = vld [vmem:[#allocation2 + $0x148] sm:$0x3]  ;;  %v4675_v6 = vld [vmem:[#allocation2 + $0x80] sm:$0xff] }
 0x1a2   : > { %v2244_v40 = vrot.slane %v2243_v43, 1  ;;  %v2251_v24 = vrot.slane %v2250_v34, 1  ;;  %v2258_v9 = vrot.slane %v2257_v45, 1  ;;  %1414 = vrot.lane.b32.xlu1 %v5756_v35, %s7889_s25  ;;  %993 = vrot.lane.b32.xlu2 %v5495_v16, %s7887_s13  ;;  %v2238_v54 = vadd.f32 %v2237_v36, %v2236_v22 }
 0x1a3   : > { %1515 = vrot.lane.b32.xlu0 %v5763_v3, %s4773_s14  ;;  %v2876_v37 = vsel %vm2875_vm4, %v2874_v28, %v2873_v26  ;;  %vm7852_vm3 = vcmask 1047559  }
 0x1a4   : > { %v2245_v14 = vadd.f32 %v2244_v40, %v2243_v43  ;;  %v2252_v23 = vadd.f32 %v2251_v24, %v2250_v34  ;;  %v2259_v48 = vadd.f32 %v2258_v9, %v2257_v45  ;;  %v1285_v61 = vpop.permute.xlu1 %1284  ;;  %v2660_v51 = vadd.f32 %v5725_v20, %v2238_v54 }
 0x1a5   : > { %v1738_v16 = vsel %vm7850_vm9, %v1705_v56, %v1285_v61  ;;  %v1488_v27 = vpop.permute.xlu0 %1487  ;;  %v5788_v24 = vpop.permute.xlu2 %987  ;;  %vm7853_vm9 = vcmask 1046534   ;;  %v676_v54 = vrot.slane %v546_v19, 1 }
 0x1a6   : > { %v2661_v1 = vadd.f32 %v5725_v20, %v2245_v14  ;;  %v2662_v40 = vadd.f32 %v5725_v20, %v2252_v23  ;;  %v2663_v9 = vadd.f32 %v5725_v20, %v2259_v48  ;;  %v2724_v63 = vmax.f32 %v2660_v51, 0.0 }
 0x1a7   : > { %v1771_v0 = vsel %vm1760_vm10, %v1738_v16, %v5664_v57  ;;  %v853_v23 = vrot.slane %v546_v19, 2  ;;  %v5829_v51 = vsel %vm607_vm1, %v674_v55, %v676_v54 }
 0x1a8   : > { %v2725_v39 = vmax.f32 %v2661_v1, 0.0  ;;  %v2726_v32 = vmax.f32 %v2662_v40, 0.0  ;;  %v2727_v25 = vmax.f32 %v2663_v9, 0.0  ;;  %v1804_v5 = vsel %vm1793_vm11, %v1771_v0, %v1488_v27  ;;  %7893 = vst [vmem:[#allocation11_spill] sm:$0xff] %v5829_v51  ;;  %v549_v1 = vld [vmem:[#allocation2 + $0x160] sm:$0x3] }
 0x1a9   : > { %v2877_v22 = vrot.slane %v2724_v63, 4  ;;  %4452 = vmatmul.msk.f32.gmra.mxu0 %vm1828_vm12, %v1804_v5  ;;  %v5835_v27 = vsel %vm784_vm2, %v851_v49, %v853_v23  ;;  %v681_v40 = vrot.slane %v549_v1, 1  ;;  %v858_v19 = vrot.slane %v549_v1, 2 }
 0x1aa   : > { %v2880_v62 = vrot.slane %v2725_v39, 3  ;;  %v2883_v33 = vrot.slane %v2726_v32, 2  ;;  %738 = vrot.lane.b32.xlu1 %v5783_v2, %s7866_s29  ;;  %1013 = vrot.lane.b32.xlu2 %v5651_v42, %s7887_s13  ;;  %v2886_v43 = vrot.slane %v2727_v25, 1  ;;  %7894 = vst [vmem:[#allocation12_spill] sm:$0xff] %v5835_v27  ;;  %v7897_v25 = vrot.slane %v5716_v52, 1 }
 0x1ab   : > { %v2879_v57 = vsel %vm7855_vm14, %v2877_v22, %v2876_v37  ;;  %915 = vrot.lane.b32.xlu0 %v5793_v59, %s7856_s30  ;;  %v7898_v22 = vrot.slane %v5676_v10, 2 }
 0x1ac   : > { %v2882_v11 = vsel %vm7854_vm15, %v2880_v62, %v2879_v57  ;;  %v711_v34 = vpop.permute.xlu1 %710  ;;  %v5860_v5 = vsel %vm607_vm1, %v7897_v25, %v681_v40  ;;  %v403_v62 = vld [vmem:[%s4972_s16 + $0x98] sm:$0xff] }
 0x1ad   : > { %v2885_v45 = vsel %vm7853_vm9, %v2883_v33, %v2882_v11  ;;  %v986_v17 = vpop.permute.xlu0 %985  ;;  %v5811_v36 = vpop.permute.xlu2 %1288  ;;  %v1574_v47 = vsel %vm416_vm0, %v4675_v6, %v711_v34  ;;  %492 = vst.msk [vmem:[#allocation2 + $0xf9] sm:$0xff] %vm416_vm0, %v403_v62  ;;  %v412_v34 = vld [vmem:[%s4972_s16 + $0xe0] sm:$0xff] }
 0x1ae   : > { %v2888_v53 = vsel %vm7852_vm3, %v2886_v43, %v2885_v45  ;;  %v1607_v15 = vsel %vm1595_vm5, %v1574_v47, %v5692_v58  ;;  %v534_v58 = vld [vmem:[#allocation2 + $0xe8] sm:$0x3]  ;;  %vm7895_vm3 = vcmask 48128   ;;  %v1958_v33 = vpop.f32.mrf.mxu0  ;;  %501 = vst.msk [vmem:[#allocation2 + $0x169] sm:$0xff] %vm416_vm0, %v412_v34  ;;  %v4676_v34 = vld [vmem:[#allocation2 + $0x98] sm:$0xff] }
 0x1af   : > { %2996 = vst.msk [vmem:[#allocation3 + $0x11] sm:$0xff] %vm2042_vm13, %v2888_v53  ;;  %v1640_v61 = vsel %vm1628_vm6, %v1607_v15, %v986_v17  ;;  %v656_v42 = vrot.slane %v534_v58, 1  ;;  %v833_v26 = vrot.slane %v534_v58, 2  ;;  %v7899_v15 = vrot.slane %v5716_v52, 2 }
 0x1b1   : > { %v5865_v37 = vsel %vm784_vm2, %v7898_v22, %v833_v26 }
 0x1b2   : > { %1095 = vrot.lane.b32.xlu1 %v5567_v50, %s7888_s24  ;;  %1294 = vrot.lane.b32.xlu2 %v5676_v10, %s4768_s22 }
 0x1b3   : > { %1196 = vrot.lane.b32.xlu0 %v5593_v31, %s7892_s12 }
 0x1b4   : > { %v1088_v14 = vpop.permute.xlu1 %1087 }
 0x1b5   : > { %v1287_v48 = vpop.permute.xlu0 %1286  ;;  %v5823_v56 = vpop.permute.xlu2 %714  ;;  %v1673_v16 = vsel %vm1661_vm7, %v1640_v61, %v1088_v14  ;;  %v5900_v14 = vsel %vm784_vm2, %v7899_v15, %v858_v19  ;;  %v2049_v61 = vsel %vm2042_vm13, %v1958_v33, 0.0 }
 0x1b6   : > { %v1706_v55 = vsel %vm1694_vm8, %v1673_v16, %v5730_v60  ;;  %v7896_v60 = vrot.slane %v5676_v10, 1 }
 0x1b7   : > { %v1739_v49 = vsel %vm7895_vm3, %v1706_v55, %v1287_v48  ;;  %v413_v48 = vld [vmem:[%s4972_s16 + $0xe8] sm:$0xff] }
 0x1b8   : > { %v5855_v32 = vsel %vm607_vm1, %v7896_v60, %v656_v42  ;;  %502 = vst.msk [vmem:[#allocation2 + $0x171] sm:$0xff] %vm416_vm0, %v413_v48 }
 0x1ba   : > { %1115 = vrot.lane.b32.xlu1 %v5829_v51, %s7888_s24  ;;  %1314 = vrot.lane.b32.xlu2 %v5716_v52, %s4768_s22 }
 0x1bb   : > { %1216 = vrot.lane.b32.xlu0 %v5835_v27, %s7892_s12 }
 0x1bc   : > { %v1389_v9 = vpop.permute.xlu1 %1388  ;;  %v5887_v17 = vpop.f32.mrf.mxu0 }
 0x1bd   : > { %v1772_v28 = vsel %vm1760_vm10, %v1739_v49, %v1389_v9  ;;  %v713_v63 = vpop.permute.xlu0 %712  ;;  %v5849_v39 = vpop.permute.xlu2 %1091 }
 0x1be   : > { %v1805_v0 = vsel %vm1793_vm11, %v1772_v28, %v5758_v46  ;;  %v402_v46 = vld [vmem:[%s4972_s16 + $0x90] sm:$0xff]  ;;  %v1575_v45 = vsel %vm416_vm0, %v5291_v12, %v713_v63 }
 0x1bf   : > { %4453 = vmatmul.msk.f32.gmra.mxu0 %vm1828_vm12, %v1805_v0  ;;  %491 = vst.msk [vmem:[#allocation2 + $0xf1] sm:$0xff] %vm416_vm0, %v402_v46 }
 0x1c2   : > { %1396 = vrot.lane.b32.xlu1 %v5855_v32, %s7889_s25  ;;  %1416 = vrot.lane.b32.xlu2 %v5860_v5, %s7889_s25 }
 0x1c3   : > { %1497 = vrot.lane.b32.xlu0 %v5865_v37, %s4773_s14 }
 0x1c4   : > { %v890_v57 = vpop.permute.xlu1 %889 }
 0x1c5   : > { %v1090_v11 = vpop.permute.xlu0 %1089  ;;  %v5877_v43 = vpop.permute.xlu2 %1392  ;;  %v1608_v53 = vsel %vm1595_vm5, %v1575_v45, %v890_v57  ;;  %v1576_v45 = vsel %vm416_vm0, %v4676_v34, %v5823_v56 }
 0x1c6   : > { %v1641_v54 = vsel %vm1628_vm6, %v1608_v53, %v5788_v24  ;;  %v5921_v28 = vld [vmem:[#allocation2 + $0xf0] sm:$0xff]  ;;  %v5923_v63 = vld [vmem:[#allocation2 + $0xf8] sm:$0xff] }
 0x1c7   : > { %v658_v57 = vrot.slane %v5921_v28, 1 }
 0x1ca   : > { %720 = vrot.lane.b32.xlu1 %v5517_v29, %s7866_s29  ;;  %740 = vrot.lane.b32.xlu2 %v5674_v7, %s7866_s29  ;;  %v1674_v29 = vsel %vm1661_vm7, %v1641_v54, %v1090_v11  ;;  %v659_v11 = vrot.slane %v5923_v63, 1 }
 0x1cb   : > { %897 = vrot.lane.b32.xlu0 %v5534_v38, %s7856_s30 }
 0x1cc   : > { %v1191_v6 = vpop.permute.xlu1 %1190 }
 0x1cd   : > { %v1391_v47 = vpop.permute.xlu0 %1390  ;;  %v5894_v12 = vpop.permute.xlu2 %893  ;;  %v1707_v23 = vsel %vm1694_vm8, %v1674_v29, %v1191_v6 }
 0x1ce   : > { %v1740_v38 = vsel %vm7895_vm3, %v1707_v23, %v5811_v36  ;;  %vm7900_vm3 = vcmask 123904  }
 0x1cf   : > { %v1773_v16 = vsel %vm1760_vm10, %v1740_v38, %v1391_v47  ;;  %vm7901_vm9 = vmmov %vm7900_vm3  ;;  %v5944_v38 = vsel %vm607_vm1, %v658_v57, %v659_v11 }
 0x1d0   : > { %vm7902_vm15 = vmmov %vm7900_vm3 }
 0x1d1   : > { %vm7903_vm14 = vmmov %vm7900_vm3 }
 0x1d2   : > { %1517 = vrot.lane.b32.xlu1 %v5900_v14, %s4773_s14  ;;  %1097 = vrot.lane.b32.xlu2 %v5706_v44, %s7888_s24 }
 0x1d3   : > { %v1964_v24 = vpop.f32.mrf.mxu0  ;;  %995 = vrot.lane.b32.xlu0 %v5683_v21, %s7887_s13 }
 0x1d4   : > { %v2050_v58 = vsel %vm2042_vm13, %v1964_v24, 0.0  ;;  %v1492_v1 = vpop.permute.xlu1 %1491 }
 0x1d5   : > { %v2051_v55 = vadd.f32 %v2050_v58, %v2049_v61  ;;  %v1806_v42 = vsel %vm1793_vm11, %v1773_v16, %v1492_v1  ;;  %v892_v40 = vpop.permute.xlu0 %891  ;;  %v5918_v49 = vpop.permute.xlu2 %913 }
 0x1d6   : > { %4454 = vmatmul.msk.f32.gmra.mxu0 %vm1828_vm12, %v1806_v42  ;;  %v404_v42 = vld [vmem:[%s4972_s16 + $0xa0] sm:$0xff] }
 0x1d7   : > { %v2113_v36 = vrot.slane %v2051_v55, 2  ;;  %v2114_v9 = vrot.slane %v2051_v55, 4  ;;  %v2115_v26 = vrot.slane %v2051_v55, 6  ;;  %v2260_v21 = vsel %vm7900_vm3, %v2051_v55, 0.0  ;;  %493 = vst.msk [vmem:[#allocation2 + $0x109] sm:$0xff] %vm416_vm0, %v404_v42 }
 0x1d8   : > { %v2261_v0 = vrot.slane %v2260_v21, 4 }
 0x1d9   : > { %v2267_v60 = vsel %vm7901_vm9, %v2113_v36, 0.0  ;;  %v2274_v25 = vsel %vm7902_vm15, %v2114_v9, 0.0  ;;  %v2281_v22 = vsel %vm7903_vm14, %v2115_v26, 0.0  ;;  %vm7904_vm9 = vcmask 48128   ;;  %vm7905_vm14 = vmmov %vm7900_vm3 }
 0x1da   : > { %v2268_v46 = vrot.slane %v2267_v60, 4  ;;  %v2275_v62 = vrot.slane %v2274_v25, 4  ;;  %v2282_v33 = vrot.slane %v2281_v22, 4  ;;  %917 = vrot.lane.b32.xlu1 %v5669_v4, %s7856_s30  ;;  %1117 = vrot.lane.b32.xlu2 %v5756_v35, %s7888_s24  ;;  %v2262_v47 = vadd.f32 %v2261_v0, %v2260_v21  ;;  %vm7906_vm15 = vmmov %vm7900_vm3  ;;  %s7908_s30 = smov 2  }
 0x1db   : > { %1015 = vrot.lane.b32.xlu0 %v5728_v13, %s7887_s13  ;;  %v1609_v13 = vsel %vm1595_vm5, %v1576_v45, %v892_v40  ;;  %v5968_v45 = vld [vmem:[#allocation2 + $0x168] sm:$0xff] }
 0x1dc   : > { %v2269_v53 = vadd.f32 %v2268_v46, %v2267_v60  ;;  %v2276_v19 = vadd.f32 %v2275_v62, %v2274_v25  ;;  %v990_v6 = vpop.permute.xlu1 %989  ;;  %v2283_v23 = vadd.f32 %v2282_v33, %v2281_v22  ;;  %v2263_v61 = vrot.slane %v2262_v47, 2  ;;  %v405_v46 = vld [vmem:[%s4972_s16 + $0xa8] sm:$0xff] }
 0x1dd   : > { %v1193_v54 = vpop.permute.xlu0 %1192  ;;  %v5938_v48 = vpop.permute.xlu2 %1194  ;;  %v1642_v56 = vsel %vm1628_vm6, %v1609_v13, %v990_v6  ;;  %494 = vst.msk [vmem:[#allocation2 + $0x111] sm:$0xff] %vm416_vm0, %v405_v46  ;;  %v835_v6 = vrot.slane %v5921_v28, 2 }
 0x1de   : > { %v2270_v29 = vrot.slane %v2269_v53, 2  ;;  %v2277_v15 = vrot.slane %v2276_v19, 2  ;;  %v2284_v58 = vrot.slane %v2283_v23, 2  ;;  %v1675_v55 = vsel %vm1661_vm7, %v1642_v56, %v5849_v39 }
 0x1df   : > { %v1708_v40 = vsel %vm1694_vm8, %v1675_v55, %v1193_v54  ;;  %v2264_v9 = vadd.f32 %v2263_v61, %v2262_v47  ;;  %v2052_v39 = vsel %vm2042_vm13, %v5887_v17, 0.0  ;;  %v836_v17 = vrot.slane %v5923_v63, 2 }
 0x1e0   : > { %v2271_v24 = vadd.f32 %v2270_v29, %v2269_v53  ;;  %v2278_v16 = vadd.f32 %v2277_v15, %v2276_v19  ;;  %v2285_v25 = vadd.f32 %v2284_v58, %v2283_v23 }
 0x1e1   : > { %v2265_v53 = vrot.slane %v2264_v9, 1 }
 0x1e2   : > { %1198 = vrot.lane.b32.xlu1 %v5700_v41, %s7892_s12  ;;  %1398 = vrot.lane.b32.xlu2 %v5944_v38, %s7889_s25  ;;  %v2272_v1 = vrot.slane %v2271_v24, 1  ;;  %v2279_v60 = vrot.slane %v2278_v16, 1  ;;  %v2286_v54 = vrot.slane %v2285_v25, 1 }
 0x1e3   : > { %1296 = vrot.lane.b32.xlu0 %v5921_v28, %s4768_s22  ;;  %v2266_v58 = vadd.f32 %v2265_v53, %v2264_v9  ;;  %v6003_v53 = vld [vmem:[#allocation2 + $0x170] sm:$0xff] }
 0x1e4   : > { %v1291_v36 = vpop.permute.xlu1 %1290  ;;  %v2273_v62 = vadd.f32 %v2272_v1, %v2271_v24  ;;  %v2280_v47 = vadd.f32 %v2279_v60, %v2278_v16  ;;  %v2287_v9 = vadd.f32 %v2286_v54, %v2285_v25 }
 0x1e5   : > { %v1741_v26 = vsel %vm7904_vm9, %v1708_v40, %v1291_v36  ;;  %v1967_v21 = vpop.f32.mrf.mxu0  ;;  %v1494_v0 = vpop.permute.xlu0 %1493  ;;  %vm7907_vm9 = vmmov %vm7900_vm3  ;;  %v3350_v36 = vld [vmem:[%s7825_s3 + $0x80] sm:$0xff] }
 0x1e6   : > { %v5959_v22 = vpop.permute.xlu2 %1214  ;;  %v2053_v33 = vsel %vm2042_vm13, %v1967_v21, 0.0  ;;  %v1774_v34 = vsel %vm1760_vm10, %v1741_v26, %v5877_v43  ;;  %v3351_v43 = vld [vmem:[%s7825_s3 + $0x88] sm:$0xff]  ;;  %v2665_v15 = vadd.f32 %v5725_v20, %v2273_v62  ;;  %v6001_v62 = vsel %vm784_vm2, %v835_v6, %v836_v17 }
 0x1e7   : > { %v2054_v57 = vadd.f32 %v2053_v33, %v2052_v39  ;;  %v1807_v19 = vsel %vm1793_vm11, %v1774_v34, %v1494_v0  ;;  %3423 = vmatpush.msra.mxu2 %v3351_v43  ;;  %v2667_v6 = vadd.f32 %v5725_v20, %v2287_v9 }
 0x1e8   : > { %4455 = vmatmul.msk.f32.gmra.mxu0 %vm1828_vm12, %v1807_v19  ;;  %v2729_v46 = vmax.f32 %v2665_v15, 0.0  ;;  %v2664_v19 = vadd.f32 %v5725_v20, %v2266_v58 }
 0x1e9   : > { %v2116_v29 = vrot.slane %v2054_v57, 2  ;;  %v2117_v23 = vrot.slane %v2054_v57, 4  ;;  %v2118_v13 = vrot.slane %v2054_v57, 6  ;;  %v2288_v24 = vsel %vm7905_vm14, %v2054_v57, 0.0  ;;  %3424 = vmatpush.msra.mxu2 %v3350_v36 }
 0x1ea   : > { %1218 = vrot.lane.b32.xlu1 %v5763_v3, %s7892_s12  ;;  %722 = vrot.lane.b32.xlu2 %v5567_v50, %s7866_s29  ;;  %v2289_v56 = vrot.slane %v2288_v24, 4  ;;  %v2666_v50 = vadd.f32 %v5725_v20, %v2280_v47  ;;  %v2889_v15 = vrot.slane %v2729_v46, 7  ;;  %v2731_v46 = vmax.f32 %v2667_v6, 0.0 }
 0x1eb   : > { %1316 = vrot.lane.b32.xlu0 %v5968_v45, %s4768_s22  ;;  %v2295_v61 = vsel %vm7906_vm15, %v2116_v29, 0.0  ;;  %v2302_v55 = vsel %vm7900_vm3, %v2117_v23, 0.0  ;;  %v2309_v42 = vsel %vm7907_vm9, %v2118_v13, 0.0  ;;  %v683_v29 = vrot.slane %v5968_v45, 1 }
 0x1ec   : > { %v5986_v16 = vpop.permute.xlu1 %716  ;;  %v2296_v1 = vrot.slane %v2295_v61, 4  ;;  %v2290_v26 = vadd.f32 %v2289_v56, %v2288_v24  ;;  %v2303_v21 = vrot.slane %v2302_v55, 4  ;;  %v2310_v0 = vrot.slane %v2309_v42, 4 }
 0x1ed   : > { %v5990_v40 = vpop.permute.xlu0 %736  ;;  %v2730_v43 = vmax.f32 %v2666_v50, 0.0  ;;  %v7861_v24 = vrot.slane %v6003_v53, 1  ;;  %vm7909_vm14 = vcmask 1041409   ;;  %vm7910_vm15 = vcmask 1042434  }
 0x1ee   : > { %v5996_v60 = vpop.permute.xlu2 %1495  ;;  %v2297_v39 = vadd.f32 %v2296_v1, %v2295_v61  ;;  %v2291_v33 = vrot.slane %v2290_v26, 2  ;;  %v2304_v57 = vadd.f32 %v2303_v21, %v2302_v55  ;;  %v2311_v34 = vadd.f32 %v2310_v0, %v2309_v42 }
 0x1ef   : > { %v2728_v55 = vmax.f32 %v2664_v19, 0.0  ;;  %v2891_v50 = vrot.slane %v2730_v43, 6  ;;  %v2893_v6 = vrot.slane %v2731_v46, 5  ;;  %vm7911_vm3 = vcmask 1044484  }
 0x1f0   : > { %v2298_v47 = vrot.slane %v2297_v39, 2  ;;  %v2292_v23 = vadd.f32 %v2291_v33, %v2290_v26  ;;  %v2305_v25 = vrot.slane %v2304_v57, 2  ;;  %v2312_v54 = vrot.slane %v2311_v34, 2 }
 0x1f1   : > { %vm7912_vm9 = vcmask 1045509  }
 0x1f2   : > { %1499 = vrot.lane.b32.xlu1 %v6001_v62, %s4773_s14  ;;  %v2299_v13 = vadd.f32 %v2298_v47, %v2297_v39  ;;  %899 = vrot.lane.b32.xlu2 %v5593_v31, %s7908_s30  ;;  %v2293_v56 = vrot.slane %v2292_v23, 1  ;;  %v2306_v61 = vadd.f32 %v2305_v25, %v2304_v57  ;;  %v2313_v58 = vadd.f32 %v2312_v54, %v2311_v34 }
 0x1f3   : > { %728 = vrot.lane.b32.xlu0 %v5944_v38, %s7866_s29  ;;  %v2890_v39 = vsel %vm7909_vm14, %v2889_v15, %v2728_v55  ;;  %v6021_v31 = vsel %vm607_vm1, %v683_v29, %v7861_v24  ;;  %v860_v29 = vrot.slane %v5968_v45, 2  ;;  %v4677_v55 = vld [vmem:[#allocation2 + $0xa8] sm:$0xff]  ;;  %vm7913_vm14 = vcmask 1046534  }
 0x1f4   : > { %v992_v1 = vpop.permute.xlu1 %991  ;;  %v2300_v42 = vrot.slane %v2299_v13, 1  ;;  %v2294_v26 = vadd.f32 %v2293_v56, %v2292_v23  ;;  %v2307_v21 = vrot.slane %v2306_v61, 1  ;;  %v2314_v0 = vrot.slane %v2313_v58, 1 }
 0x1f5   : > { %v1094_v36 = vpop.permute.xlu0 %1093  ;;  %v2892_v43 = vsel %vm7910_vm15, %v2891_v50, %v2890_v39  ;;  %vm7914_vm15 = vcmask 1047559  }
 0x1f6   : > { %v6015_v9 = vpop.permute.xlu2 %895  ;;  %v2301_v33 = vadd.f32 %v2300_v42, %v2299_v13  ;;  %v2308_v57 = vadd.f32 %v2307_v21, %v2306_v61  ;;  %v2315_v34 = vadd.f32 %v2314_v0, %v2313_v58  ;;  %v2668_v19 = vadd.f32 %v5725_v20, %v2294_v26 }
 0x1f7   : > { %v7860_v13 = vrot.slane %v6003_v53, 2  ;;  %v1577_v42 = vsel %vm416_vm0, %v4677_v55, %v5986_v16  ;;  %v2894_v26 = vsel %vm2875_vm4, %v2893_v6, %v2892_v43 }
 0x1f8   : > { %v2669_v47 = vadd.f32 %v5725_v20, %v2301_v33  ;;  %v2670_v23 = vadd.f32 %v5725_v20, %v2308_v57  ;;  %v2671_v25 = vadd.f32 %v5725_v20, %v2315_v34  ;;  %v2732_v54 = vmax.f32 %v2668_v19, 0.0 }
 0x1f9   : > { %v1610_v19 = vsel %vm1595_vm5, %v1577_v42, %v5894_v12  ;;  %v6048_v16 = vsel %vm784_vm2, %v860_v29, %v7860_v13  ;;  %v6067_v29 = vld [vmem:[#allocation2 + $0x108] sm:$0xff]  ;;  %v1587_v42 = vsel %vm416_vm0, %v5597_v30, %v5990_v40 }
 0x1fa   : > { %1418 = vrot.lane.b32.xlu1 %v6021_v31, %s7889_s25  ;;  %v2733_v15 = vmax.f32 %v2669_v47, 0.0  ;;  %742 = vrot.lane.b32.xlu2 %v5829_v51, %s7866_s29  ;;  %v2734_v56 = vmax.f32 %v2670_v23, 0.0  ;;  %v2735_v61 = vmax.f32 %v2671_v25, 0.0  ;;  %v2895_v58 = vrot.slane %v2732_v54, 4 }
 0x1fb   : > { %905 = vrot.lane.b32.xlu0 %v6001_v62, %s7908_s30  ;;  %v1643_v43 = vsel %vm1628_vm6, %v1610_v19, %v992_v1  ;;  %v1620_v30 = vsel %vm1595_vm5, %v1587_v42, %v5918_v49  ;;  %v840_v49 = vrot.slane %v6067_v29, 2 }
 0x1fc   : > { %v1012_v50 = vpop.permute.xlu1 %1011  ;;  %v2897_v21 = vrot.slane %v2733_v15, 3  ;;  %v2896_v46 = vsel %vm7911_vm3, %v2895_v58, %v2894_v26  ;;  %v2899_v39 = vrot.slane %v2734_v56, 2  ;;  %v2901_v34 = vrot.slane %v2735_v61, 1 }
 0x1fd   : > { %v1114_v0 = vpop.permute.xlu0 %1113  ;;  %v1676_v25 = vsel %vm1661_vm7, %v1643_v43, %v1094_v36  ;;  %vm7915_vm3 = vcmask 48128  }
 0x1fe   : > { %v6040_v33 = vpop.permute.xlu2 %993  ;;  %v2898_v57 = vsel %vm7912_vm9, %v2897_v21, %v2896_v46  ;;  %v1709_v12 = vsel %vm1694_vm8, %v1676_v25, %v5938_v48  ;;  %vm7917_vm9 = vmmov %vm7915_vm3  ;;  %v1970_v25 = vpop.f32.mrf.mxu0 }
 0x1ff   : > { %v2900_v47 = vsel %vm7913_vm14, %v2899_v39, %v2898_v57  ;;  %v1653_v57 = vsel %vm1628_vm6, %v1620_v30, %v1012_v50  ;;  %vm7918_vm14 = vcmask 123904  }
 0x200   : > { %v2902_v23 = vsel %vm7914_vm15, %v2901_v34, %v2900_v47  ;;  %v1686_v34 = vsel %vm1661_vm7, %v1653_v57, %v1114_v0  ;;  %vm7919_vm15 = vmmov %vm7918_vm14 }
 0x201   : > { %2997 = vst.msk [vmem:[#allocation3 + $0x21] sm:$0xff] %vm2042_vm13, %v2902_v23  ;;  %v1719_v19 = vsel %vm1694_vm8, %v1686_v34, %v5959_v22 }
 0x202   : > { %1519 = vrot.lane.b32.xlu1 %v6048_v16, %s4773_s14  ;;  %919 = vrot.lane.b32.xlu2 %v5835_v27, %s7908_s30  ;;  %v6177_v27 = vld [vmem:[#allocation2 + $0x128] sm:$0xff] }
 0x203   : > { %997 = vrot.lane.b32.xlu0 %v5676_v10, %s7887_s13  ;;  %v6072_v10 = vld [vmem:[#allocation2 + $0x110] sm:$0xff] }
 0x204   : > { %v1293_v54 = vpop.permute.xlu1 %1292  ;;  %v7859_v26 = vrot.slane %v6072_v10, 1  ;;  %v7858_v50 = vrot.slane %v6072_v10, 2 }
 0x205   : > { %v1742_v1 = vsel %vm7915_vm3, %v1709_v12, %v1293_v54  ;;  %v1395_v6 = vpop.permute.xlu0 %1394  ;;  %vm7920_vm3 = vmmov %vm7918_vm14 }
 0x206   : > { %v1775_v36 = vsel %vm1760_vm10, %v1742_v1, %v1395_v6  ;;  %v6065_v15 = vpop.permute.xlu2 %1013  ;;  %v6125_v54 = vsel %vm784_vm2, %v840_v49, %v7858_v50  ;;  %v537_v1 = vld [vmem:[#allocation2 + $0x100] sm:$0x3] }
 0x207   : > { %v1808_v56 = vsel %vm1793_vm11, %v1775_v36, %v5996_v60  ;;  %v663_v60 = vrot.slane %v6067_v29, 1  ;;  %v661_v36 = vrot.slane %v537_v1, 1  ;;  %v838_v30 = vrot.slane %v537_v1, 2  ;;  %v4679_v1 = vld [vmem:[#allocation2 + $0xb0] sm:$0xff] }
 0x208   : > { %4456 = vmatmul.msk.f32.gmra.mxu0 %vm1828_vm12, %v1808_v56  ;;  %v6074_v61 = vld [vmem:[#allocation3 + $0x20] sm:$0xff]  ;;  %v6076_v48 = vld [vmem:[#allocation3 + $0x28] sm:$0x3] }
 0x209   : > { %v3094_v58 = vrot.slane %v6074_v61, 2  ;;  %v3095_v55 = vrot.slane %v6076_v48, 2  ;;  %v6141_v42 = vsel %vm607_vm1, %v659_v11, %v661_v36  ;;  %v2055_v11 = vsel %vm2042_vm13, %v1970_v25, 0.0 }
 0x20a   : > { %1003 = vrot.lane.b32.xlu1 %v6067_v29, %s7887_s13  ;;  %1017 = vrot.lane.b32.xlu2 %v5716_v52, %s7887_s13  ;;  %v6104_v52 = vsel %vm607_vm1, %v663_v60, %v7859_v26  ;;  %v6143_v60 = vld [vmem:[#allocation2 + $0x120] sm:$0xff] }
 0x20b   : > { %1099 = vrot.lane.b32.xlu0 %v5855_v32, %s7888_s24  ;;  %v6092_v46 = vsel %vm784_vm2, %v3094_v58, %v3095_v55 }
 0x20c   : > { %v1313_v21 = vpop.permute.xlu1 %1312  ;;  %7916 = vst [vmem:[#allocation13_spill] sm:$0xff] %v6092_v46  ;;  %4474 = vmatmul.msk.f32.vlgmr.msra.gmra.mxu2 %vm2042_vm13, %v6092_v46 }
 0x20d   : > { %v719_v39 = vpop.permute.xlu0 %718  ;;  %v1752_v47 = vsel %vm7917_vm9, %v1719_v19, %v1313_v21  ;;  %vm7921_vm9 = vmmov %vm7920_vm3 }
 0x20e   : > { %v6098_v40 = vpop.permute.xlu2 %1294  ;;  %v1578_v36 = vsel %vm416_vm0, %v4679_v1, %v719_v39 }
 0x20f   : > { %v1611_v39 = vsel %vm1595_vm5, %v1578_v36, %v6015_v9 }
 0x212   : > { %1105 = vrot.lane.b32.xlu1 %v6104_v52, %s7888_s24  ;;  %1119 = vrot.lane.b32.xlu2 %v5860_v5, %s7888_s24 }
 0x213   : > { %1200 = vrot.lane.b32.xlu0 %v5865_v37, %s7892_s12  ;;  %v6134_v58 = vpop.f32.mrf.mxu0 }
 0x214   : > { %v1415_v43 = vpop.permute.xlu1 %1414 }
 0x215   : > { %v1785_v0 = vsel %vm1760_vm10, %v1752_v47, %v1415_v43  ;;  %v1516_v23 = vpop.permute.xlu0 %1515  ;;  %v6158_v43 = vsel %vm784_vm2, %v836_v17, %v838_v30 }
 0x216   : > { %v1818_v12 = vsel %vm1793_vm11, %v1785_v0, %v1516_v23  ;;  %v6120_v22 = vpop.permute.xlu2 %1314 }
 0x217   : > { %4466 = vmatmul.msk.f32.vlgmr.msra.gmra.mxu3 %vm1828_vm12, %v1818_v12 }
 0x21a   : > { %1206 = vrot.lane.b32.xlu1 %v6125_v54, %s7892_s12  ;;  %1220 = vrot.lane.b32.xlu2 %v5900_v14, %s7892_s12 }
 0x21b   : > { %1298 = vrot.lane.b32.xlu0 %v5923_v63, %s4768_s22 }
 0x21c   : > { %v739_v6 = vpop.permute.xlu1 %738 }
 0x21d   : > { %v916_v56 = vpop.permute.xlu0 %915 }
 0x21e   : > { %v6136_v55 = vpop.permute.xlu2 %1416 }
 0x222   : > { %1304 = vrot.lane.b32.xlu1 %v6143_v60, %s4768_s22  ;;  %1318 = vrot.lane.b32.xlu2 %v6003_v53, %s4768_s22 }
 0x223   : > { %1400 = vrot.lane.b32.xlu0 %v6141_v42, %s7889_s25 }
 0x224   : > { %v1096_v21 = vpop.permute.xlu1 %1095 }
 0x225   : > { %v1197_v57 = vpop.permute.xlu0 %1196 }
 0x226   : > { %v1976_v34 = vpop.f32.mrf.mxu0  ;;  %v6151_v19 = vpop.permute.xlu2 %740 }
 0x227   : > { %v2056_v49 = vsel %vm2042_vm13, %v1976_v34, 0.0 }
 0x228   : > { %v2057_v47 = vadd.f32 %v2056_v49, %v2055_v11 }
 0x22a   : > { %v2119_v0 = vrot.slane %v2057_v47, 2  ;;  %v2120_v23 = vrot.slane %v2057_v47, 4  ;;  %v2121_v12 = vrot.slane %v2057_v47, 6  ;;  %1406 = vrot.lane.b32.xlu1 %v5629_v8, %s7889_s25  ;;  %724 = vrot.lane.b32.xlu2 %v5706_v44, %s7866_s29  ;;  %v2316_v25 = vsel %vm7918_vm14, %v2057_v47, 0.0  ;;  %v552_v47 = vld [vmem:[#allocation2 + $0x178] sm:$0x3] }
 0x22b   : > { %1501 = vrot.lane.b32.xlu0 %v6158_v43, %s4773_s14  ;;  %v2317_v13 = vrot.slane %v2316_v25, 4  ;;  %v686_v9 = vrot.slane %v552_v47, 1  ;;  %vm7922_vm14 = vcmask 48128  }
 0x22c   : > { %v2323_v17 = vsel %vm7919_vm15, %v2119_v0, 0.0  ;;  %v2330_v30 = vsel %vm7920_vm3, %v2120_v23, 0.0  ;;  %v2337_v34 = vsel %vm7921_vm9, %v2121_v12, 0.0  ;;  %v1116_v11 = vpop.permute.xlu1 %1115  ;;  %v1644_v0 = vsel %vm1628_vm6, %v1611_v39, %v6040_v33  ;;  %vm7924_vm15 = vmmov %vm7922_vm14 }
 0x22d   : > { %v2324_v49 = vrot.slane %v2323_v17, 4  ;;  %v2331_v50 = vrot.slane %v2330_v30, 4  ;;  %v1217_v26 = vpop.permute.xlu0 %1216  ;;  %v2338_v46 = vrot.slane %v2337_v34, 4  ;;  %v1588_v12 = vsel %vm416_vm0, %v6177_v27, %v739_v6  ;;  %vm7926_vm9 = vmmov %vm7920_vm3 }
 0x22e   : > { %v6173_v1 = vpop.permute.xlu2 %1097  ;;  %v1677_v51 = vsel %vm1661_vm7, %v1644_v0, %v1096_v21  ;;  %v2318_v36 = vadd.f32 %v2317_v13, %v2316_v25  ;;  %v1621_v21 = vsel %vm1595_vm5, %v1588_v12, %v916_v56  ;;  %v7923_v13 = vrot.slane %v6003_v53, 1 }
 0x22f   : > { %v2325_v24 = vadd.f32 %v2324_v49, %v2323_v17  ;;  %v2332_v44 = vadd.f32 %v2331_v50, %v2330_v30  ;;  %v2339_v50 = vadd.f32 %v2338_v46, %v2337_v34  ;;  %v1710_v30 = vsel %vm1694_vm8, %v1677_v51, %v1197_v57 }
 0x230   : > { %v1743_v39 = vsel %vm7922_vm14, %v1710_v30, %v6098_v40  ;;  %v6195_v46 = vsel %vm607_vm1, %v7923_v13, %v686_v9  ;;  %v2319_v57 = vrot.slane %v2318_v36, 2  ;;  %v1654_v56 = vsel %vm1628_vm6, %v1621_v21, %v6065_v15  ;;  %vm7927_vm14 = vmmov %vm7920_vm3 }
 0x231   : > { %v2326_v23 = vrot.slane %v2325_v24, 2  ;;  %v2333_v17 = vrot.slane %v2332_v44, 2  ;;  %v2340_v34 = vrot.slane %v2339_v50, 2  ;;  %v1687_v40 = vsel %vm1661_vm7, %v1654_v56, %v1116_v11 }
 0x232   : > { %1507 = vrot.lane.b32.xlu1 %v5623_v18, %s4773_s14  ;;  %901 = vrot.lane.b32.xlu2 %v5700_v41, %s7908_s30  ;;  %v2320_v12 = vadd.f32 %v2319_v57, %v2318_v36  ;;  %v2058_v11 = vsel %vm2042_vm13, %v6134_v58, 0.0 }
 0x233   : > { %730 = vrot.lane.b32.xlu0 %v6141_v42, %s7866_s29  ;;  %v2327_v33 = vadd.f32 %v2326_v23, %v2325_v24  ;;  %v2334_v25 = vadd.f32 %v2333_v17, %v2332_v44  ;;  %v863_v23 = vrot.slane %v552_v47, 2  ;;  %v2341_v44 = vadd.f32 %v2340_v34, %v2339_v50 }
 0x234   : > { %v1397_v49 = vpop.permute.xlu1 %1396  ;;  %v1720_v17 = vsel %vm1694_vm8, %v1687_v40, %v1217_v26  ;;  %v2321_v21 = vrot.slane %v2320_v12, 1 }
 0x235   : > { %v1498_v6 = vpop.permute.xlu0 %1497  ;;  %v1776_v41 = vsel %vm1760_vm10, %v1743_v39, %v1397_v49  ;;  %v2328_v24 = vrot.slane %v2327_v33, 1  ;;  %v2335_v9 = vrot.slane %v2334_v25, 1  ;;  %v1753_v26 = vsel %vm7924_vm15, %v1720_v17, %v6120_v22  ;;  %vm7928_vm15 = vmmov %vm7920_vm3 }
 0x236   : > { %v6197_v51 = vpop.permute.xlu2 %1117  ;;  %v1809_v0 = vsel %vm1793_vm11, %v1776_v41, %v1498_v6  ;;  %v1786_v22 = vsel %vm1760_vm10, %v1753_v26, %v6136_v55  ;;  %v414_v55 = vld [vmem:[%s4972_s16 + $0xf0] sm:$0xff] }
 0x237   : > { %4457 = vmatmul.msk.f32.gmra.mxu0 %vm1828_vm12, %v1809_v0  ;;  %v2329_v15 = vadd.f32 %v2328_v24, %v2327_v33  ;;  %v2336_v39 = vadd.f32 %v2335_v9, %v2334_v25  ;;  %v7925_v33 = vrot.slane %v6003_v53, 2  ;;  %503 = vst.msk [vmem:[#allocation2 + $0x181] sm:$0xff] %vm416_vm0, %v414_v55 }
 0x239   : > { %v6226_v13 = vsel %vm784_vm2, %v7925_v33, %v863_v23  ;;  %v2673_v58 = vadd.f32 %v5725_v20, %v2329_v15  ;;  %v2322_v20 = vadd.f32 %v2321_v21, %v2320_v12 }
 0x23a   : > { %1420 = vrot.lane.b32.xlu1 %v6195_v46, %s7889_s25  ;;  %744 = vrot.lane.b32.xlu2 %v5756_v35, %s7866_s29  ;;  %v2342_v35 = vrot.slane %v2341_v44, 1  ;;  %s7938_s29 = smov 1  }
 0x23b   : > { %907 = vrot.lane.b32.xlu0 %v6158_v43, %s7908_s30 }
 0x23c   : > { %v1979_v30 = vpop.f32.mrf.mxu0  ;;  %v6212_v49 = vpop.permute.xlu1 %720  ;;  %v2343_v15 = vadd.f32 %v2342_v35, %v2341_v44 }
 0x23d   : > { %v2059_v47 = vsel %vm2042_vm13, %v1979_v30, 0.0  ;;  %v6217_v36 = vpop.permute.xlu0 %897  ;;  %v6245_v30 = vld [vmem:[%s7824_s2] ss:$0 sm:$0xff] }
 0x23e   : > { %v2060_v50 = vadd.f32 %v2059_v47, %v2058_v11  ;;  %v6221_v6 = vpop.permute.xlu2 %1398  ;;  %v2674_v11 = vadd.f32 %v6245_v30, %v2336_v39  ;;  %v2737_v47 = vmax.f32 %v2673_v58, 0.0  ;;  %v2672_v39 = vadd.f32 %v6245_v30, %v2322_v20 }
 0x240   : > { %v2122_v57 = vrot.slane %v2060_v50, 2  ;;  %v2123_v34 = vrot.slane %v2060_v50, 4  ;;  %v2124_v41 = vrot.slane %v2060_v50, 6  ;;  %v2344_v24 = vsel %vm7920_vm3, %v2060_v50, 0.0 }
 0x241   : > { %v2345_v0 = vrot.slane %v2344_v24, 4  ;;  %vm7929_vm3 = vcmask 1041409  }
 0x242   : > { %v2351_v25 = vsel %vm7926_vm9, %v2122_v57, 0.0  ;;  %v2358_v56 = vsel %vm7927_vm14, %v2123_v34, 0.0  ;;  %v2365_v40 = vsel %vm7928_vm15, %v2124_v41, 0.0  ;;  %1521 = vrot.lane.b32.xlu1 %v6226_v13, %s4773_s14  ;;  %921 = vrot.lane.b32.xlu2 %v5763_v3, %s7908_s30  ;;  %vm7931_vm9 = vcmask 1042434  }
 0x243   : > { %v2352_v23 = vrot.slane %v2351_v25, 4  ;;  %v2359_v9 = vrot.slane %v2358_v56, 4  ;;  %v2366_v17 = vrot.slane %v2365_v40, 4  ;;  %999 = vrot.lane.b32.xlu0 %v5921_v28, %s7887_s13  ;;  %v2346_v12 = vadd.f32 %v2345_v0, %v2344_v24  ;;  %v540_v24 = vld [vmem:[#allocation2 + $0x118] sm:$0x3] }
 0x244   : > { %v1518_v26 = vpop.permute.xlu1 %1517  ;;  %v2675_v0 = vadd.f32 %v6245_v30, %v2343_v15  ;;  %v666_v20 = vrot.slane %v540_v24, 1  ;;  %vm7932_vm14 = vcmask 1044484   ;;  %vm7933_vm15 = vcmask 1045509  }
 0x245   : > { %v2353_v50 = vadd.f32 %v2352_v23, %v2351_v25  ;;  %v2360_v21 = vadd.f32 %v2359_v9, %v2358_v56  ;;  %v2367_v33 = vadd.f32 %v2366_v17, %v2365_v40  ;;  %v1819_v3 = vsel %vm1793_vm11, %v1786_v22, %v1518_v26  ;;  %v6250_v57 = vpop.permute.xlu0 %995  ;;  %v415_v40 = vld [vmem:[%s4972_s16 + $0xf8] sm:$0xff]  ;;  %s7876_s16 = smov 32  }
 0x246   : > { %v2347_v44 = vrot.slane %v2346_v12, 2  ;;  %4467 = vmatmul.msk.f32.gmra.mxu3 %vm1828_vm12, %v1819_v3  ;;  %v6253_v35 = vpop.permute.xlu2 %722  ;;  %v2738_v25 = vmax.f32 %v2674_v11, 0.0  ;;  %v2903_v23 = vrot.slane %v2737_v47, 7  ;;  %504 = vst.msk [vmem:[#allocation2 + $0x189] sm:$0xff] %vm416_vm0, %v415_v40  ;;  %v2736_v26 = vmax.f32 %v2672_v39, 0.0 }
 0x247   : > { %v2354_v58 = vrot.slane %v2353_v50, 2  ;;  %v2361_v34 = vrot.slane %v2360_v21, 2  ;;  %v2368_v41 = vrot.slane %v2367_v33, 2  ;;  %v2739_v15 = vmax.f32 %v2675_v0, 0.0 }
 0x248   : > { %v2348_v56 = vadd.f32 %v2347_v44, %v2346_v12  ;;  %v2905_v11 = vrot.slane %v2738_v25, 6  ;;  %v7930_v0 = vrot.slane %v6072_v10, 1 }
 0x249   : > { %v2355_v22 = vadd.f32 %v2354_v58, %v2353_v50  ;;  %v2362_v9 = vadd.f32 %v2361_v34, %v2360_v21  ;;  %v2369_v17 = vadd.f32 %v2368_v41, %v2367_v33  ;;  %v2904_v50 = vsel %vm7929_vm3, %v2903_v23, %v2736_v26 }
 0x24a   : > { %v2349_v55 = vrot.slane %v2348_v56, 1  ;;  %1005 = vrot.lane.b32.xlu1 %v6072_v10, %s7887_s13  ;;  %1019 = vrot.lane.b32.xlu2 %v5968_v45, %s7887_s13  ;;  %v6279_v25 = vsel %vm607_vm1, %v7930_v0, %v666_v20  ;;  %v843_v20 = vrot.slane %v540_v24, 2  ;;  %vm7934_vm3 = vcmask 1046534   ;;  %v4682_v24 = vld [vmem:[#allocation2 + $0xc0] sm:$0xff] }
 0x24b   : > { %v2356_v3 = vrot.slane %v2355_v22, 1  ;;  %v2363_v4 = vrot.slane %v2362_v9, 1  ;;  %v2370_v7 = vrot.slane %v2369_v17, 1  ;;  %1101 = vrot.lane.b32.xlu0 %v5944_v38, %s7888_s24 }
 0x24c   : > { %v2350_v47 = vadd.f32 %v2349_v55, %v2348_v56  ;;  %v6265_v12 = vpop.permute.xlu1 %917  ;;  %v2907_v56 = vrot.slane %v2739_v15, 5 }
 0x24d   : > { %v2357_v21 = vadd.f32 %v2356_v3, %v2355_v22  ;;  %v2364_v33 = vadd.f32 %v2363_v4, %v2362_v9  ;;  %v2371_v44 = vadd.f32 %v2370_v7, %v2369_v17  ;;  %v6268_v39 = vpop.permute.xlu0 %1015  ;;  %v2906_v4 = vsel %vm7931_vm9, %v2905_v11, %v2904_v50 }
 0x24e   : > { %v2676_v58 = vadd.f32 %v6245_v30, %v2350_v47  ;;  %v6271_v34 = vpop.permute.xlu2 %899  ;;  %v2908_v17 = vsel %vm2875_vm4, %v2907_v56, %v2906_v4  ;;  %vm7935_vm9 = vcmask 1047559  }
 0x24f   : > { %v2677_v38 = vadd.f32 %v6245_v30, %v2357_v21  ;;  %v2678_v45 = vadd.f32 %v6245_v30, %v2364_v33  ;;  %v2679_v41 = vadd.f32 %v6245_v30, %v2371_v44 }
 0x250   : > { %v2740_v7 = vmax.f32 %v2676_v58, 0.0  ;;  %v7936_v58 = vrot.slane %v6072_v10, 2 }
 0x251   : > { %v2741_v40 = vmax.f32 %v2677_v38, 0.0  ;;  %v2742_v23 = vmax.f32 %v2678_v45, 0.0  ;;  %v2743_v22 = vmax.f32 %v2679_v41, 0.0  ;;  %v1579_v38 = vsel %vm416_vm0, %v4682_v24, %v6212_v49 }
 0x252   : > { %v2909_v9 = vrot.slane %v2740_v7, 4  ;;  %1107 = vrot.lane.b32.xlu1 %v6279_v25, %s7888_s24  ;;  %1121 = vrot.lane.b32.xlu2 %v6021_v31, %s7888_s24  ;;  %v1612_v45 = vsel %vm1595_vm5, %v1579_v38, %v6217_v36  ;;  %v3047_v49 = vrot.slane %v6076_v48, 1 }
 0x253   : > { %v2911_v55 = vrot.slane %v2741_v40, 3  ;;  %v2913_v26 = vrot.slane %v2742_v23, 2  ;;  %1202 = vrot.lane.b32.xlu0 %v6001_v62, %s7892_s12  ;;  %v2915_v47 = vrot.slane %v2743_v22, 1  ;;  %v6298_v62 = vsel %vm784_vm2, %v7936_v58, %v843_v20 }
 0x254   : > { %v2910_v3 = vsel %vm7932_vm14, %v2909_v9, %v2908_v17  ;;  %v1199_v15 = vpop.permute.xlu1 %1198  ;;  %v1645_v41 = vsel %vm1628_vm6, %v1612_v45, %v6250_v57  ;;  %vm7937_vm14 = vcmask 48128  }
 0x255   : > { %v2912_v11 = vsel %vm7933_vm15, %v2911_v55, %v2910_v3  ;;  %v1297_v50 = vpop.permute.xlu0 %1296  ;;  %v1678_v56 = vsel %vm1661_vm7, %v1645_v41, %v6173_v1  ;;  %v6324_v55 = vld [vmem:[#allocation2 + $0x180] sm:$0xff]  ;;  %v6375_v41 = vld [vmem:[#allocation2 + $0x188] sm:$0xff]  ;;  %vm7939_vm15 = vmmov %vm7937_vm14 }
 0x256   : > { %v2914_v21 = vsel %vm7934_vm3, %v2913_v26, %v2912_v11  ;;  %v6292_v33 = vpop.permute.xlu2 %742  ;;  %v1711_v23 = vsel %vm1694_vm8, %v1678_v56, %v1199_v15  ;;  %vm7940_vm3 = vmmov %vm7937_vm14 }
 0x257   : > { %v2916_v44 = vsel %vm7935_vm9, %v2915_v47, %v2914_v21  ;;  %v1744_v17 = vsel %vm7937_vm14, %v1711_v23, %v1297_v50  ;;  %vm7941_vm9 = vcmask 123904  }
 0x258   : > { %2998 = vst.msk [vmem:[#allocation3 + $0x31] sm:$0xff] %vm2042_vm13, %v2916_v44  ;;  %v1777_v3 = vsel %vm1760_vm10, %v1744_v17, %v6221_v6  ;;  %v6360_v6 = vld [vmem:[#allocation2 + $0x138] sm:$0xff]  ;;  %vm7942_vm14 = vmmov %vm7941_vm9 }
 0x259   : > { %v1589_v21 = vsel %vm416_vm0, %v6360_v6, %v6151_v19 }
 0x25a   : > { %1208 = vrot.lane.b32.xlu1 %v6298_v62, %s7892_s12  ;;  %1222 = vrot.lane.b32.xlu2 %v6048_v16, %s7892_s12  ;;  %v1622_v58 = vsel %vm1595_vm5, %v1589_v21, %v6265_v12  ;;  %v1060_v12 = vrot.slane %v6324_v55, 1 }
 0x25b   : > { %1300 = vrot.lane.b32.xlu0 %v6067_v29, %s4768_s22  ;;  %v3046_v29 = vrot.slane %v6074_v61, 1  ;;  %v1655_v38 = vsel %vm1628_vm6, %v1622_v58, %v6268_v39  ;;  %v1061_v39 = vrot.slane %v6375_v41, 1 }
 0x25c   : > { %v1219_v0 = vpop.permute.xlu1 %1218 }
 0x25d   : > { %v1317_v4 = vpop.permute.xlu0 %1316  ;;  %v6337_v61 = vsel %vm607_vm1, %v3046_v29, %v3047_v49  ;;  %v1688_v49 = vsel %vm1661_vm7, %v1655_v38, %v6197_v51 }
 0x25e   : > { %v6313_v7 = vpop.permute.xlu2 %919  ;;  %v1721_v19 = vsel %vm1694_vm8, %v1688_v49, %v1219_v0 }
 0x25f   : > { %v6318_v40 = vld [vmem:[#allocation3 + $0x30] sm:$0xff]  ;;  %v3011_v36 = vld [vmem:[#allocation3 + $0x38] sm:$0x3] }
 0x260   : > { %v3050_v22 = vrot.slane %v3011_v36, 1  ;;  %v3097_v9 = vrot.slane %v6318_v40, 2  ;;  %v3098_v57 = vrot.slane %v3011_v36, 2  ;;  %v3049_v48 = vrot.slane %v6318_v40, 1 }
 0x262   : > { %1306 = vrot.lane.b32.xlu1 %v6177_v27, %s4768_s22  ;;  %v6330_v1 = vsel %vm784_vm2, %v3097_v9, %v3098_v57  ;;  %v6340_v26 = vsel %vm607_vm1, %v3049_v48, %v3050_v22  ;;  %1320 = vrot.lane.b32.xlu2 %v6324_v55, %s4768_s22  ;;  %v1982_v57 = vpop.f32.mrf.mxu0 }
 0x263   : > { %4475 = vmatmul.msk.f32.gmra.mxu2 %vm2042_vm13, %v6330_v1  ;;  %1402 = vrot.lane.b32.xlu0 %v6104_v52, %s7889_s25  ;;  %v6348_v15 = vpack.i.bf16 %v6340_v26, %v6337_v61 }
 0x264   : > { %v1500_v20 = vpop.permute.xlu1 %1499 }
 0x265   : > { %v1810_v11 = vsel %vm1793_vm11, %v1777_v3, %v1500_v20  ;;  %v6351_v47 = vpop.permute.xlu0 %728 }
 0x266   : > { %4458 = vmatmul.msk.f32.gmra.mxu0 %vm1828_vm12, %v1810_v11  ;;  %v6354_v50 = vpop.permute.xlu2 %1017 }
 0x26a   : > { %1408 = vrot.lane.b32.xlu1 %v5783_v2, %s7889_s25  ;;  %726 = vrot.lane.b32.xlu2 %v5855_v32, %s7938_s29  ;;  %v1754_v32 = vsel %vm7939_vm15, %v1721_v19, %v1317_v4  ;;  %v6397_v4 = vsel %vm607_vm1, %v1060_v12, %v1061_v39  ;;  %v6422_v20 = vpop.f32.mrf.mxu0  ;;  %vm7943_vm15 = vmmov %vm7941_vm9 }
 0x26b   : > { %1503 = vrot.lane.b32.xlu0 %v6125_v54, %s4773_s14 }
 0x26c   : > { %v1419_v44 = vpop.permute.xlu1 %1418 }
 0x26d   : > { %v6369_v24 = vpop.permute.xlu0 %905  ;;  %v1787_v56 = vsel %vm1760_vm10, %v1754_v32, %v1419_v44 }
 0x26e   : > { %v6373_v45 = vpop.permute.xlu2 %1119 }
 0x272   : > { %1509 = vrot.lane.b32.xlu1 %v5793_v59, %s4773_s14  ;;  %903 = vrot.lane.b32.xlu2 %v5865_v37, %s7908_s30  ;;  %v1162_v37 = vrot.slane %v6375_v41, 2 }
 0x273   : > { %732 = vrot.lane.b32.xlu0 %v6104_v52, %s7938_s29  ;;  %v1161_v52 = vrot.slane %v6324_v55, 2 }
 0x274   : > { %v1520_v36 = vpop.permute.xlu1 %1519 }
 0x275   : > { %v1820_v51 = vsel %vm1793_vm11, %v1787_v56, %v1520_v36  ;;  %v998_v0 = vpop.permute.xlu0 %997  ;;  %v6412_v17 = vsel %vm784_vm2, %v1161_v52, %v1162_v37 }
 0x276   : > { %4468 = vmatmul.msk.f32.gmra.mxu3 %vm1828_vm12, %v1820_v51  ;;  %v6392_v29 = vpop.permute.xlu2 %1220 }
 0x27a   : > { %1422 = vrot.lane.b32.xlu1 %v6397_v4, %s7889_s25  ;;  %746 = vrot.lane.b32.xlu2 %v5860_v5, %s7938_s29 }
 0x27b   : > { %909 = vrot.lane.b32.xlu0 %v6125_v54, %s7908_s30 }
 0x27c   : > { %v1004_v23 = vpop.permute.xlu1 %1003 }
 0x27d   : > { %v1100_v22 = vpop.permute.xlu0 %1099 }
 0x27e   : > { %v6407_v9 = vpop.permute.xlu2 %1318 }
 0x282   : > { %1523 = vrot.lane.b32.xlu1 %v6412_v17, %s4773_s14  ;;  %923 = vrot.lane.b32.xlu2 %v5900_v14, %s7908_s30 }
 0x283   : > { %1001 = vrot.lane.b32.xlu0 %v5923_v63, %s7887_s13 }
 0x284   : > { %v1106_v54 = vpop.permute.xlu1 %1105 }
 0x285   : > { %v1201_v5 = vpop.permute.xlu0 %1200  ;;  %v1988_v21 = vpop.f32.mrf.mxu0 }
 0x286   : > { %v6420_v48 = vpop.permute.xlu2 %724  ;;  %v2062_v14 = vsel %vm2042_vm13, %v1988_v21, 0.0 }
 0x28a   : > { %1007 = vrot.lane.b32.xlu1 %v6143_v60, %s7887_s13  ;;  %1021 = vrot.lane.b32.xlu2 %v6003_v53, %s7887_s13  ;;  %v2061_v60 = vsel %vm2042_vm13, %v1982_v57, 0.0 }
 0x28b   : > { %1103 = vrot.lane.b32.xlu0 %v6141_v42, %s7888_s24  ;;  %v4684_v42 = vld [vmem:[#allocation2 + $0xc8] sm:$0xff]  ;;  %v2063_v58 = vadd.f32 %v2062_v14, %v2061_v60 }
 0x28c   : > { %v1207_v3 = vpop.permute.xlu1 %1206  ;;  %v1580_v53 = vsel %vm416_vm0, %v4684_v42, %v6253_v35 }
 0x28d   : > { %v1299_v63 = vpop.permute.xlu0 %1298  ;;  %v2126_v35 = vrot.slane %v2063_v58, 4  ;;  %v2127_v14 = vrot.slane %v2063_v58, 6  ;;  %v2372_v60 = vsel %vm7943_vm15, %v2063_v58, 0.0  ;;  %vm7947_vm15 = vmmov %vm7941_vm9 }
 0x28e   : > { %v6430_v11 = vpop.permute.xlu2 %901 }
 0x292   : > { %1109 = vrot.lane.b32.xlu1 %v5629_v8, %s7888_s24  ;;  %1123 = vrot.lane.b32.xlu2 %v6195_v46, %s7888_s24  ;;  %v1613_v8 = vsel %vm1595_vm5, %v1580_v53, %v6271_v34 }
 0x293   : > { %1204 = vrot.lane.b32.xlu0 %v6158_v43, %s7892_s12  ;;  %v1646_v19 = vsel %vm1628_vm6, %v1613_v8, %v998_v0  ;;  %v2125_v43 = vrot.slane %v2063_v58, 2 }
 0x294   : > { %v1305_v44 = vpop.permute.xlu1 %1304  ;;  %v1679_v32 = vsel %vm1661_vm7, %v1646_v19, %v1100_v22 }
 0x295   : > { %v1401_v38 = vpop.permute.xlu0 %1400  ;;  %v1712_v12 = vsel %vm1694_vm8, %v1679_v32, %v1201_v5  ;;  %v2379_v34 = vsel %vm7941_vm9, %v2125_v43, 0.0 }
 0x296   : > { %v6442_v49 = vpop.permute.xlu2 %744  ;;  %v1745_v56 = vsel %vm7940_vm3, %v1712_v12, %v1299_v63  ;;  %v2380_v5 = vrot.slane %v2379_v34, 4  ;;  %v2386_v63 = vsel %vm7942_vm14, %v2126_v35, 0.0  ;;  %vm7946_vm14 = vmmov %vm7940_vm3 }
 0x297   : > { %v1778_v51 = vsel %vm1760_vm10, %v1745_v56, %v1401_v38  ;;  %v6483_v38 = vld [vmem:[#allocation2 + $0x140] sm:$0xff]  ;;  %v555_v56 = vld [vmem:[#allocation2 + $0x190] sm:$0x3] }
 0x29a   : > { %1210 = vrot.lane.b32.xlu1 %v5623_v18, %s7892_s12  ;;  %1224 = vrot.lane.b32.xlu2 %v6226_v13, %s7892_s12  ;;  %v1583_v18 = vsel %vm416_vm0, %v5921_v28, %v6351_v47  ;;  %v2387_v47 = vrot.slane %v2386_v63, 4 }
 0x29b   : > { %1302 = vrot.lane.b32.xlu0 %v6072_v10, %s4768_s22  ;;  %v1616_v10 = vsel %vm1595_vm5, %v1583_v18, %v6369_v24  ;;  %v1063_v18 = vrot.slane %v555_v56, 1 }
 0x29c   : > { %v1407_v36 = vpop.permute.xlu1 %1406  ;;  %v1649_v57 = vsel %vm1628_vm6, %v1616_v10, %v1004_v23  ;;  %v2381_v23 = vadd.f32 %v2380_v5, %v2379_v34  ;;  %v2388_v19 = vadd.f32 %v2387_v47, %v2386_v63 }
 0x29d   : > { %v1502_v0 = vpop.permute.xlu0 %1501  ;;  %v1682_v21 = vsel %vm1661_vm7, %v1649_v57, %v1106_v54  ;;  %v2373_v54 = vrot.slane %v2372_v60, 4  ;;  %v1164_v57 = vrot.slane %v555_v56, 2 }
 0x29e   : > { %v1811_v52 = vsel %vm1793_vm11, %v1778_v51, %v1502_v0  ;;  %v6462_v22 = vpop.permute.xlu2 %921  ;;  %v1715_v28 = vsel %vm1694_vm8, %v1682_v21, %v1207_v3  ;;  %v2382_v43 = vrot.slane %v2381_v23, 2  ;;  %v2389_v34 = vrot.slane %v2388_v19, 2 }
 0x29f   : > { %4459 = vmatmul.msk.f32.gmra.mxu0 %vm1828_vm12, %v1811_v52  ;;  %v1748_v24 = vsel %vm7940_vm3, %v1715_v28, %v1305_v44  ;;  %v2393_v44 = vsel %vm7941_vm9, %v2127_v14, 0.0  ;;  %v2374_v12 = vadd.f32 %v2373_v54, %v2372_v60  ;;  %v6516_v28 = vsel %vm784_vm2, %v1162_v37, %v1164_v57  ;;  %vm7948_vm3 = vmmov %vm7941_vm9 }
 0x2a0   : > { %v1781_v42 = vsel %vm1760_vm10, %v1748_v24, %v1407_v36  ;;  %v2394_v35 = vrot.slane %v2393_v44, 4  ;;  %v7944_v36 = vld [vmem:[#allocation10_spill] sm:$0xff]  ;;  %v2383_v51 = vadd.f32 %v2382_v43, %v2381_v23  ;;  %v2390_v21 = vadd.f32 %v2389_v34, %v2388_v19  ;;  %v7945_v24 = vld [vmem:[#allocation9_spill] sm:$0xff]  ;;  %vm7949_vm9 = vmmov %vm7948_vm3 }
 0x2a2   : > { %1308 = vrot.lane.b32.xlu1 %v6360_v6, %s4768_s22  ;;  %1322 = vrot.lane.b32.xlu2 %v6375_v41, %s4768_s22  ;;  %v1590_v6 = vsel %vm416_vm0, %v6483_v38, %v6292_v33  ;;  %v2395_v52 = vadd.f32 %v2394_v35, %v2393_v44  ;;  %v2384_v14 = vrot.slane %v2383_v51, 1  ;;  %v2391_v23 = vrot.slane %v2390_v21, 1 }
 0x2a3   : > { %1404 = vrot.lane.b32.xlu0 %v6279_v25, %s7889_s25  ;;  %v1623_v32 = vsel %vm1595_vm5, %v1590_v6, %v6313_v7  ;;  %v2375_v7 = vrot.slane %v2374_v12, 2  ;;  %v2064_v44 = vsel %vm2042_vm13, %v6422_v20, 0.0 }
 0x2a4   : > { %v1508_v53 = vpop.permute.xlu1 %1507  ;;  %v1656_v33 = vsel %vm1628_vm6, %v1623_v32, %v6354_v50  ;;  %v6511_v50 = vsel %vm607_vm1, %v1061_v39, %v1063_v18  ;;  %v2385_v39 = vadd.f32 %v2384_v14, %v2383_v51  ;;  %v2392_v19 = vadd.f32 %v2391_v23, %v2390_v21 }
 0x2a5   : > { %v1814_v58 = vsel %vm1793_vm11, %v1781_v42, %v1508_v53  ;;  %v6481_v3 = vpop.permute.xlu0 %730  ;;  %v1689_v63 = vsel %vm1661_vm7, %v1656_v33, %v6373_v45  ;;  %v2376_v60 = vadd.f32 %v2375_v7, %v2374_v12 }
 0x2a6   : > { %4462 = vmatmul.msk.f32.vlgmr.msra.gmra.mxu1 %vm1828_vm12, %v1814_v58  ;;  %v6490_v8 = vpop.permute.xlu2 %1019  ;;  %v1722_v47 = vsel %vm1694_vm8, %v1689_v63, %v6392_v29  ;;  %v2681_v32 = vadd.f32 %v6245_v30, %v2385_v39 }
 0x2a7   : > { %v1755_v45 = vsel %vm7946_vm14, %v1722_v47, %v6407_v9  ;;  %v2377_v37 = vrot.slane %v2376_v60, 1  ;;  %vm7950_vm14 = vmmov %vm7948_vm3 }
 0x2a8   : > { %v2745_v20 = vmax.f32 %v2681_v32, 0.0 }
 0x2a9   : > { %v2378_v35 = vadd.f32 %v2377_v37, %v2376_v60 }
 0x2aa   : > { %1410 = vrot.lane.b32.xlu1 %v7944_v36, %s7889_s25  ;;  %734 = vrot.lane.b32.xlu2 %v6279_v25, %s7938_s29  ;;  %v2396_v25 = vrot.slane %v2395_v52, 2  ;;  %v2917_v37 = vrot.slane %v2745_v20, 7 }
 0x2ab   : > { %1505 = vrot.lane.b32.xlu0 %v6298_v62, %s4773_s14 }
 0x2ac   : > { %v1421_v0 = vpop.permute.xlu1 %1420  ;;  %v2397_v54 = vadd.f32 %v2396_v25, %v2395_v52 }
 0x2ad   : > { %v6502_v10 = vpop.permute.xlu0 %907  ;;  %v1788_v42 = vsel %vm1760_vm10, %v1755_v45, %v1421_v0  ;;  %v2682_v0 = vadd.f32 %v6245_v30, %v2392_v19 }
 0x2ae   : > { %v6504_v5 = vpop.permute.xlu2 %1121  ;;  %v2398_v56 = vrot.slane %v2397_v54, 1 }
 0x2b0   : > { %v2399_v47 = vadd.f32 %v2398_v56, %v2397_v54 }
 0x2b2   : > { %1511 = vrot.lane.b32.xlu1 %v7945_v24, %s4773_s14  ;;  %1525 = vrot.lane.b32.xlu2 %v6516_v28, %s4773_s14  ;;  %v2683_v19 = vadd.f32 %v6245_v30, %v2399_v47 }
 0x2b3   : > { %1424 = vrot.lane.b32.xlu0 %v6511_v50, %s7889_s25 }
 0x2b4   : > { %v1522_v53 = vpop.permute.xlu1 %1521  ;;  %v1991_v9 = vpop.f32.mrf.mxu0  ;;  %v2747_v20 = vmax.f32 %v2683_v19, 0.0 }
 0x2b5   : > { %v1821_v29 = vsel %vm1793_vm11, %v1788_v42, %v1522_v53  ;;  %v6530_v58 = vpop.permute.xlu0 %999  ;;  %v2065_v43 = vsel %vm2042_vm13, %v1991_v9, 0.0  ;;  %v2746_v53 = vmax.f32 %v2682_v0, 0.0 }
 0x2b6   : > { %4469 = vmatmul.msk.f32.gmra.mxu3 %vm1828_vm12, %v1821_v29  ;;  %v6533_v6 = vpop.permute.xlu2 %1222  ;;  %v2066_v12 = vadd.f32 %v2065_v43, %v2064_v44 }
 0x2b8   : > { %v2128_v36 = vrot.slane %v2066_v12, 2  ;;  %v2129_v34 = vrot.slane %v2066_v12, 4  ;;  %v2130_v33 = vrot.slane %v2066_v12, 6  ;;  %v2400_v51 = vsel %vm7947_vm15, %v2066_v12, 0.0 }
 0x2b9   : > { %v2401_v18 = vrot.slane %v2400_v51, 4  ;;  %vm7951_vm15 = vcmask 1041409  }
 0x2ba   : > { %911 = vrot.lane.b32.xlu1 %v6298_v62, %s7908_s30  ;;  %v2407_v7 = vsel %vm7948_vm3, %v2128_v36, 0.0  ;;  %v2414_v52 = vsel %vm7949_vm9, %v2129_v34, 0.0  ;;  %v2421_v57 = vsel %vm7950_vm14, %v2130_v33, 0.0  ;;  %925 = vrot.lane.b32.xlu2 %v6048_v16, %s7908_s30  ;;  %v2919_v36 = vrot.slane %v2746_v53, 6 }
 0x2bb   : > { %748 = vrot.lane.b32.xlu0 %v6021_v31, %s7938_s29  ;;  %v2402_v21 = vadd.f32 %v2401_v18, %v2400_v51  ;;  %v2408_v62 = vrot.slane %v2407_v7, 4  ;;  %v2415_v14 = vrot.slane %v2414_v52, 4  ;;  %v2422_v60 = vrot.slane %v2421_v57, 4 }
 0x2bc   : > { %v6548_v63 = vpop.permute.xlu1 %1005  ;;  %v2680_v31 = vadd.f32 %v6245_v30, %v2378_v35  ;;  %vm7952_vm3 = vcmask 1042434   ;;  %vm7953_vm9 = vcmask 1044484   ;;  %vm7954_vm14 = vcmask 1045509  }
 0x2bd   : > { %v6552_v25 = vpop.permute.xlu0 %1101  ;;  %v2403_v45 = vrot.slane %v2402_v21, 2  ;;  %v2409_v23 = vadd.f32 %v2408_v62, %v2407_v7  ;;  %v2416_v39 = vadd.f32 %v2415_v14, %v2414_v52  ;;  %v2423_v42 = vadd.f32 %v2422_v60, %v2421_v57 }
 0x2be   : > { %v6555_v24 = vpop.permute.xlu2 %1320  ;;  %v2744_v43 = vmax.f32 %v2680_v31, 0.0  ;;  %v2921_v31 = vrot.slane %v2747_v20, 5 }
 0x2bf   : > { %v2404_v29 = vadd.f32 %v2403_v45, %v2402_v21  ;;  %v2410_v9 = vrot.slane %v2409_v23, 2  ;;  %v2417_v16 = vrot.slane %v2416_v39, 2  ;;  %v2424_v44 = vrot.slane %v2423_v42, 2 }
 0x2c0   : > { %v2918_v56 = vsel %vm7951_vm15, %v2917_v37, %v2744_v43  ;;  %vm7955_vm15 = vcmask 1046534  }
 0x2c1   : > { %v2405_v54 = vrot.slane %v2404_v29, 1  ;;  %v2411_v32 = vadd.f32 %v2410_v9, %v2409_v23  ;;  %v2418_v12 = vadd.f32 %v2417_v16, %v2416_v39  ;;  %v2425_v35 = vadd.f32 %v2424_v44, %v2423_v42 }
 0x2c2   : > { %1009 = vrot.lane.b32.xlu1 %v6177_v27, %s7887_s13  ;;  %1212 = vrot.lane.b32.xlu2 %v5793_v59, %s7892_s12  ;;  %v2920_v62 = vsel %vm7952_vm3, %v2919_v36, %v2918_v56  ;;  %vm7956_vm3 = vcmask 1047559  }
 0x2c3   : > { %1111 = vrot.lane.b32.xlu0 %v5783_v2, %s7888_s24  ;;  %v2406_v33 = vadd.f32 %v2405_v54, %v2404_v29  ;;  %v2412_v51 = vrot.slane %v2411_v32, 1  ;;  %v2419_v0 = vrot.slane %v2418_v12, 1  ;;  %v2426_v18 = vrot.slane %v2425_v35, 1  ;;  %v6587_v54 = vld [vmem:[#allocation2 + $0x1a0] sm:$0xff] }
 0x2c4   : > { %v6563_v34 = vpop.permute.xlu1 %1107  ;;  %v2922_v53 = vsel %vm2875_vm4, %v2921_v31, %v2920_v62  ;;  %v1362_v36 = vrot.slane %v6587_v54, 1  ;;  %v4687_v31 = vld [vmem:[#allocation2 + $0xf8] sm:$0xff] }
 0x2c5   : > { %v1203_v27 = vpop.permute.xlu0 %1202  ;;  %v2413_v52 = vadd.f32 %v2412_v51, %v2411_v32  ;;  %v2420_v57 = vadd.f32 %v2419_v0, %v2418_v12  ;;  %v2427_v21 = vadd.f32 %v2426_v18, %v2425_v35  ;;  %v2684_v2 = vadd.f32 %v6245_v30, %v2406_v33  ;;  %v556_v32 = vld [vmem:[#allocation2 + $0x198] sm:$0xff]  ;;  %v7958_v35 = vld [vmem:[#allocation12_spill] sm:$0xff] }
 0x2c6   : > { %v6567_v7 = vpop.permute.xlu2 %726  ;;  %v1361_v56 = vrot.slane %v556_v32, 1  ;;  %v4686_v33 = vld [vmem:[#allocation2 + $0xd8] sm:$0xff] }
 0x2c7   : > { %v2685_v14 = vadd.f32 %v6245_v30, %v2413_v52  ;;  %v2686_v60 = vadd.f32 %v6245_v30, %v2420_v57  ;;  %v2687_v59 = vadd.f32 %v6245_v30, %v2427_v21  ;;  %v2748_v47 = vmax.f32 %v2684_v2, 0.0 }
 0x2c8   : > { %v1581_v51 = vsel %vm416_vm0, %v4686_v33, %v6420_v48  ;;  %v1363_v20 = vsel %vm607_vm1, %v1361_v56, %v1362_v36 }
 0x2c9   : > { %v2749_v45 = vmax.f32 %v2685_v14, 0.0  ;;  %v2750_v23 = vmax.f32 %v2686_v60, 0.0  ;;  %v2751_v39 = vmax.f32 %v2687_v59, 0.0  ;;  %v2923_v42 = vrot.slane %v2748_v47, 4 }
 0x2ca   : > { %1023 = vrot.lane.b32.xlu1 %v6324_v55, %s7887_s13  ;;  %1226 = vrot.lane.b32.xlu2 %v6412_v17, %s7892_s12  ;;  %v7957_v17 = vld [vmem:[#allocation11_spill] sm:$0xff]  ;;  %v1614_v18 = vsel %vm1595_vm5, %v1581_v51, %v6430_v11  ;;  %v1462_v14 = vrot.slane %v556_v32, 2 }
 0x2cb   : > { %1125 = vrot.lane.b32.xlu0 %v6397_v4, %s7888_s24  ;;  %v2924_v30 = vsel %vm7953_vm9, %v2923_v42, %v2922_v53  ;;  %v2925_v29 = vrot.slane %v2749_v45, 3  ;;  %v2927_v9 = vrot.slane %v2750_v23, 2  ;;  %v2929_v19 = vrot.slane %v2751_v39, 1 }
 0x2cc   : > { %v1209_v37 = vpop.permute.xlu1 %1208  ;;  %v1647_v52 = vsel %vm1628_vm6, %v1614_v18, %v6530_v58  ;;  %v1463_v58 = vrot.slane %v6587_v54, 2  ;;  %vm7959_vm9 = vcmask 48128   ;;  %v1584_v45 = vsel %vm416_vm0, %v4687_v31, %v6481_v3 }
 0x2cd   : > { %v1301_v16 = vpop.permute.xlu0 %1300  ;;  %v2926_v55 = vsel %vm7954_vm14, %v2925_v29, %v2924_v30  ;;  %v1680_v2 = vsel %vm1661_vm7, %v1647_v52, %v6552_v25  ;;  %v1617_v39 = vsel %vm1595_vm5, %v1584_v45, %v6502_v10  ;;  %v558_v29 = vld [vmem:[#allocation2 + $0x1a8] sm:$0x3]  ;;  %vm7960_vm14 = vmmov %vm7959_vm9  ;;  %v7962_v45 = vld [vmem:[#allocation13_spill] sm:$0xff] }
 0x2ce   : > { %v6582_v44 = vpop.permute.xlu2 %903  ;;  %v2928_v43 = vsel %vm7955_vm15, %v2927_v9, %v2926_v55  ;;  %v1713_v62 = vsel %vm1694_vm8, %v1680_v2, %v1203_v27  ;;  %v1464_v42 = vsel %vm784_vm2, %v1462_v14, %v1463_v58  ;;  %v4688_v55 = vld [vmem:[#allocation2 + $0x150] sm:$0xff]  ;;  %vm7961_vm15 = vmmov %vm7959_vm9 }
 0x2cf   : > { %v2930_v4 = vsel %vm7956_vm3, %v2929_v19, %v2928_v43  ;;  %v1746_v60 = vsel %vm7959_vm9, %v1713_v62, %v1301_v16  ;;  %v1591_v19 = vsel %vm416_vm0, %v4688_v55, %v6442_v49  ;;  %v6654_v43 = vld [vmem:[#allocation3] sm:$0xff]  ;;  %vm7963_vm3 = vmmov %vm7959_vm9  ;;  %vm7964_vm9 = vcmask 123904  }
 0x2d0   : > { %2999 = vst.msk [vmem:[#allocation3 + $0x41] sm:$0xff] %vm2042_vm13, %v2930_v4  ;;  %v6656_v4 = vld [vmem:[#allocation3 + $0x10] sm:$0xff] }
 0x2d1   : > { %v3091_v49 = vrot.slane %v6656_v4, 2 }
 0x2d2   : > { %1310 = vrot.lane.b32.xlu1 %v6483_v38, %s4768_s22  ;;  %1513 = vrot.lane.b32.xlu2 %v7958_v35, %s4773_s14 }
 0x2d3   : > { %1412 = vrot.lane.b32.xlu0 %v7957_v17, %s7889_s25  ;;  %v3007_v17 = vld [vmem:[#allocation3 + $0x18] sm:$0x3] }
 0x2d4   : > { %v1307_v12 = vpop.permute.xlu1 %1306  ;;  %v3092_v56 = vrot.slane %v3007_v17, 2  ;;  %v3044_v52 = vrot.slane %v3007_v17, 1 }
 0x2d5   : > { %v1403_v0 = vpop.permute.xlu0 %1402 }
 0x2d6   : > { %v6601_v38 = vpop.permute.xlu2 %746  ;;  %v1779_v25 = vsel %vm1760_vm10, %v1746_v60, %v1403_v0  ;;  %v3093_v18 = vsel %vm784_vm2, %v3091_v49, %v3092_v56  ;;  %v4690_v49 = vld [vmem:[#allocation2 + $0xe0] sm:$0xff] }
 0x2d7   : > { %v6606_v57 = vld [vmem:[#allocation3 + $0x40] sm:$0xff]  ;;  %v6608_v21 = vld [vmem:[#allocation3 + $0x48] sm:$0x3]  ;;  %v1582_v56 = vsel %vm416_vm0, %v4690_v49, %v6567_v7 }
 0x2d8   : > { %v3100_v48 = vrot.slane %v6606_v57, 2  ;;  %v3101_v11 = vrot.slane %v6608_v21, 2 }
 0x2da   : > { %1324 = vrot.lane.b32.xlu1 %v556_v32, %s4768_s22  ;;  %v6620_v47 = vsel %vm784_vm2, %v3100_v48, %v3101_v11  ;;  %750 = vrot.lane.b32.xlu2 %v6195_v46, %s7938_s29  ;;  %v1650_v46 = vsel %vm1628_vm6, %v1617_v39, %v6548_v63  ;;  %v3043_v48 = vrot.slane %v6656_v4, 1  ;;  %s8016_s29 = smov 64  }
 0x2db   : > { %1426 = vrot.lane.b32.xlu0 %v1363_v20, %s7889_s25  ;;  %4476 = vmatmul.msk.f32.gmra.mxu2 %vm2042_vm13, %v6620_v47  ;;  %v1683_v53 = vsel %vm1661_vm7, %v1650_v46, %v6563_v34 }
 0x2dc   : > { %v1409_v59 = vpop.permute.xlu1 %1408  ;;  %v1716_v30 = vsel %vm1694_vm8, %v1683_v53, %v1209_v37  ;;  %v1364_v37 = vrot.slane %v558_v29, 1 }
 0x2dd   : > { %v1504_v27 = vpop.permute.xlu0 %1503  ;;  %v1749_v9 = vsel %vm7960_vm14, %v1716_v30, %v1307_v12  ;;  %v3088_v12 = vrot.slane %v6654_v43, 2  ;;  %v2018_v30 = vpop.f32.mrf.mxu3  ;;  %vm7965_vm14 = vmmov %vm7964_vm9 }
 0x2de   : > { %v1812_v23 = vsel %vm1793_vm11, %v1779_v25, %v1504_v27  ;;  %v6640_v3 = vpop.permute.xlu2 %923  ;;  %v1782_v10 = vsel %vm1760_vm10, %v1749_v9, %v1409_v59  ;;  %v1365_v32 = vsel %vm607_vm1, %v1362_v36, %v1364_v37  ;;  %v1465_v36 = vrot.slane %v558_v29, 2 }
 0x2df   : > { %4460 = vmatmul.msk.f32.gmra.mxu0 %vm1828_vm12, %v1812_v23  ;;  %v4567_v23 = vpack.i.bf16 %v7962_v45, %v3093_v18  ;;  %v3053_v9 = vrot.slane %v6608_v21, 1  ;;  %v4587_v37 = vpack.i.bf16 %v6330_v1, %v7962_v45 }
 0x2e2   : > { %1527 = vrot.lane.b32.xlu1 %v1464_v42, %s4773_s14  ;;  %1127 = vrot.lane.b32.xlu2 %v6511_v50, %s7888_s24  ;;  %v1624_v50 = vsel %vm1595_vm5, %v1591_v19, %v6462_v22  ;;  %s7870_s24 = smov 64  }
 0x2e3   : > { %927 = vrot.lane.b32.xlu0 %v6226_v13, %s7908_s30  ;;  %v3005_v13 = vld [vmem:[#allocation3 + $0x8] sm:$0x3]  ;;  %v1657_v33 = vsel %vm1628_vm6, %v1624_v50, %v6490_v8  ;;  %v3040_v8 = vrot.slane %v6654_v43, 1  ;;  %v4592_v50 = vpack.i.bf16 %v6606_v57, %v6318_v40  ;;  %s7999_s30 = smov 32  }
 0x2e4   : > { %v1510_v16 = vpop.permute.xlu1 %1509  ;;  %v3089_v35 = vrot.slane %v3005_v13, 2  ;;  %v1690_v20 = vsel %vm1661_vm7, %v1657_v33, %v6504_v5  ;;  %v3041_v2 = vrot.slane %v3005_v13, 1 }
 0x2e5   : > { %v1815_v63 = vsel %vm1793_vm11, %v1782_v10, %v1510_v16  ;;  %v6649_v34 = vpop.permute.xlu0 %732  ;;  %v1723_v62 = vsel %vm1694_vm8, %v1690_v20, %v6533_v6  ;;  %v3045_v6 = vsel %vm607_vm1, %v3043_v48, %v3044_v52  ;;  %v3052_v10 = vrot.slane %v6606_v57, 1  ;;  %v6718_v55 = vpop.f32.mrf.mxu3 }
 0x2e6   : > { %4463 = vmatmul.msk.f32.gmra.mxu1 %vm1828_vm12, %v1815_v63  ;;  %v6669_v51 = vpop.permute.xlu2 %1021  ;;  %v1756_v14 = vsel %vm7961_vm15, %v1723_v62, %v6555_v24  ;;  %v3042_v25 = vsel %vm607_vm1, %v3040_v8, %v3041_v2  ;;  %v4562_v53 = vpack.i.bf16 %v6337_v61, %v3045_v6  ;;  %vm7966_vm15 = vmmov %vm7963_vm3 }
 0x2e7   : > { %v4547_v24 = vpack.i.bf16 %v3045_v6, %v3042_v25  ;;  %v6714_v61 = vsel %vm607_vm1, %v3052_v10, %v3053_v9 }
 0x2e8   : > { %v4597_v21 = vpack.i.bf16 %v6714_v61, %v6340_v26 }
 0x2ea   : > { %1025 = vrot.lane.b32.xlu1 %v6375_v41, %s7887_s13  ;;  %1428 = vrot.lane.b32.xlu2 %v1365_v32, %s7889_s25  ;;  %v3090_v41 = vsel %vm784_vm2, %v3088_v12, %v3089_v35  ;;  %s7872_s13 = smov 80   ;;  %s4779_s25 = smov 96   ;;  %v4602_v32 = vpack.i.bf16 %v6620_v47, %v6330_v1  ;;  %v1615_v1 = vsel %vm1595_vm5, %v1582_v56, %v6582_v44 }
 0x2eb   : > { %1228 = vrot.lane.b32.xlu0 %v6516_v28, %s7892_s12  ;;  %v1466_v28 = vsel %vm784_vm2, %v1463_v58, %v1465_v36  ;;  %v4552_v11 = vpack.i.bf16 %v3093_v18, %v3090_v41  ;;  %s7878_s12 = smov 112   ;;  %v4691_v36 = vld [vmem:[#allocation2 + $0x158] sm:$0xff] }
 0x2ec   : > { %v1423_v22 = vpop.permute.xlu1 %1422  ;;  %v1592_v41 = vsel %vm416_vm0, %v4691_v36, %v6601_v38 }
 0x2ed   : > { %v6672_v0 = vpop.permute.xlu0 %909  ;;  %v1789_v5 = vsel %vm1760_vm10, %v1756_v14, %v1423_v22 }
 0x2ee   : > { %v6693_v27 = vpop.permute.xlu2 %1123 }
 0x2f2   : > { %1326 = vrot.lane.b32.xlu1 %v6587_v54, %s4768_s22  ;;  %4553 = vrot.lane.b32.xlu2 %v4552_v11, %s7876_s16  ;;  %v4689_v54 = vld [vmem:[#allocation3 + $0x20] sm:$0xff]  ;;  %s4775_s22 = smov 16   ;;  %v4692_v11 = vld [vmem:[#allocation2 + $0x108] sm:$0xff] }
 0x2f3   : > { %1529 = vrot.lane.b32.xlu0 %v1466_v28, %s4773_s14  ;;  %v4557_v31 = vpack.i.bf16 %v4689_v54, %v6656_v4  ;;  %s7874_s14 = smov 48   ;;  %v4572_v29 = vpack.i.bf16 %v6318_v40, %v4689_v54  ;;  %v2079_v40 = vsel %vm2042_vm13, %v2018_v30, 0.0  ;;  %v1625_v28 = vsel %vm1595_vm5, %v1592_v41, %v6640_v3 }
 0x2f4   : > { %v1524_v58 = vpop.permute.xlu1 %1523  ;;  %v1585_v38 = vsel %vm416_vm0, %v4692_v11, %v6649_v34  ;;  %v1658_v62 = vsel %vm1628_vm6, %v1625_v28, %v6669_v51  ;;  %v4694_v11 = vld [vmem:[#allocation2 + $0x110] sm:$0xff] }
 0x2f5   : > { %v1822_v60 = vsel %vm1793_vm11, %v1789_v5, %v1524_v58  ;;  %v1002_v59 = vpop.permute.xlu0 %1001  ;;  %v1618_v3 = vsel %vm1595_vm5, %v1585_v38, %v6672_v0  ;;  %v1691_v34 = vsel %vm1661_vm7, %v1658_v62, %v6693_v27 }
 0x2f6   : > { %4470 = vmatmul.msk.f32.gmra.mxu3 %vm1828_vm12, %v1822_v60  ;;  %v6703_v46 = vpop.permute.xlu2 %1224  ;;  %v1648_v18 = vsel %vm1628_vm6, %v1615_v1, %v1002_v59 }
 0x2f7   : > { %v1724_v54 = vsel %vm1694_vm8, %v1691_v34, %v6703_v46 }
 0x2f9   : > { %v2024_v12 = vpop.f32.mrf.mxu3 }
 0x2fa   : > { %4548 = vrot.lane.b32.xlu1 %v4547_v24, %s4775_s22  ;;  %4568 = vrot.lane.b32.xlu2 %v4567_v23, %s7872_s13 }
 0x2fb   : > { %4558 = vrot.lane.b32.xlu0 %v4557_v31, %s7874_s14 }
 0x2fc   : > { %v6700_v39 = vpop.permute.xlu1 %1007 }
 0x2fd   : > { %v1104_v42 = vpop.permute.xlu0 %1103  ;;  %v1651_v59 = vsel %vm1628_vm6, %v1618_v3, %v6700_v39 }
 0x2fe   : > { %v1323_v19 = vpop.permute.xlu2 %1322  ;;  %v1681_v20 = vsel %vm1661_vm7, %v1648_v18, %v1104_v42 }
 0x302   : > { %4563 = vrot.lane.b32.xlu1 %v4562_v53, %s7870_s24  ;;  %4583 = vrot.lane.b32.xlu2 %v6348_v15, %s4775_s22 }
 0x303   : > { %4573 = vrot.lane.b32.xlu0 %v4572_v29, %s4779_s25 }
 0x304   : > { %v1110_v16 = vpop.permute.xlu1 %1109 }
 0x305   : > { %v1205_v63 = vpop.permute.xlu0 %1204  ;;  %v1684_v25 = vsel %vm1661_vm7, %v1651_v59, %v1110_v16 }
 0x306   : > { %v6733_v26 = vpop.permute.xlu2 %734  ;;  %v1714_v7 = vsel %vm1694_vm8, %v1681_v20, %v1205_v63 }
 0x307   : > { %v1586_v38 = vsel %vm416_vm0, %v4694_v11, %v6733_v26 }
 0x30a   : > { %4578 = vrot.lane.b32.xlu1 %v6348_v15, %s7878_s12  ;;  %4598 = vrot.lane.b32.xlu2 %v4597_v21, %s7870_s24  ;;  %v2080_v15 = vsel %vm2042_vm13, %v2024_v12, 0.0  ;;  %s7998_s12 = smov 112   ;;  %s8014_s24 = smov 48  }
 0x30b   : > { %4588 = vrot.lane.b32.xlu0 %v4587_v37, %s7876_s16  ;;  %v2081_v22 = vadd.f32 %v2080_v15, %v2079_v40 }
 0x30c   : > { %v1211_v13 = vpop.permute.xlu1 %1210 }
 0x30d   : > { %v1303_v17 = vpop.permute.xlu0 %1302  ;;  %v2143_v52 = vrot.slane %v2081_v22, 2  ;;  %v2144_v58 = vrot.slane %v2081_v22, 4  ;;  %v1717_v6 = vsel %vm1694_vm8, %v1684_v25, %v1211_v13  ;;  %v2145_v23 = vrot.slane %v2081_v22, 6 }
 0x30e   : > { %v1747_v8 = vsel %vm7963_vm3, %v1714_v7, %v1303_v17  ;;  %v1526_v14 = vpop.permute.xlu2 %1525  ;;  %vm7967_vm3 = vmmov %vm7964_vm9  ;;  %v2082_v7 = vsel %vm2042_vm13, %v6718_v55, 0.0 }
 0x30f   : > { %v2547_v60 = vsel %vm7964_vm9, %v2143_v52, 0.0  ;;  %v2554_v24 = vsel %vm7965_vm14, %v2144_v58, 0.0  ;;  %v2540_v39 = vsel %vm7967_vm3, %v2081_v22, 0.0  ;;  %vm7968_vm9 = vmmov %vm7966_vm15 }
 0x310   : > { %v2548_v51 = vrot.slane %v2547_v60, 4  ;;  %v1757_v27 = vsel %vm7968_vm9, %v1724_v54, %v1323_v19  ;;  %v2555_v29 = vrot.slane %v2554_v24, 4  ;;  %v2541_v46 = vrot.slane %v2540_v39, 4  ;;  %vm7969_vm14 = vmmov %vm7967_vm3 }
 0x311   : > { %v2561_v63 = vsel %vm7969_vm14, %v2145_v23, 0.0  ;;  %vm7971_vm9 = vmmov %vm7967_vm3 }
 0x312   : > { %4593 = vrot.lane.b32.xlu1 %v4592_v50, %s7874_s14  ;;  %v2549_v30 = vadd.f32 %v2548_v51, %v2547_v60  ;;  %v2556_v19 = vadd.f32 %v2555_v29, %v2554_v24  ;;  %v2542_v21 = vadd.f32 %v2541_v46, %v2540_v39  ;;  %v2562_v13 = vrot.slane %v2561_v63, 4  ;;  %vm7972_vm14 = vmmov %vm7967_vm3 }
 0x313   : > { %4603 = vrot.lane.b32.xlu0 %v4602_v32, %s7872_s13 }
 0x314   : > { %v1309_v35 = vpop.permute.xlu1 %1308  ;;  %v2550_v37 = vrot.slane %v2549_v30, 2  ;;  %v2557_v12 = vrot.slane %v2556_v19, 2  ;;  %v2543_v15 = vrot.slane %v2542_v21, 2 }
 0x315   : > { %v1405_v33 = vpop.permute.xlu0 %1404  ;;  %v1750_v0 = vsel %vm7966_vm15, %v1717_v6, %v1309_v35  ;;  %v2563_v35 = vadd.f32 %v2562_v13, %v2561_v63  ;;  %vm7970_vm15 = vmmov %vm7967_vm3 }
 0x316   : > { %v1780_v48 = vsel %vm1760_vm10, %v1747_v8, %v1405_v33  ;;  %v6775_v16 = vpop.permute.xlu2 %925  ;;  %v2551_v32 = vadd.f32 %v2550_v37, %v2549_v30  ;;  %v2558_v56 = vadd.f32 %v2557_v12, %v2556_v19  ;;  %v2544_v40 = vadd.f32 %v2543_v15, %v2542_v21  ;;  %v3349_v37 = vld [vmem:[%s7825_s3 + $0x78] sm:$0xff] }
 0x317   : > { %v2564_v22 = vrot.slane %v2563_v35, 2  ;;  %3368 = vmatpush.msrb.mxu1 %v3349_v37 }
 0x318   : > { %v2552_v49 = vrot.slane %v2551_v32, 1  ;;  %v2559_v18 = vrot.slane %v2558_v56, 1  ;;  %v2545_v20 = vrot.slane %v2544_v40, 1 }
 0x319   : > { %v2565_v28 = vadd.f32 %v2564_v22, %v2563_v35 }
 0x31a   : > { %v2553_v41 = vadd.f32 %v2552_v49, %v2551_v32  ;;  %v2560_v8 = vadd.f32 %v2559_v18, %v2558_v56  ;;  %v3348_v49 = vld [vmem:[%s7825_s3 + $0x70] sm:$0xff] }
 0x31b   : > { %3369 = vmatpush.msrb.mxu1 %v3348_v49 }
 0x31c   : > { %v1411_v2 = vpop.permute.xlu1 %1410 }
 0x31d   : > { %v1506_v44 = vpop.permute.xlu0 %1505  ;;  %v1783_v31 = vsel %vm1760_vm10, %v1750_v0, %v1411_v2  ;;  %v6786_v2 = vld [vmem:[%s7824_s2] ss:$0 sm:$0xff] }
 0x31e   : > { %v1813_v5 = vsel %vm1793_vm11, %v1780_v48, %v1506_v44  ;;  %v1213_v33 = vpop.permute.xlu2 %1212  ;;  %v2705_v48 = vadd.f32 %v6786_v2, %v2553_v41  ;;  %v2706_v6 = vadd.f32 %v6786_v2, %v2560_v8  ;;  %v4695_v8 = vld [vmem:[#allocation2 + $0x168] sm:$0xff] }
 0x31f   : > { %4461 = vmatmul.msk.f32.gmra.mxu0 %vm1828_vm12, %v1813_v5  ;;  %v2566_v5 = vrot.slane %v2565_v28, 1 }
 0x320   : > { %v2769_v24 = vmax.f32 %v2705_v48, 0.0  ;;  %v2770_v19 = vmax.f32 %v2706_v6, 0.0  ;;  %v3345_v6 = vld [vmem:[%s7825_s3 + $0x58] sm:$0xff] }
 0x321   : > { %v2567_v30 = vadd.f32 %v2566_v5, %v2565_v28  ;;  %v3347_v28 = vld [vmem:[%s7825_s3 + $0x68] sm:$0xff]  ;;  %v3346_v5 = vld [vmem:[%s7825_s3 + $0x60] sm:$0xff] }
 0x322   : > { %v2959_v21 = vrot.slane %v2769_v24, 7  ;;  %3370 = vmatpush.msrb.mxu1 %v3347_v28 }
 0x323   : > { %v2707_v56 = vadd.f32 %v6786_v2, %v2567_v30 }
 0x324   : > { %v1512_v45 = vpop.permute.xlu1 %1511  ;;  %3371 = vmatpush.msrb.mxu1 %v3346_v5 }
 0x325   : > { %v1816_v42 = vsel %vm1793_vm11, %v1783_v31, %v1512_v45  ;;  %v1425_v53 = vpop.permute.xlu0 %1424 }
 0x326   : > { %4464 = vmatmul.msk.f32.gmra.mxu1 %vm1828_vm12, %v1816_v42  ;;  %v1790_v9 = vsel %vm1760_vm10, %v1757_v27, %v1425_v53  ;;  %v6792_v3 = vpop.permute.xlu2 %1226 }
 0x327   : > { %v1823_v10 = vsel %vm1793_vm11, %v1790_v9, %v1526_v14  ;;  %v2546_v14 = vadd.f32 %v2545_v20, %v2544_v40  ;;  %3372 = vmatpush.msrb.mxu1 %v3345_v6 }
 0x328   : > { %4471 = vmatmul.msk.f32.gmra.mxu3 %vm1828_vm12, %v1823_v10 }
 0x329   : > { %v2704_v29 = vadd.f32 %v6786_v2, %v2546_v14 }
 0x32b   : > { %v2768_v40 = vmax.f32 %v2704_v29, 0.0 }
 0x32c   : > { %v912_v17 = vpop.permute.xlu1 %911 }
 0x32d   : > { %v6779_v50 = vpop.permute.xlu0 %748  ;;  %v1619_v55 = vsel %vm1595_vm5, %v1586_v38, %v912_v17 }
 0x32e   : > { %v1593_v48 = vsel %vm416_vm0, %v4695_v8, %v6779_v50 }
 0x334   : > { %v1010_v1 = vpop.permute.xlu1 %1009 }
 0x335   : > { %v1112_v36 = vpop.permute.xlu0 %1111  ;;  %v1652_v26 = vsel %vm1628_vm6, %v1619_v55, %v1010_v1  ;;  %v2771_v55 = vmax.f32 %v2707_v56, 0.0 }
 0x336   : > { %v1685_v54 = vsel %vm1661_vm7, %v1652_v26, %v1112_v36  ;;  %v1514_v36 = vpop.permute.xlu2 %1513  ;;  %v1626_v26 = vsel %vm1595_vm5, %v1593_v48, %v6775_v16  ;;  %v3335_v48 = vld [vmem:[%s7825_s3 + $0x8] sm:$0xff] }
 0x337   : > { %v1718_v13 = vsel %vm1694_vm8, %v1685_v54, %v1213_v33 }
 0x339   : > { %v2027_v52 = vpop.f32.mrf.mxu3 }
 0x33a   : > { %v2083_v44 = vsel %vm2042_vm13, %v2027_v52, 0.0 }
 0x33b   : > { %v2084_v62 = vadd.f32 %v2083_v44, %v2082_v7  ;;  %v2961_v7 = vrot.slane %v2770_v19, 6 }
 0x33c   : > { %v6795_v58 = vpop.permute.xlu1 %1023 }
 0x33d   : > { %v2146_v60 = vrot.slane %v2084_v62, 2  ;;  %v2147_v59 = vrot.slane %v2084_v62, 4  ;;  %v2148_v34 = vrot.slane %v2084_v62, 6  ;;  %v2568_v25 = vsel %vm7970_vm15, %v2084_v62, 0.0  ;;  %v6798_v51 = vpop.permute.xlu0 %1125 }
 0x33e   : > { %v2569_v0 = vrot.slane %v2568_v25, 4  ;;  %vm7973_vm15 = vcmask 48128  }
 0x33f   : > { %v2575_v31 = vsel %vm7967_vm3, %v2146_v60, 0.0  ;;  %v2582_v45 = vsel %vm7971_vm9, %v2147_v59, 0.0  ;;  %v2589_v23 = vsel %vm7972_vm14, %v2148_v34, 0.0  ;;  %vm7974_vm3 = vcmask 1041409  }
 0x340   : > { %v2570_v39 = vadd.f32 %v2569_v0, %v2568_v25  ;;  %v2576_v27 = vrot.slane %v2575_v31, 4  ;;  %v2583_v42 = vrot.slane %v2582_v45, 4  ;;  %v2590_v53 = vrot.slane %v2589_v23, 4 }
 0x341   : > { %v2960_v52 = vsel %vm7974_vm3, %v2959_v21, %v2768_v40  ;;  %vm7975_vm9 = vcmask 1042434   ;;  %vm7976_vm14 = vcmask 1044484   ;;  %v751_v21 = vpop.permute.xlu2 %750  ;;  %vm7978_vm3 = vcmask 1046534  }
 0x342   : > { %v2571_v9 = vrot.slane %v2570_v39, 2  ;;  %v2577_v10 = vadd.f32 %v2576_v27, %v2575_v31  ;;  %v2584_v46 = vadd.f32 %v2583_v42, %v2582_v45  ;;  %v2591_v63 = vadd.f32 %v2590_v53, %v2589_v23 }
 0x343   : > { %v2962_v24 = vsel %vm7975_vm9, %v2961_v7, %v2960_v52  ;;  %v2963_v27 = vrot.slane %v2771_v55, 5  ;;  %v1659_v42 = vsel %vm1628_vm6, %v1626_v26, %v6795_v58  ;;  %vm7979_vm9 = vcmask 48128   ;;  %v4696_v52 = vld [vmem:[#allocation2 + $0x170] sm:$0xff]  ;;  %v1994_v55 = vpop.f32.mrf.mxu0 }
 0x344   : > { %v2572_v17 = vadd.f32 %v2571_v9, %v2570_v39  ;;  %v2578_v32 = vrot.slane %v2577_v10, 2  ;;  %v2585_v12 = vrot.slane %v2584_v46, 2  ;;  %v2592_v15 = vrot.slane %v2591_v63, 2  ;;  %v1311_v35 = vpop.permute.xlu1 %1310  ;;  %v3344_v39 = vld [vmem:[%s7825_s3 + $0x50] sm:$0xff] }
 0x345   : > { %v1751_v22 = vsel %vm7973_vm15, %v1718_v13, %v1311_v35  ;;  %v1413_v1 = vpop.permute.xlu0 %1412  ;;  %3373 = vmatpush.msrb.mxu1 %v3344_v39  ;;  %v3342_v13 = vld [vmem:[%s7825_s3 + $0x40] sm:$0xff]  ;;  %vm7977_vm15 = vcmask 1045509   ;;  %v1594_v7 = vsel %vm416_vm0, %v4696_v52, %v751_v21  ;;  %vm7981_vm0 = vmmov %vm7979_vm9 }
 0x346   : > { %v2573_v41 = vrot.slane %v2572_v17, 1  ;;  %v2579_v33 = vadd.f32 %v2578_v32, %v2577_v10  ;;  %v2586_v18 = vadd.f32 %v2585_v12, %v2584_v46  ;;  %v2593_v20 = vadd.f32 %v2592_v15, %v2591_v63  ;;  %v3343_v10 = vld [vmem:[%s7825_s3 + $0x48] sm:$0xff] }
 0x347   : > { %v1784_v44 = vsel %vm1760_vm10, %v1751_v22, %v1413_v1  ;;  %v2964_v46 = vsel %vm2875_vm4, %v2963_v27, %v2962_v24  ;;  %v1692_v63 = vsel %vm1661_vm7, %v1659_v42, %v6798_v51  ;;  %3374 = vmatpush.msrb.mxu1 %v3343_v10  ;;  %v3341_v51 = vld [vmem:[%s7825_s3 + $0x38] sm:$0xff]  ;;  %v3340_v22 = vld [vmem:[%s7825_s3 + $0x30] sm:$0xff] }
 0x348   : > { %v2574_v11 = vadd.f32 %v2573_v41, %v2572_v17  ;;  %v2580_v38 = vrot.slane %v2579_v33, 1  ;;  %v2587_v62 = vrot.slane %v2586_v18, 1  ;;  %v2594_v14 = vrot.slane %v2593_v20, 1  ;;  %v3338_v41 = vld [vmem:[%s7825_s3 + $0x20] sm:$0xff] }
 0x349   : > { %v1817_v60 = vsel %vm1793_vm11, %v1784_v44, %v1514_v36  ;;  %3375 = vmatpush.msrb.mxu1 %v3342_v13  ;;  %v1725_v12 = vsel %vm1694_vm8, %v1692_v63, %v6792_v3  ;;  %v3339_v36 = vld [vmem:[%s7825_s3 + $0x28] sm:$0xff]  ;;  %v3334_v44 = vld [vmem:[%s7825_s3] sm:$0xff] }
 0x34a   : > { %v2581_v59 = vadd.f32 %v2580_v38, %v2579_v33  ;;  %v2588_v34 = vadd.f32 %v2587_v62, %v2586_v18  ;;  %v2595_v25 = vadd.f32 %v2594_v14, %v2593_v20  ;;  %v2708_v50 = vadd.f32 %v6786_v2, %v2574_v11  ;;  %4465 = vmatmul.msk.f32.gmra.mxu1 %vm1828_vm12, %v1817_v60  ;;  %v3337_v33 = vld [vmem:[%s7825_s3 + $0x18] sm:$0xff]  ;;  %v1128_v18 = vpop.permute.xlu2 %1127  ;;  %v3336_v20 = vld [vmem:[%s7825_s3 + $0x10] sm:$0xff] }
 0x34b   : > { %3376 = vmatpush.msrb.mxu1 %v3341_v51  ;;  %v6896_v24 = vpop.f32.mrf.mxu0 }
 0x34c   : > { %v2709_v0 = vadd.f32 %v6786_v2, %v2581_v59  ;;  %v2710_v54 = vadd.f32 %v6786_v2, %v2588_v34  ;;  %v2711_v31 = vadd.f32 %v6786_v2, %v2595_v25  ;;  %v2772_v45 = vmax.f32 %v2708_v50, 0.0  ;;  %v1325_v23 = vpop.permute.xlu1 %1324 }
 0x34d   : > { %v1427_v53 = vpop.permute.xlu0 %1426  ;;  %v1758_v35 = vsel %vm7979_vm9, %v1725_v12, %v1325_v23  ;;  %3377 = vmatpush.msrb.mxu1 %v3340_v22 }
 0x34e   : > { %v2773_v16 = vmax.f32 %v2709_v0, 0.0  ;;  %v2774_v30 = vmax.f32 %v2710_v54, 0.0  ;;  %v2775_v29 = vmax.f32 %v2711_v31, 0.0  ;;  %v2965_v9 = vrot.slane %v2772_v45, 4 }
 0x34f   : > { %v1791_v56 = vsel %vm1760_vm10, %v1758_v35, %v1427_v53  ;;  %3378 = vmatpush.msrb.mxu1 %v3339_v36 }
 0x350   : > { %v2966_v37 = vsel %vm7976_vm14, %v2965_v9, %v2964_v46  ;;  %v2967_v19 = vrot.slane %v2773_v16, 3  ;;  %v2969_v58 = vrot.slane %v2774_v30, 2  ;;  %v2971_v32 = vrot.slane %v2775_v29, 1 }
 0x351   : > { %vm7980_vm14 = vcmask 1047559   ;;  %3379 = vmatpush.msrb.mxu1 %v3338_v41  ;;  %v2067_v46 = vsel %vm2042_vm13, %v1994_v55, 0.0 }
 0x352   : > { %v2968_v17 = vsel %vm7977_vm15, %v2967_v19, %v2966_v37  ;;  %v1429_v62 = vpop.permute.xlu2 %1428 }
 0x353   : > { %v2970_v15 = vsel %vm7978_vm3, %v2969_v58, %v2968_v17  ;;  %3380 = vmatpush.msrb.mxu1 %v3337_v33 }
 0x354   : > { %v2972_v49 = vsel %vm7980_vm14, %v2971_v32, %v2970_v15  ;;  %v1528_v40 = vpop.permute.xlu1 %1527 }
 0x355   : > { %3002 = vst.msk [vmem:[#allocation3 + $0x71] sm:$0xff] %vm2042_vm13, %v2972_v49  ;;  %v1824_v3 = vsel %vm1793_vm11, %v1791_v56, %v1528_v40  ;;  %v928_v1 = vpop.permute.xlu0 %927  ;;  %3381 = vmatpush.msrb.mxu1 %v3336_v20 }
 0x356   : > { %4472 = vmatmul.msk.f32.gmra.mxu3 %vm1828_vm12, %v1824_v3  ;;  %v1627_v11 = vsel %vm1595_vm5, %v1594_v7, %v928_v1  ;;  %vm3280_vm5 = vcmask 261120  }
 0x357   : > { %3382 = vmatpush.msrb.mxu1 %v3335_v48 }
 0x359   : > { %3383 = vmatpush.msrb.mxu1 %v3334_v44 }
 0x35a   : > { %v4554_v0 = vpop.permute.xlu2 %4553 }
 0x35b   : > { %v4555_v27 = vunpack.i.l.bf16 %v4554_v0  ;;  %v4556_v12 = vunpack.i.h.bf16 %v4554_v0 }
 0x35c   : > { %v1026_v28 = vpop.permute.xlu1 %1025  ;;  %v2000_v45 = vpop.f32.mrf.mxu0 }
 0x35d   : > { %v1229_v8 = vpop.permute.xlu0 %1228  ;;  %v1660_v38 = vsel %vm1628_vm6, %v1627_v11, %v1026_v28  ;;  %vm3289_vm6 = vcmask 392192   ;;  %v2068_v30 = vsel %vm2042_vm13, %v2000_v45, 0.0 }
 0x35e   : > { %v1693_v14 = vsel %vm1661_vm7, %v1660_v38, %v1128_v18  ;;  %vm3298_vm7 = vcmask 523264   ;;  %v2069_v19 = vadd.f32 %v2068_v30, %v2067_v46 }
 0x35f   : > { %v1726_v60 = vsel %vm1694_vm8, %v1693_v14, %v1229_v8  ;;  %vm3307_vm8 = vcmask 654336  }
 0x360   : > { %v2131_v35 = vrot.slane %v2069_v19, 2  ;;  %v2132_v22 = vrot.slane %v2069_v19, 4  ;;  %v2133_v7 = vrot.slane %v2069_v19, 6 }
 0x362   : > { %v4569_v16 = vpop.permute.xlu2 %4568 }
 0x363   : > { %v4570_v37 = vunpack.i.l.bf16 %v4569_v16  ;;  %v4571_v1 = vunpack.i.h.bf16 %v4569_v16 }
 0x364   : > { %v1327_v5 = vpop.permute.xlu1 %1326 }
 0x365   : > { %v1530_v59 = vpop.permute.xlu0 %1529  ;;  %v1759_v34 = vsel %vm7981_vm0, %v1726_v60, %v1327_v5 }
 0x366   : > { %v1792_v25 = vsel %vm1760_vm10, %v1759_v34, %v1429_v62  ;;  %vm3316_vm10 = vcmask 785408   ;;  %v2006_v34 = vpop.f32.mrf.mxu1 }
 0x367   : > { %v1825_v50 = vsel %vm1793_vm11, %v1792_v25, %v1530_v59  ;;  %vm7880_vm11 = vcmask 916480  }
 0x368   : > { %4473 = vmatmul.msk.f32.gmra.mxu3 %vm1828_vm12, %v1825_v50  ;;  %vm7982_vm12 = vcmask 123904  }
 0x369   : > { %v2435_v36 = vsel %vm7982_vm12, %v2131_v35, 0.0  ;;  %vm7983_vm15 = vmmov %vm7982_vm12 }
 0x36a   : > { %v2436_v18 = vrot.slane %v2435_v36, 4  ;;  %v2442_v20 = vsel %vm7983_vm15, %v2132_v22, 0.0  ;;  %vm7984_vm3 = vmmov %vm7982_vm12 }
 0x36b   : > { %v2428_v8 = vsel %vm7984_vm3, %v2069_v19, 0.0  ;;  %v2443_v48 = vrot.slane %v2442_v20, 4  ;;  %vm7985_vm9 = vmmov %vm7984_vm3 }
 0x36c   : > { %v4549_v6 = vpop.permute.xlu1 %4548  ;;  %v2437_v44 = vadd.f32 %v2436_v18, %v2435_v36  ;;  %v2429_v11 = vrot.slane %v2428_v8, 4  ;;  %v2449_v38 = vsel %vm7985_vm9, %v2133_v7, 0.0  ;;  %vm7986_vm14 = vmmov %vm7984_vm3 }
 0x36d   : > { %v4559_v26 = vpop.permute.xlu0 %4558  ;;  %v4550_v54 = vunpack.i.l.bf16 %v4549_v6  ;;  %v4551_v9 = vunpack.i.h.bf16 %v4549_v6  ;;  %v2444_v62 = vadd.f32 %v2443_v48, %v2442_v20  ;;  %v2450_v55 = vrot.slane %v2449_v38, 4  ;;  %vm7987_vm0 = vmmov %vm7984_vm3 }
 0x36e   : > { %v4560_v39 = vunpack.i.l.bf16 %v4559_v26  ;;  %v4561_v13 = vunpack.i.h.bf16 %v4559_v26  ;;  %v2438_v14 = vrot.slane %v2437_v44, 2  ;;  %v2430_v5 = vadd.f32 %v2429_v11, %v2428_v8  ;;  %vm7988_vm12 = vmmov %vm7987_vm0 }
 0x36f   : > { %v3272_v23 = vsel %vm2042_vm13, %v6654_v43, %v4550_v54  ;;  %v3273_v21 = vsel %vm2042_vm13, %v6656_v4, %v4551_v9  ;;  %v2445_v60 = vrot.slane %v2444_v62, 2  ;;  %v2451_v50 = vadd.f32 %v2450_v55, %v2449_v38  ;;  %vm7989_vm15 = vmmov %vm7987_vm0 }
 0x370   : > { %v3281_v29 = vsel %vm3280_vm5, %v3272_v23, %v4555_v27  ;;  %v3282_v56 = vsel %vm3280_vm5, %v3273_v21, %v4556_v12  ;;  %v2439_v59 = vadd.f32 %v2438_v14, %v2437_v44  ;;  %v2431_v25 = vrot.slane %v2430_v5, 2  ;;  %v6920_v27 = vpop.f32.mrf.mxu1  ;;  %vm7991_vm9 = vmmov %vm7987_vm0 }
 0x371   : > { %v3290_v10 = vsel %vm3289_vm6, %v3281_v29, %v4560_v39  ;;  %v3291_v40 = vsel %vm3289_vm6, %v3282_v56, %v4561_v13  ;;  %v2446_v6 = vadd.f32 %v2445_v60, %v2444_v62  ;;  %v2452_v54 = vrot.slane %v2451_v50, 2 }
 0x372   : > { %v2440_v26 = vrot.slane %v2439_v59, 1  ;;  %v2432_v0 = vadd.f32 %v2431_v25, %v2430_v5  ;;  %v2073_v56 = vsel %vm2042_vm13, %v2006_v34, 0.0  ;;  %vm7990_vm3 = vcmask 1041409  }
 0x373   : > { %v2453_v39 = vadd.f32 %v2452_v54, %v2451_v50 }
 0x374   : > { %v4564_v31 = vpop.permute.xlu1 %4563  ;;  %v2441_v45 = vadd.f32 %v2440_v26, %v2439_v59  ;;  %v2433_v23 = vrot.slane %v2432_v0, 1 }
 0x375   : > { %v4565_v42 = vunpack.i.l.bf16 %v4564_v31  ;;  %v4574_v53 = vpop.permute.xlu0 %4573  ;;  %v4566_v51 = vunpack.i.h.bf16 %v4564_v31  ;;  %v2447_v31 = vrot.slane %v2446_v6, 1  ;;  %v2454_v46 = vrot.slane %v2453_v39, 1 }
 0x376   : > { %v4575_v43 = vunpack.i.l.bf16 %v4574_v53  ;;  %v4576_v4 = vunpack.i.h.bf16 %v4574_v53  ;;  %v2070_v53 = vsel %vm2042_vm13, %v6896_v24, 0.0  ;;  %v2689_v29 = vadd.f32 %v6786_v2, %v2441_v45 }
 0x377   : > { %v3299_v63 = vsel %vm3298_vm7, %v3290_v10, %v4565_v42  ;;  %v3300_v3 = vsel %vm3298_vm7, %v3291_v40, %v4566_v51  ;;  %v2448_v16 = vadd.f32 %v2447_v31, %v2446_v6  ;;  %v2434_v10 = vadd.f32 %v2433_v23, %v2432_v0 }
 0x378   : > { %v3308_v32 = vsel %vm3307_vm8, %v3299_v63, %v4570_v37  ;;  %v3309_v33 = vsel %vm3307_vm8, %v3300_v3, %v4571_v1  ;;  %v2753_v13 = vmax.f32 %v2689_v29, 0.0  ;;  %v2455_v40 = vadd.f32 %v2454_v46, %v2453_v39 }
 0x379   : > { %v3317_v15 = vsel %vm3316_vm10, %v3308_v32, %v4575_v43  ;;  %v3318_v28 = vsel %vm3316_vm10, %v3309_v33, %v4576_v4  ;;  %v2688_v22 = vadd.f32 %v6786_v2, %v2434_v10 }
 0x37a   : > { %v2931_v18 = vrot.slane %v2753_v13, 7  ;;  %v2691_v48 = vadd.f32 %v6786_v2, %v2455_v40 }
 0x37b   : > { %v2752_v44 = vmax.f32 %v2688_v22, 0.0 }
 0x37c   : > { %v4579_v58 = vpop.permute.xlu1 %4578  ;;  %v2755_v6 = vmax.f32 %v2691_v48, 0.0 }
 0x37d   : > { %v4580_v17 = vunpack.i.l.bf16 %v4579_v58  ;;  %v4581_v41 = vunpack.i.h.bf16 %v4579_v58  ;;  %v2690_v58 = vadd.f32 %v6786_v2, %v2448_v16  ;;  %v2932_v55 = vsel %vm7990_vm3, %v2931_v18, %v2752_v44 }
 0x37e   : > { %v2935_v29 = vrot.slane %v2755_v6, 5  ;;  %vm7995_vm3 = vcmask 1045509   ;;  %v2076_v6 = vsel %vm2042_vm13, %v6920_v27, 0.0 }
 0x37f   : > { %v3326_v49 = vsel %vm7880_vm11, %v3317_v15, %v4580_v17  ;;  %v3327_v52 = vsel %vm7880_vm11, %v3318_v28, %v4581_v41  ;;  %v2754_v33 = vmax.f32 %v2690_v58, 0.0 }
 0x380   : > { %3384 = vmatmul.f32.vlgmr.msrb.gmra.mxu1 %v3326_v49 }
 0x381   : > { %v2933_v60 = vrot.slane %v2754_v33, 6 }
 0x388   : > { %3387 = vmatmul.f32.gmra.mxu1 %v3327_v52 }
 0x39c   : > { %v2003_v42 = vpop.f32.mrf.mxu0 }
 0x39d   : > { %v2071_v30 = vsel %vm2042_vm13, %v2003_v42, 0.0 }
 0x39e   : > { %v2072_v9 = vadd.f32 %v2071_v30, %v2070_v53 }
 0x3a0   : > { %v2134_v63 = vrot.slane %v2072_v9, 2  ;;  %v2135_v43 = vrot.slane %v2072_v9, 4  ;;  %v2136_v37 = vrot.slane %v2072_v9, 6  ;;  %v2456_v19 = vsel %vm7986_vm14, %v2072_v9, 0.0 }
 0x3a1   : > { %v2457_v21 = vrot.slane %v2456_v19, 4  ;;  %vm7992_vm14 = vcmask 1042434  }
 0x3a2   : > { %v2463_v17 = vsel %vm7987_vm0, %v2134_v63, 0.0  ;;  %v2470_v24 = vsel %vm7988_vm12, %v2135_v43, 0.0  ;;  %v2477_v32 = vsel %vm7989_vm15, %v2136_v37, 0.0  ;;  %v2934_v39 = vsel %vm7992_vm14, %v2933_v60, %v2932_v55  ;;  %vm7994_vm15 = vmmov %vm7987_vm0 }
 0x3a3   : > { %v2458_v12 = vadd.f32 %v2457_v21, %v2456_v19  ;;  %v2464_v51 = vrot.slane %v2463_v17, 4  ;;  %v2471_v15 = vrot.slane %v2470_v24, 4  ;;  %v2478_v35 = vrot.slane %v2477_v32, 4  ;;  %v2012_v49 = vpop.f32.mrf.mxu1 }
 0x3a4   : > { %v2074_v3 = vsel %vm2042_vm13, %v2012_v49, 0.0  ;;  %v2936_v19 = vsel %vm2875_vm4, %v2935_v29, %v2934_v39  ;;  %vm7993_vm12 = vcmask 1044484   ;;  %vm7997_vm14 = vcmask 1047559  }
 0x3a5   : > { %v2459_v4 = vrot.slane %v2458_v12, 2  ;;  %v2465_v1 = vadd.f32 %v2464_v51, %v2463_v17  ;;  %v2472_v36 = vadd.f32 %v2471_v15, %v2470_v24  ;;  %v2479_v41 = vadd.f32 %v2478_v35, %v2477_v32 }
 0x3a6   : > { %v2075_v20 = vadd.f32 %v2074_v3, %v2073_v56 }
 0x3a7   : > { %v2460_v28 = vadd.f32 %v2459_v4, %v2458_v12  ;;  %v2466_v52 = vrot.slane %v2465_v1, 2  ;;  %v2473_v7 = vrot.slane %v2472_v36, 2  ;;  %v2480_v8 = vrot.slane %v2479_v41, 2 }
 0x3a8   : > { %v2137_v11 = vrot.slane %v2075_v20, 2  ;;  %v2138_v26 = vrot.slane %v2075_v20, 4  ;;  %v2139_v58 = vrot.slane %v2075_v20, 6  ;;  %v2484_v24 = vsel %vm7994_vm15, %v2075_v20, 0.0  ;;  %vm8001_vm15 = vmmov %vm7987_vm0 }
 0x3a9   : > { %v2461_v38 = vrot.slane %v2460_v28, 1  ;;  %v2467_v62 = vadd.f32 %v2466_v52, %v2465_v1  ;;  %v2474_v14 = vadd.f32 %v2473_v7, %v2472_v36  ;;  %v2481_v5 = vadd.f32 %v2480_v8, %v2479_v41 }
 0x3aa   : > { %v2491_v0 = vsel %vm7991_vm9, %v2137_v11, 0.0  ;;  %v2498_v10 = vsel %vm7987_vm0, %v2138_v26, 0.0  ;;  %vm7996_vm9 = vcmask 1046534   ;;  %v2485_v49 = vrot.slane %v2484_v24, 4 }
 0x3ab   : > { %v2462_v59 = vadd.f32 %v2461_v38, %v2460_v28  ;;  %v2468_v34 = vrot.slane %v2467_v62, 1  ;;  %v2475_v25 = vrot.slane %v2474_v14, 1  ;;  %v2482_v50 = vrot.slane %v2481_v5, 1 }
 0x3ac   : > { %v2492_v9 = vrot.slane %v2491_v0, 4  ;;  %v2499_v32 = vrot.slane %v2498_v10, 4  ;;  %v2505_v40 = vsel %vm7987_vm0, %v2139_v58, 0.0  ;;  %v2486_v4 = vadd.f32 %v2485_v49, %v2484_v24 }
 0x3ad   : > { %v2469_v54 = vadd.f32 %v2468_v34, %v2467_v62  ;;  %v2476_v31 = vadd.f32 %v2475_v25, %v2474_v14  ;;  %v2483_v45 = vadd.f32 %v2482_v50, %v2481_v5  ;;  %v2692_v23 = vadd.f32 %v6786_v2, %v2462_v59 }
 0x3ae   : > { %v2493_v15 = vadd.f32 %v2492_v9, %v2491_v0  ;;  %v2500_v22 = vadd.f32 %v2499_v32, %v2498_v10  ;;  %v2506_v1 = vrot.slane %v2505_v40, 4  ;;  %v2487_v33 = vrot.slane %v2486_v4, 2 }
 0x3af   : > { %v2693_v42 = vadd.f32 %v6786_v2, %v2469_v54  ;;  %v2694_v53 = vadd.f32 %v6786_v2, %v2476_v31  ;;  %v2695_v16 = vadd.f32 %v6786_v2, %v2483_v45  ;;  %v2756_v30 = vmax.f32 %v2692_v23, 0.0  ;;  %v2030_v31 = vpop.f32.mrf.mxu3 }
 0x3b0   : > { %v2494_v3 = vrot.slane %v2493_v15, 2  ;;  %v2501_v36 = vrot.slane %v2500_v22, 2  ;;  %v2507_v18 = vadd.f32 %v2506_v1, %v2505_v40  ;;  %v2488_v62 = vadd.f32 %v2487_v33, %v2486_v4 }
 0x3b1   : > { %v2757_v46 = vmax.f32 %v2693_v42, 0.0  ;;  %v2758_v63 = vmax.f32 %v2694_v53, 0.0  ;;  %v2759_v43 = vmax.f32 %v2695_v16, 0.0  ;;  %v2937_v37 = vrot.slane %v2756_v30, 4 }
 0x3b2   : > { %v2495_v41 = vadd.f32 %v2494_v3, %v2493_v15  ;;  %v2502_v52 = vadd.f32 %v2501_v36, %v2500_v22  ;;  %v2508_v14 = vrot.slane %v2507_v18, 2  ;;  %v2489_v34 = vrot.slane %v2488_v62, 1 }
 0x3b3   : > { %v2938_v21 = vsel %vm7993_vm12, %v2937_v37, %v2936_v19  ;;  %v2939_v13 = vrot.slane %v2757_v46, 3  ;;  %v2941_v17 = vrot.slane %v2758_v63, 2  ;;  %v2943_v51 = vrot.slane %v2759_v43, 1  ;;  %vm8000_vm12 = vmmov %vm7987_vm0 }
 0x3b4   : > { %v2496_v44 = vrot.slane %v2495_v41, 1  ;;  %v2503_v60 = vrot.slane %v2502_v52, 1  ;;  %v2509_v25 = vadd.f32 %v2508_v14, %v2507_v18  ;;  %v2490_v23 = vadd.f32 %v2489_v34, %v2488_v62 }
 0x3b5   : > { %v2940_v12 = vsel %vm7995_vm3, %v2939_v13, %v2938_v21  ;;  %vm8002_vm3 = vmmov %vm7987_vm0 }
 0x3b6   : > { %v2942_v35 = vsel %vm7996_vm9, %v2941_v17, %v2940_v12  ;;  %v2497_v59 = vadd.f32 %v2496_v44, %v2495_v41  ;;  %v2504_v26 = vadd.f32 %v2503_v60, %v2502_v52  ;;  %v2510_v39 = vrot.slane %v2509_v25, 1  ;;  %vm8003_vm9 = vmmov %vm7987_vm0 }
 0x3b7   : > { %v2944_v56 = vsel %vm7997_vm14, %v2943_v51, %v2942_v35  ;;  %v2696_v21 = vadd.f32 %v6786_v2, %v2490_v23  ;;  %v6983_v15 = vpop.f32.mrf.mxu3  ;;  %vm8004_vm14 = vcmask 1041409   ;;  %vm8005_vm0 = vcmask 1042434  }
 0x3b8   : > { %3000 = vst.msk [vmem:[#allocation3 + $0x51] sm:$0xff] %vm2042_vm13, %v2944_v56  ;;  %v2698_v27 = vadd.f32 %v6786_v2, %v2504_v26  ;;  %v2511_v58 = vadd.f32 %v2510_v39, %v2509_v25 }
 0x3b9   : > { %v2760_v3 = vmax.f32 %v2696_v21, 0.0 }
 0x3ba   : > { %v2762_v12 = vmax.f32 %v2698_v27, 0.0  ;;  %v2699_v22 = vadd.f32 %v6786_v2, %v2511_v58 }
 0x3bc   : > { %v2947_v18 = vrot.slane %v2762_v12, 6 }
 0x3bf   : > { %v6951_v20 = vld [vmem:[#allocation3 + $0x50] sm:$0xff]  ;;  %v3015_v28 = vld [vmem:[#allocation3 + $0x58] sm:$0x3] }
 0x3c0   : > { %v4607_v7 = vpack.i.bf16 %v6951_v20, %v6606_v57  ;;  %v3056_v8 = vrot.slane %v3015_v28, 1  ;;  %v3103_v48 = vrot.slane %v6951_v20, 2  ;;  %v3104_v11 = vrot.slane %v3015_v28, 2 }
 0x3c1   : > { %v3055_v38 = vrot.slane %v6951_v20, 1 }
 0x3c2   : > { %4608 = vrot.lane.b32.xlu1 %v4607_v7, %s4779_s25  ;;  %v6959_v5 = vsel %vm784_vm2, %v3103_v48, %v3104_v11  ;;  %v2763_v48 = vmax.f32 %v2699_v22, 0.0 }
 0x3c3   : > { %v6962_v55 = vsel %vm607_vm1, %v3055_v38, %v3056_v8  ;;  %4477 = vmatmul.msk.f32.gmra.mxu2 %vm2042_vm13, %v6959_v5  ;;  %v4622_v0 = vpack.i.bf16 %v6959_v5, %v6620_v47 }
 0x3c4   : > { %v4617_v57 = vpack.i.bf16 %v6962_v55, %v6714_v61  ;;  %v2697_v61 = vadd.f32 %v6786_v2, %v2497_v59 }
 0x3c6   : > { %4618 = vrot.lane.b32.xlu0 %v4617_v57, %s4775_s22  ;;  %4613 = vrot.lane.b32.xlu2 %v4617_v57, %s7998_s12  ;;  %v2761_v9 = vmax.f32 %v2697_v61, 0.0 }
 0x3c7   : > { %v2015_v50 = vpop.f32.mrf.mxu1 }
 0x3c8   : > { %v2077_v54 = vsel %vm2042_vm13, %v2015_v50, 0.0  ;;  %v2945_v51 = vrot.slane %v2761_v9, 7  ;;  %v2085_v50 = vsel %vm2042_vm13, %v2030_v31, 0.0 }
 0x3c9   : > { %v2078_v45 = vadd.f32 %v2077_v54, %v2076_v6  ;;  %v2949_v6 = vrot.slane %v2763_v48, 5 }
 0x3ca   : > { %4623 = vrot.lane.b32.xlu1 %v4622_v0, %s7999_s30  ;;  %v2946_v33 = vsel %vm8004_vm14, %v2945_v51, %v2760_v3 }
 0x3cb   : > { %v2140_v42 = vrot.slane %v2078_v45, 2  ;;  %v2141_v53 = vrot.slane %v2078_v45, 4  ;;  %v2142_v16 = vrot.slane %v2078_v45, 6  ;;  %v2512_v30 = vsel %vm8000_vm12, %v2078_v45, 0.0 }
 0x3cc   : > { %v2513_v29 = vrot.slane %v2512_v30, 4  ;;  %v2948_v14 = vsel %vm8005_vm0, %v2947_v18, %v2946_v33  ;;  %vm8006_vm12 = vcmask 1044484  }
 0x3cd   : > { %v2519_v47 = vsel %vm8001_vm15, %v2140_v42, 0.0  ;;  %v2526_v10 = vsel %vm8002_vm3, %v2141_v53, 0.0  ;;  %v2533_v46 = vsel %vm8003_vm9, %v2142_v16, 0.0  ;;  %v2950_v23 = vsel %vm2875_vm4, %v2949_v6, %v2948_v14  ;;  %vm8007_vm15 = vmmov %vm8002_vm3 }
 0x3ce   : > { %v2514_v63 = vadd.f32 %v2513_v29, %v2512_v30  ;;  %v2520_v43 = vrot.slane %v2519_v47, 4  ;;  %v2527_v37 = vrot.slane %v2526_v10, 4  ;;  %v2534_v19 = vrot.slane %v2533_v46, 4  ;;  %vm8010_vm14 = vmmov %vm8007_vm15 }
 0x3cf   : > { %vm8008_vm3 = vcmask 1045509   ;;  %vm8009_vm9 = vcmask 1046534   ;;  %vm8011_vm0 = vmmov %vm8010_vm14 }
 0x3d0   : > { %v2515_v13 = vrot.slane %v2514_v63, 2  ;;  %v2521_v17 = vadd.f32 %v2520_v43, %v2519_v47  ;;  %v2528_v24 = vadd.f32 %v2527_v37, %v2526_v10  ;;  %v2535_v32 = vadd.f32 %v2534_v19, %v2533_v46  ;;  %vm8012_vm11 = vmmov %vm8011_vm0 }
 0x3d2   : > { %v2516_v35 = vadd.f32 %v2515_v13, %v2514_v63  ;;  %v2522_v49 = vrot.slane %v2521_v17, 2  ;;  %v2529_v56 = vrot.slane %v2528_v24, 2  ;;  %v2536_v40 = vrot.slane %v2535_v32, 2 }
 0x3d4   : > { %v2517_v4 = vrot.slane %v2516_v35, 1  ;;  %v2523_v1 = vadd.f32 %v2522_v49, %v2521_v17  ;;  %v2530_v36 = vadd.f32 %v2529_v56, %v2528_v24  ;;  %v2537_v41 = vadd.f32 %v2536_v40, %v2535_v32  ;;  %v7004_v40 = vld [vmem:[#allocation3 + $0x70] sm:$0xff] }
 0x3d5   : > { %v3109_v48 = vrot.slane %v7004_v40, 2 }
 0x3d6   : > { %v2518_v28 = vadd.f32 %v2517_v4, %v2516_v35  ;;  %v2524_v52 = vrot.slane %v2523_v1, 1  ;;  %v2531_v7 = vrot.slane %v2530_v36, 1  ;;  %v2538_v8 = vrot.slane %v2537_v41, 1 }
 0x3d8   : > { %v2525_v44 = vadd.f32 %v2524_v52, %v2523_v1  ;;  %v2532_v11 = vadd.f32 %v2531_v7, %v2530_v36  ;;  %v2539_v38 = vadd.f32 %v2538_v8, %v2537_v41  ;;  %v2700_v62 = vadd.f32 %v6786_v2, %v2518_v28  ;;  %v3019_v36 = vld [vmem:[#allocation3 + $0x78] sm:$0x3] }
 0x3d9   : > { %v2036_v60 = vpop.f32.mrf.mxu3  ;;  %v3062_v6 = vrot.slane %v3019_v36, 1 }
 0x3da   : > { %v2701_v57 = vadd.f32 %v6786_v2, %v2525_v44  ;;  %v2702_v59 = vadd.f32 %v6786_v2, %v2532_v11  ;;  %v2703_v34 = vadd.f32 %v6786_v2, %v2539_v38  ;;  %v2764_v25 = vmax.f32 %v2700_v62, 0.0 }
 0x3db   : > { %v2086_v26 = vsel %vm2042_vm13, %v2036_v60, 0.0  ;;  %v3110_v44 = vrot.slane %v3019_v36, 2  ;;  %v2088_v11 = vsel %vm2042_vm13, %v6983_v15, 0.0 }
 0x3dc   : > { %v2765_v0 = vmax.f32 %v2701_v57, 0.0  ;;  %v2766_v54 = vmax.f32 %v2702_v59, 0.0  ;;  %v2767_v61 = vmax.f32 %v2703_v34, 0.0  ;;  %v2951_v45 = vrot.slane %v2764_v25, 4 }
 0x3dd   : > { %v2087_v39 = vadd.f32 %v2086_v26, %v2085_v50  ;;  %v3061_v26 = vrot.slane %v7004_v40, 1 }
 0x3de   : > { %v2952_v42 = vsel %vm8006_vm12, %v2951_v45, %v2950_v23  ;;  %v2953_v53 = vrot.slane %v2765_v0, 3  ;;  %v2955_v16 = vrot.slane %v2766_v54, 2  ;;  %v2957_v47 = vrot.slane %v2767_v61, 1 }
 0x3df   : > { %v2149_v30 = vrot.slane %v2087_v39, 2  ;;  %v2150_v27 = vrot.slane %v2087_v39, 4  ;;  %v2151_v29 = vrot.slane %v2087_v39, 6  ;;  %v2596_v9 = vsel %vm8007_vm15, %v2087_v39, 0.0  ;;  %vm8018_vm15 = vmmov %vm8011_vm0 }
 0x3e0   : > { %v2954_v31 = vsel %vm8008_vm3, %v2953_v53, %v2952_v42  ;;  %v2597_v10 = vrot.slane %v2596_v9, 4  ;;  %vm8013_vm12 = vcmask 1047559   ;;  %v7029_v54 = vsel %vm784_vm2, %v3109_v48, %v3110_v44  ;;  %vm8019_vm3 = vmmov %vm8011_vm0 }
 0x3e1   : > { %v2956_v46 = vsel %vm8009_vm9, %v2955_v16, %v2954_v31  ;;  %v2603_v63 = vsel %vm8010_vm14, %v2149_v30, 0.0  ;;  %v2610_v43 = vsel %vm8011_vm0, %v2150_v27, 0.0  ;;  %v2617_v37 = vsel %vm8012_vm11, %v2151_v29, 0.0  ;;  %vm8017_vm11 = vmmov %vm8011_vm0 }
 0x3e2   : > { %v2958_v19 = vsel %vm8013_vm12, %v2957_v47, %v2956_v46  ;;  %v2604_v58 = vrot.slane %v2603_v63, 4  ;;  %v2611_v21 = vrot.slane %v2610_v43, 4  ;;  %v2618_v13 = vrot.slane %v2617_v37, 4  ;;  %vm8020_vm9 = vmmov %vm8011_vm0 }
 0x3e3   : > { %3001 = vst.msk [vmem:[#allocation3 + $0x61] sm:$0xff] %vm2042_vm13, %v2958_v19  ;;  %v2598_v32 = vadd.f32 %v2597_v10, %v2596_v9  ;;  %v7039_v29 = vsel %vm607_vm1, %v3061_v26, %v3062_v6  ;;  %vm3639_vm14 = vcmask 259072   ;;  %vm8022_vm0 = vcmask 1041409  }
 0x3e4   : > { %v2605_v17 = vadd.f32 %v2604_v58, %v2603_v63  ;;  %v2612_v24 = vadd.f32 %v2611_v21, %v2610_v43  ;;  %v2619_v35 = vadd.f32 %v2618_v13, %v2617_v37  ;;  %vm8023_vm12 = vcmask 1042434  }
 0x3e5   : > { %v2599_v56 = vrot.slane %v2598_v32, 2 }
 0x3e6   : > { %v2606_v12 = vrot.slane %v2605_v17, 2  ;;  %v2613_v51 = vrot.slane %v2612_v24, 2  ;;  %v2620_v3 = vrot.slane %v2619_v35, 2 }
 0x3e7   : > { %v2600_v7 = vadd.f32 %v2599_v56, %v2598_v32 }
 0x3e8   : > { %v2607_v49 = vadd.f32 %v2606_v12, %v2605_v17  ;;  %v2614_v22 = vadd.f32 %v2613_v51, %v2612_v24  ;;  %v2621_v62 = vadd.f32 %v2620_v3, %v2619_v35 }
 0x3e9   : > { %v2601_v0 = vrot.slane %v2600_v7, 1 }
 0x3ea   : > { %v7006_v4 = vld [vmem:[#allocation3 + $0x60] sm:$0xff]  ;;  %v3017_v1 = vld [vmem:[#allocation3 + $0x68] sm:$0x3]  ;;  %v2608_v41 = vrot.slane %v2607_v49, 1  ;;  %v2615_v38 = vrot.slane %v2614_v22, 1  ;;  %v2622_v45 = vrot.slane %v2621_v62, 1 }
 0x3eb   : > { %v4627_v33 = vpack.i.bf16 %v7006_v4, %v6951_v20  ;;  %v3059_v18 = vrot.slane %v3017_v1, 1  ;;  %v3106_v28 = vrot.slane %v7006_v4, 2  ;;  %v3107_v52 = vrot.slane %v3017_v1, 2  ;;  %v2039_v14 = vpop.f32.mrf.mxu3 }
 0x3ec   : > { %v3058_v8 = vrot.slane %v7006_v4, 1  ;;  %v2609_v57 = vadd.f32 %v2608_v41, %v2607_v49  ;;  %v2089_v59 = vsel %vm2042_vm13, %v2039_v14, 0.0  ;;  %v2616_v61 = vadd.f32 %v2615_v38, %v2614_v22 }
 0x3ed   : > { %4628 = vrot.lane.b32.xlu2 %v4627_v33, %s8014_s24  ;;  %v7017_v60 = vsel %vm784_vm2, %v3106_v28, %v3107_v52  ;;  %v2090_v50 = vadd.f32 %v2089_v59, %v2088_v11  ;;  %v4642_v53 = vpack.i.bf16 %v7004_v40, %v7006_v4  ;;  %v2602_v9 = vadd.f32 %v2601_v0, %v2600_v7  ;;  %v3426_v28 = vpop.f32.mrf.mxu2 }
 0x3ee   : > { %v4637_v34 = vpack.i.bf16 %v7017_v60, %v6959_v5  ;;  %4478 = vmatmul.msk.f32.gmra.mxu2 %vm2042_vm13, %v7017_v60  ;;  %v3060_v25 = vsel %vm607_vm1, %v3058_v8, %v3059_v18  ;;  %v2713_v39 = vadd.f32 %v6786_v2, %v2609_v57  ;;  %v2623_v46 = vadd.f32 %v2622_v45, %v2621_v62 }
 0x3ef   : > { %v4632_v15 = vpack.i.bf16 %v3060_v25, %v6962_v55  ;;  %v2152_v5 = vrot.slane %v2090_v50, 2  ;;  %v2153_v23 = vrot.slane %v2090_v50, 4  ;;  %v2154_v42 = vrot.slane %v2090_v50, 6 }
 0x3f0   : > { %4638 = vrot.lane.b32.xlu1 %v4637_v34, %s8015_s15  ;;  %v2624_v55 = vsel %vm8017_vm11, %v2090_v50, 0.0  ;;  %v2714_v63 = vadd.f32 %v6786_v2, %v2616_v61  ;;  %v2777_v19 = vmax.f32 %v2713_v39, 0.0  ;;  %v4652_v13 = vpack.i.bf16 %v7039_v29, %v3060_v25  ;;  %v4697_v34 = vld [vmem:[%s7824_s2] ss:$0 sm:$0xff] }
 0x3f1   : > { %4633 = vrot.lane.b32.xlu0 %v4632_v15, %s8016_s29  ;;  %v2625_v16 = vrot.slane %v2624_v55, 4  ;;  %v2631_v30 = vsel %vm8018_vm15, %v2152_v5, 0.0  ;;  %v2638_v27 = vsel %vm8019_vm3, %v2153_v23, 0.0  ;;  %v2645_v10 = vsel %vm8020_vm9, %v2154_v42, 0.0 }
 0x3f2   : > { %v2632_v31 = vrot.slane %v2631_v30, 4  ;;  %v2639_v47 = vrot.slane %v2638_v27, 4  ;;  %v2646_v37 = vrot.slane %v2645_v10, 4  ;;  %v2712_v32 = vadd.f32 %v6786_v2, %v2602_v9 }
 0x3f3   : > { %v2626_v43 = vadd.f32 %v2625_v16, %v2624_v55  ;;  %v2715_v35 = vadd.f32 %v6786_v2, %v2623_v46  ;;  %v2778_v49 = vmax.f32 %v2714_v63, 0.0  ;;  %v2973_v3 = vrot.slane %v2777_v19, 7 }
 0x3f4   : > { %v2633_v58 = vadd.f32 %v2632_v31, %v2631_v30  ;;  %v2640_v21 = vadd.f32 %v2639_v47, %v2638_v27  ;;  %v2647_v24 = vadd.f32 %v2646_v37, %v2645_v10  ;;  %v4657_v41 = vpack.i.bf16 %v7029_v54, %v7017_v60 }
 0x3f5   : > { %4643 = vrot.lane.b32.xlu2 %v4642_v53, %s4779_s25  ;;  %v2627_v17 = vrot.slane %v2626_v43, 2  ;;  %v2776_v52 = vmax.f32 %v2712_v32, 0.0  ;;  %v8021_v2 = vmov 0.0   ;;  %v2975_v44 = vrot.slane %v2778_v49, 6  ;;  %v3429_v55 = vpop.f32.mrf.mxu2 }
 0x3f6   : > { %4479 = vmatmul.msk.f32.gmra.mxu2 %vm2042_vm13, %v7029_v54  ;;  %v2634_v12 = vrot.slane %v2633_v58, 2  ;;  %v2641_v51 = vrot.slane %v2640_v21, 2  ;;  %v2648_v22 = vrot.slane %v2647_v24, 2  ;;  %3641 = vst.msk [vmem:[#allocation4 + $0x8] sm:$0x3f] %vm3639_vm14, %v8021_v2  ;;  %v2779_v62 = vmax.f32 %v2715_v35, 0.0 }
 0x3f7   : > { %v2628_v56 = vadd.f32 %v2627_v17, %v2626_v43  ;;  %3640 = vst.msk [vmem:[#allocation4] sm:$0x3f] %vm3639_vm14, %v8021_v2  ;;  %v2974_v14 = vsel %vm8022_vm0, %v2973_v3, %v2776_v52  ;;  %vm8024_vm11 = vcmask 1044484   ;;  %vm8025_vm15 = vcmask 1045509  }
 0x3f8   : > { %4653 = vrot.lane.b32.xlu1 %v4652_v13, %s4775_s22  ;;  %v2635_v1 = vadd.f32 %v2634_v12, %v2633_v58  ;;  %v2642_v36 = vadd.f32 %v2641_v51, %v2640_v21  ;;  %v2649_v18 = vadd.f32 %v2648_v22, %v2647_v24  ;;  %3642 = vst.msk [vmem:[#allocation4 + $0x10] sm:$0x3f] %vm3639_vm14, %v8021_v2  ;;  %v2977_v61 = vrot.slane %v2779_v62, 5 }
 0x3f9   : > { %4648 = vrot.lane.b32.xlu0 %v4652_v13, %s7998_s12  ;;  %v2629_v33 = vrot.slane %v2628_v56, 1  ;;  %3643 = vst.msk [vmem:[#allocation4 + $0x18] sm:$0x3f] %vm3639_vm14, %v8021_v2  ;;  %v2976_v6 = vsel %vm8023_vm12, %v2975_v44, %v2974_v14  ;;  %vm8026_vm3 = vcmask 1046534   ;;  %vm3490_vm9 = vcmask 254976  }
 0x3fa   : > { %v2636_v7 = vrot.slane %v2635_v1, 1  ;;  %v2643_v8 = vrot.slane %v2642_v36, 1  ;;  %v2650_v38 = vrot.slane %v2649_v18, 1  ;;  %3644 = vst.msk [vmem:[#allocation4 + $0x20] sm:$0x3f] %vm3639_vm14, %v8021_v2  ;;  %v2978_v53 = vsel %vm2875_vm4, %v2977_v61, %v2976_v6 }
 0x3fb   : > { %v2630_v11 = vadd.f32 %v2629_v33, %v2628_v56  ;;  %3645 = vst.msk [vmem:[#allocation4 + $0x28] sm:$0x3f] %vm3639_vm14, %v8021_v2  ;;  %vm8027_vm14 = vcmask 1047559   ;;  %v7091_v6 = vld [vmem:[%s7826_s4] ss:$0 sm:$0xff]  ;;  %vm3691_vm12 = vcmask 257024  }
 0x3fc   : > { %v2637_v60 = vadd.f32 %v2636_v7, %v2635_v1  ;;  %v2644_v57 = vadd.f32 %v2643_v8, %v2642_v36  ;;  %v2651_v59 = vadd.f32 %v2650_v38, %v2649_v18 }
 0x3fd   : > { %v3385_v48 = vpop.f32.mrf.mxu1  ;;  %4658 = vrot.lane.b32.xlu2 %v4657_v41, %s7999_s30  ;;  %v2716_v25 = vadd.f32 %v4697_v34, %v2630_v11 }
 0x3fe   : > { %v2717_v50 = vadd.f32 %v4697_v34, %v2637_v60  ;;  %v2718_v15 = vadd.f32 %v4697_v34, %v2644_v57  ;;  %v2719_v26 = vadd.f32 %v4697_v34, %v2651_v59  ;;  %v3427_v42 = vadd.f32 %v3426_v28, %v3385_v48 }
 0x3ff   : > { %v2780_v0 = vmax.f32 %v2716_v25, 0.0 }
 0x400   : > { %v2781_v45 = vmax.f32 %v2717_v50, 0.0  ;;  %v2782_v5 = vmax.f32 %v2718_v15, 0.0  ;;  %v2783_v23 = vmax.f32 %v2719_v26, 0.0  ;;  %v3450_v63 = vsel %vm3280_vm5, %v3427_v42, 0.0 }
 0x401   : > { %v2979_v39 = vrot.slane %v2780_v0, 4 }
 0x402   : > { %v2981_v16 = vrot.slane %v2781_v45, 3  ;;  %v2983_v30 = vrot.slane %v2782_v5, 2  ;;  %v2985_v10 = vrot.slane %v2783_v23, 1 }
 0x403   : > { %v2980_v9 = vsel %vm8024_vm11, %v2979_v39, %v2978_v53  ;;  %vm8028_vm11 = vcmask 1042434  }
 0x404   : > { %v2982_v47 = vsel %vm8025_vm15, %v2981_v16, %v2980_v9 }
 0x405   : > { %v3388_v27 = vpop.f32.mrf.mxu1  ;;  %3204 = vrot.lane.b32.xlu2 %v7029_v54, %s8015_s15  ;;  %v2984_v46 = vsel %vm8026_vm3, %v2983_v30, %v2982_v47 }
 0x406   : > { %v3430_v31 = vadd.f32 %v3429_v55, %v3388_v27  ;;  %v2986_v37 = vsel %vm8027_vm14, %v2985_v10, %v2984_v46  ;;  %v4584_v10 = vpop.permute.xlu2 %4583 }
 0x407   : > { %3003 = vst.msk [vmem:[#allocation3 + $0x81] sm:$0xff] %vm2042_vm13, %v2986_v37 }
 0x408   : > { %v3451_v43 = vsel %vm3280_vm5, %v3430_v31, 0.0 }
 0x409   : > { %v3452_v19 = vadd.f32 %v3451_v43, %v3450_v63  ;;  %v7105_v63 = vld [vmem:[#allocation3 + $0x90] sm:$0xff]  ;;  %v7107_v43 = vld [vmem:[#allocation3 + $0x98] sm:$0x3] }
 0x40b   : > { %v3466_v58 = vrot.slane %v3452_v19, 2  ;;  %v3467_v54 = vrot.slane %v3452_v19, 4  ;;  %v3468_v21 = vrot.slane %v3452_v19, 6  ;;  %v3491_v13 = vsel %vm3490_vm9, %v3452_v19, 0.0 }
 0x40c   : > { %v3492_v17 = vrot.slane %v3491_v13, 4  ;;  %v3242_v19 = vrot.slane %v7105_v63, 1 }
 0x40d   : > { %v3498_v24 = vsel %vm3490_vm9, %v3466_v58, 0.0  ;;  %v3505_v32 = vsel %vm3490_vm9, %v3467_v54, 0.0  ;;  %v3512_v12 = vsel %vm3490_vm9, %v3468_v21, 0.0  ;;  %v3243_v58 = vrot.slane %v7107_v43, 1  ;;  %v4589_v54 = vpop.permute.xlu0 %4588 }
 0x40e   : > { %v3493_v51 = vadd.f32 %v3492_v17, %v3491_v13  ;;  %v3499_v35 = vrot.slane %v3498_v24, 4  ;;  %v3506_v49 = vrot.slane %v3505_v32, 4  ;;  %v3513_v56 = vrot.slane %v3512_v12, 4  ;;  %v3020_v41 = vld [vmem:[#allocation3 + $0x80] sm:$0xff]  ;;  %v3021_v33 = vld [vmem:[#allocation3 + $0x88] sm:$0x3]  ;;  %v4599_v17 = vpop.permute.xlu2 %4598 }
 0x40f   : > { %v4662_v8 = vpack.i.bf16 %v3020_v41, %v7004_v40  ;;  %v3163_v48 = vrot.slane %v3021_v33, 1  ;;  %v3189_v44 = vrot.slane %v3020_v41, 2  ;;  %v3190_v11 = vrot.slane %v3021_v33, 2 }
 0x410   : > { %v3494_v22 = vrot.slane %v3493_v51, 2  ;;  %v3500_v3 = vadd.f32 %v3499_v35, %v3498_v24  ;;  %v3507_v1 = vadd.f32 %v3506_v49, %v3505_v32  ;;  %v3514_v36 = vadd.f32 %v3513_v56, %v3512_v12  ;;  %v4594_v24 = vpop.permute.xlu1 %4593  ;;  %v4698_v56 = vld [vmem:[#allocation3 + $0x20] sm:$0xff] }
 0x411   : > { %4663 = vrot.lane.b32.xlu0 %v4662_v8, %s8014_s24  ;;  %v3191_v57 = vsel %vm784_vm2, %v3189_v44, %v3190_v11  ;;  %v3162_v59 = vrot.slane %v3020_v41, 1  ;;  %v3244_v21 = vsel %vm607_vm1, %v3242_v19, %v3243_v58  ;;  %v4585_v12 = vunpack.i.l.bf16 %v4584_v10  ;;  %v4699_v44 = vld [vmem:[#allocation3 + $0x30] sm:$0xff]  ;;  %s4721_s24 = scalar_lea.hbm %s7833_s11, 2 }
 0x412   : > { %v3495_v18 = vadd.f32 %v3494_v22, %v3493_v51  ;;  %v3501_v28 = vrot.slane %v3500_v3, 2  ;;  %v3508_v52 = vrot.slane %v3507_v1, 2  ;;  %v3515_v7 = vrot.slane %v3514_v36, 2  ;;  %3206 = vrot.lane.b32.xlu2 %v3191_v57, %s8015_s15  ;;  %4480 = vmatmul.msk.f32.gmra.mxu2 %vm2042_vm13, %v3191_v57 }
 0x413   : > { %v3164_v26 = vsel %vm607_vm1, %v3162_v59, %v3163_v48  ;;  %v4590_v51 = vunpack.i.l.bf16 %v4589_v54  ;;  %v4595_v35 = vunpack.i.l.bf16 %v4594_v24  ;;  %v3274_v22 = vsel %vm2042_vm13, %v4698_v56, %v4585_v12 }
 0x414   : > { %v3496_v38 = vrot.slane %v3495_v18, 1  ;;  %v3502_v62 = vadd.f32 %v3501_v28, %v3500_v3  ;;  %v3509_v14 = vadd.f32 %v3508_v52, %v3507_v1  ;;  %v3516_v60 = vadd.f32 %v3515_v7, %v3514_v36 }
 0x415   : > { %v4667_v5 = vpack.i.bf16 %v3164_v26, %v7039_v29  ;;  %v4604_v49 = vpop.permute.xlu0 %4603  ;;  %v3283_v3 = vsel %vm3280_vm5, %v3274_v22, %v4590_v51  ;;  %v4586_v1 = vunpack.i.h.bf16 %v4584_v10  ;;  %v4600_v33 = vunpack.i.l.bf16 %v4599_v17 }
 0x416   : > { %v3497_v34 = vadd.f32 %v3496_v38, %v3495_v18  ;;  %v3503_v25 = vrot.slane %v3502_v62, 1  ;;  %v3510_v50 = vrot.slane %v3509_v14, 1  ;;  %v3517_v15 = vrot.slane %v3516_v60, 1 }
 0x417   : > { %4668 = vrot.lane.b32.xlu1 %v4667_v5, %s8016_s29  ;;  %v3292_v36 = vsel %vm3289_vm6, %v3283_v3, %v4595_v35  ;;  %v4591_v18 = vunpack.i.h.bf16 %v4589_v54  ;;  %v4596_v52 = vunpack.i.h.bf16 %v4594_v24  ;;  %v3275_v11 = vsel %vm2042_vm13, %v4699_v44, %v4586_v1 }
 0x418   : > { %v3504_v0 = vadd.f32 %v3503_v25, %v3502_v62  ;;  %v3511_v61 = vadd.f32 %v3510_v50, %v3509_v14  ;;  %v3518_v45 = vadd.f32 %v3517_v15, %v3516_v60  ;;  %v3607_v23 = vadd.f32 %v7091_v6, %v3497_v34 }
 0x419   : > { %3229 = vrot.lane.b32.xlu0 %v3020_v41, %s4779_s25  ;;  %v4605_v41 = vunpack.i.l.bf16 %v4604_v49  ;;  %v3301_v48 = vsel %vm3298_vm7, %v3292_v36, %v4600_v33  ;;  %v3284_v14 = vsel %vm3280_vm5, %v3275_v11, %v4591_v18  ;;  %v4606_v59 = vunpack.i.h.bf16 %v4604_v49 }
 0x41a   : > { %v3608_v39 = vadd.f32 %v7091_v6, %v3504_v0  ;;  %v3609_v42 = vadd.f32 %v7091_v6, %v3511_v61  ;;  %v3610_v55 = vadd.f32 %v7091_v6, %v3518_v45  ;;  %v3623_v27 = vmax.f32 %v3607_v23, 0.0 }
 0x41b   : > { %v3310_v62 = vsel %vm3307_vm8, %v3301_v48, %v4605_v41  ;;  %v3293_v57 = vsel %vm3289_vm6, %v3284_v14, %v4596_v52  ;;  %vm8029_vm1 = vcmask 916480   ;;  %v4601_v25 = vunpack.i.h.bf16 %v4599_v17 }
 0x41c   : > { %v3624_v53 = vmax.f32 %v3608_v39, 0.0  ;;  %v3625_v16 = vmax.f32 %v3609_v42, 0.0  ;;  %v3626_v30 = vmax.f32 %v3610_v55, 0.0  ;;  %vm8030_vm15 = vmmov %vm8029_vm1 }
 0x41d   : > { %v3302_v15 = vsel %vm3298_vm7, %v3293_v57, %v4601_v25  ;;  %vm8031_vm3 = vmmov %vm8029_vm1 }
 0x41e   : > { %v3662_v9 = vrot.slane %v3624_v53, 7  ;;  %v3664_v31 = vrot.slane %v3625_v16, 6  ;;  %v3666_v47 = vrot.slane %v3626_v30, 5  ;;  %vm8032_vm14 = vmmov %vm8029_vm1 }
 0x41f   : > { %3257 = vrot.lane.b32.xlu1 %v3164_v26, %s7998_s12  ;;  %v3311_v26 = vsel %vm3307_vm8, %v3302_v15, %v4606_v59 }
 0x420   : > { %v3663_v29 = vsel %vm8022_vm0, %v3662_v9, %v3623_v27  ;;  %v4614_v28 = vpop.permute.xlu2 %4613  ;;  %v4700_v27 = vld [vmem:[#allocation3 + $0x40] sm:$0xff] }
 0x421   : > { %v3665_v46 = vsel %vm8028_vm11, %v3664_v31, %v3663_v29  ;;  %3231 = vrot.lane.b32.xlu0 %v7105_v63, %s4779_s25  ;;  %v4615_v38 = vunpack.i.l.bf16 %v4614_v28  ;;  %v4616_v61 = vunpack.i.h.bf16 %v4614_v28  ;;  %v3269_v28 = vrot.slane %v7105_v63, 2 }
 0x422   : > { %v3667_v37 = vsel %vm2875_vm4, %v3666_v47, %v3665_v46 }
 0x423   : > { %3692 = vst.msk [vmem:[#allocation4 + $0x9] sm:$0xf] %vm3691_vm12, %v3667_v37 }
 0x427   : > { %3259 = vrot.lane.b32.xlu1 %v3244_v21, %s7998_s12  ;;  %s377_s12 = sand.u32 1, %s4755_s18  }
 0x428   : > { %s378_s14 = scalar_lea.vmem [#allocation6], %s377_s12  ;;  %s4368_s0 = scalar_lea.sflag [#allocation7], %s377_s12 }
 0x429   : > { %s4378_s13 = sshll.u32 %s378_s14, 4  ;;  %s4379_s13 = int_to_ptr.vmem [resolvable:$true] %s4378_s13 }
 0x42a   : > { %v7117_v13 = vld [vmem:[#allocation4 + $0x8] sm:$0x3f] }
 0x42b   : > { %v3723_v32 = vrot.slane %v7117_v13, 2 }
 0x42d   : > { %3757 = vrot.lane.b32.xlu2 %v3723_v32, %s7999_s30 }
 0x434   : > { %v4609_v7 = vpop.permute.xlu1 %4608 }
 0x435   : > { %v4610_v8 = vunpack.i.l.bf16 %v4609_v7  ;;  %v4611_v50 = vunpack.i.h.bf16 %v4609_v7  ;;  %v3270_v7 = vrot.slane %v7107_v43, 2 }
 0x437   : > { %v3319_v60 = vsel %vm3316_vm10, %v3310_v62, %v4610_v8  ;;  %v3320_v0 = vsel %vm3316_vm10, %v3311_v26, %v4611_v50  ;;  %v3271_v8 = vsel %vm784_vm2, %v3269_v28, %v3270_v7  ;;  %vm8033_vm2 = vmmov %vm8029_vm1 }
 0x438   : > { %v3328_v34 = vsel %vm8029_vm1, %v3319_v60, %v4615_v38  ;;  %v3329_v45 = vsel %vm8030_vm15, %v3320_v0, %v4616_v61  ;;  %v4619_v5 = vpop.permute.xlu0 %4618  ;;  %4481 = vmatmul.msk.f32.gmra.mxu2 %vm2042_vm13, %v3271_v8  ;;  %vm8041_vm15 = vmmov %vm8022_vm0 }
 0x439   : > { %3390 = vmatmul.f32.gmra.mxu1 %v3328_v34  ;;  %v4620_v42 = vunpack.i.l.bf16 %v4619_v5  ;;  %v4621_v37 = vunpack.i.h.bf16 %v4619_v5 }
 0x43b   : > { %v3276_v9 = vsel %vm2042_vm13, %v4700_v27, %v4620_v42  ;;  %v3277_v51 = vsel %vm2042_vm13, %v6951_v20, %v4621_v37 }
 0x43c   : > { %v4624_v23 = vpop.permute.xlu1 %4623 }
 0x43d   : > { %v4625_v55 = vunpack.i.l.bf16 %v4624_v23  ;;  %v4626_v58 = vunpack.i.h.bf16 %v4624_v23 }
 0x43f   : > { %v3285_v29 = vsel %vm3280_vm5, %v3276_v9, %v4625_v55  ;;  %v3286_v49 = vsel %vm3280_vm5, %v3277_v51, %v4626_v58 }
 0x441   : > { %3393 = vmatmul.f32.gmra.mxu1 %v3329_v45 }
 0x447   : > { %v4629_v39 = vpop.permute.xlu2 %4628 }
 0x448   : > { %v4630_v53 = vunpack.i.l.bf16 %v4629_v39  ;;  %v4631_v54 = vunpack.i.h.bf16 %v4629_v39 }
 0x44a   : > { %v3294_v47 = vsel %vm3289_vm6, %v3285_v29, %v4630_v53  ;;  %v3295_v22 = vsel %vm3289_vm6, %v3286_v49, %v4631_v54  ;;  %v3432_v29 = vpop.f32.mrf.mxu2 }
 0x44f   : > { %v4644_v19 = vpop.permute.xlu2 %4643 }
 0x450   : > { %v4645_v17 = vunpack.i.l.bf16 %v4644_v19  ;;  %v4646_v18 = vunpack.i.h.bf16 %v4644_v19 }
 0x457   : > { %v4659_v44 = vpop.permute.xlu2 %4658 }
 0x458   : > { %v4660_v63 = vunpack.i.l.bf16 %v4659_v44 }
 0x45f   : > { %v3205_v15 = vpop.permute.xlu2 %3204 }
 0x462   : > { %v4639_v30 = vpop.permute.xlu1 %4638 }
 0x463   : > { %v4634_v16 = vpop.permute.xlu0 %4633  ;;  %v4640_v10 = vunpack.i.l.bf16 %v4639_v30  ;;  %v4641_v3 = vunpack.i.h.bf16 %v4639_v30 }
 0x464   : > { %v4635_v31 = vunpack.i.l.bf16 %v4634_v16  ;;  %v4636_v24 = vunpack.i.h.bf16 %v4634_v16 }
 0x466   : > { %v3303_v46 = vsel %vm3298_vm7, %v3294_v47, %v4635_v31  ;;  %v3304_v36 = vsel %vm3298_vm7, %v3295_v22, %v4636_v24 }
 0x467   : > { %v3312_v21 = vsel %vm3307_vm8, %v3303_v46, %v4640_v10  ;;  %v3313_v33 = vsel %vm3307_vm8, %v3304_v36, %v4641_v3  ;;  %v3435_v46 = vpop.f32.mrf.mxu2 }
 0x468   : > { %v3321_v56 = vsel %vm3316_vm10, %v3312_v21, %v4645_v17  ;;  %v3322_v20 = vsel %vm3316_vm10, %v3313_v33, %v4646_v18 }
 0x46a   : > { %v4654_v48 = vpop.permute.xlu1 %4653 }
 0x46b   : > { %v4649_v12 = vpop.permute.xlu0 %4648  ;;  %v4655_v11 = vunpack.i.l.bf16 %v4654_v48  ;;  %v4656_v34 = vunpack.i.h.bf16 %v4654_v48 }
 0x46c   : > { %v4650_v35 = vunpack.i.l.bf16 %v4649_v12  ;;  %v4651_v41 = vunpack.i.h.bf16 %v4649_v12  ;;  %v3207_v30 = vpop.permute.xlu2 %3206 }
 0x46d   : > { %v3278_v62 = vsel %vm2042_vm13, %v7006_v4, %v4655_v11  ;;  %v3279_v0 = vsel %vm2042_vm13, %v7004_v40, %v4656_v34  ;;  %v4661_v4 = vunpack.i.h.bf16 %v4659_v44  ;;  %vm8034_vm13 = vmmov %vm8029_vm1 }
 0x46e   : > { %v3330_v1 = vsel %vm8031_vm3, %v3321_v56, %v4650_v35  ;;  %v3331_v52 = vsel %vm8032_vm14, %v3322_v20, %v4651_v41  ;;  %v3287_v57 = vsel %vm3280_vm5, %v3278_v62, %v4660_v63  ;;  %vm4114_vm3 = vcmask 1041408  }
 0x46f   : > { %3396 = vmatmul.f32.gmra.mxu1 %v3330_v1  ;;  %v3288_v42 = vsel %vm3280_vm5, %v3279_v0, %v4661_v4  ;;  %vm4116_vm14 = vcmask 1045508  }
 0x477   : > { %3399 = vmatmul.f32.gmra.mxu1 %v3331_v52 }
 0x483   : > { %v4664_v38 = vpop.permute.xlu0 %4663 }
 0x484   : > { %v4665_v14 = vunpack.i.l.bf16 %v4664_v38  ;;  %v4666_v61 = vunpack.i.h.bf16 %v4664_v38 }
 0x486   : > { %v3296_v43 = vsel %vm3289_vm6, %v3287_v57, %v4665_v14  ;;  %v3297_v55 = vsel %vm3289_vm6, %v3288_v42, %v4666_v61  ;;  %vm8035_vm6 = vmmov %vm8022_vm0 }
 0x489   : > { %v4669_v60 = vpop.permute.xlu1 %4668 }
 0x48a   : > { %v4670_v59 = vunpack.i.l.bf16 %v4669_v60  ;;  %v4671_v45 = vunpack.i.h.bf16 %v4669_v60 }
 0x48b   : > { %v3230_v25 = vpop.permute.xlu0 %3229 }
 0x48c   : > { %v3305_v50 = vsel %vm3298_vm7, %v3296_v43, %v4670_v59  ;;  %v3306_v53 = vsel %vm3298_vm7, %v3297_v55, %v4671_v45 }
 0x48d   : > { %v3314_v26 = vsel %vm3307_vm8, %v3305_v50, %v3205_v15  ;;  %v3315_v27 = vsel %vm3307_vm8, %v3306_v53, %v3207_v30  ;;  %vm8036_vm8 = vmmov %vm8028_vm11 }
 0x48e   : > { %v3323_v5 = vsel %vm3316_vm10, %v3314_v26, %v3230_v25  ;;  %vm8037_vm11 = vmmov %vm8036_vm8 }
 0x48f   : > { %vm8039_vm1 = vmmov %vm8036_vm8 }
 0x491   : > { %v3258_v23 = vpop.permute.xlu1 %3257 }
 0x492   : > { %v3332_v39 = vsel %vm8033_vm2, %v3323_v5, %v3258_v23 }
 0x493   : > { %3402 = vmatmul.f32.gmra.mxu1 %v3332_v39  ;;  %v3232_v16 = vpop.permute.xlu0 %3231 }
 0x494   : > { %v3324_v40 = vsel %vm3316_vm10, %v3315_v27, %v3232_v16  ;;  %v3707_v27 = vrot.slane %v7117_v13, 1 }
 0x499   : > { %v3260_v9 = vpop.permute.xlu1 %3259 }
 0x49a   : > { %v3333_v31 = vsel %vm8034_vm13, %v3324_v40, %v3260_v9  ;;  %v3438_v40 = vpop.f32.mrf.mxu2 }
 0x49b   : > { %3405 = vmatmul.f32.gmra.mxu1 %v3333_v31  ;;  %v7201_v31 = vld [vmem:[#allocation4] sm:$0x3f] }
 0x4b6   : > { %v3391_v47 = vpop.f32.mrf.mxu1 }
 0x4b7   : > { %v3433_v10 = vadd.f32 %v3432_v29, %v3391_v47  ;;  %v3722_v29 = vrot.slane %v7201_v31, 2 }
 0x4b9   : > { %v3453_v58 = vsel %vm3280_vm5, %v3433_v10, 0.0  ;;  %v3441_v10 = vpop.f32.mrf.mxu2 }
 0x4be   : > { %v3394_v37 = vpop.f32.mrf.mxu1 }
 0x4bf   : > { %v3436_v19 = vadd.f32 %v3435_v46, %v3394_v37 }
 0x4c1   : > { %v3454_v54 = vsel %vm3280_vm5, %v3436_v19, 0.0  ;;  %v3706_v19 = vrot.slane %v7201_v31, 1 }
 0x4c2   : > { %v3455_v21 = vadd.f32 %v3454_v54, %v3453_v58 }
 0x4c4   : > { %v3469_v17 = vrot.slane %v3455_v21, 2  ;;  %v3470_v24 = vrot.slane %v3455_v21, 4  ;;  %v3471_v12 = vrot.slane %v3455_v21, 6  ;;  %v3519_v51 = vsel %vm3490_vm9, %v3455_v21, 0.0 }
 0x4c5   : > { %v3520_v35 = vrot.slane %v3519_v51, 4 }
 0x4c6   : > { %v3526_v49 = vsel %vm3490_vm9, %v3469_v17, 0.0  ;;  %v3533_v56 = vsel %vm3490_vm9, %v3470_v24, 0.0  ;;  %v3540_v22 = vsel %vm3490_vm9, %v3471_v12, 0.0 }
 0x4c7   : > { %v3521_v3 = vadd.f32 %v3520_v35, %v3519_v51  ;;  %v3527_v1 = vrot.slane %v3526_v49, 4  ;;  %v3534_v36 = vrot.slane %v3533_v56, 4  ;;  %v3541_v41 = vrot.slane %v3540_v22, 4 }
 0x4c9   : > { %v3522_v33 = vrot.slane %v3521_v3, 2  ;;  %v3528_v18 = vadd.f32 %v3527_v1, %v3526_v49  ;;  %v3535_v28 = vadd.f32 %v3534_v36, %v3533_v56  ;;  %v3542_v20 = vadd.f32 %v3541_v41, %v3540_v22 }
 0x4cb   : > { %v3523_v52 = vadd.f32 %v3522_v33, %v3521_v3  ;;  %v3529_v7 = vrot.slane %v3528_v18, 2  ;;  %v3536_v8 = vrot.slane %v3535_v28, 2  ;;  %v3543_v48 = vrot.slane %v3542_v20, 2 }
 0x4cd   : > { %v3524_v44 = vrot.slane %v3523_v52, 1  ;;  %v3530_v11 = vadd.f32 %v3529_v7, %v3528_v18  ;;  %v3537_v38 = vadd.f32 %v3536_v8, %v3535_v28  ;;  %v3544_v62 = vadd.f32 %v3543_v48, %v3542_v20 }
 0x4cf   : > { %v3525_v14 = vadd.f32 %v3524_v44, %v3523_v52  ;;  %v3531_v63 = vrot.slane %v3530_v11, 1  ;;  %v3538_v60 = vrot.slane %v3537_v38, 1  ;;  %v3545_v57 = vrot.slane %v3544_v62, 1  ;;  %v3872_v44 = vld [vmem:[%s7827_s5 + $0x118] sm:$0xff] }
 0x4d0   : > { %3960 = vmatpush.msrb.mxu2 %v3872_v44 }
 0x4d1   : > { %v3532_v59 = vadd.f32 %v3531_v63, %v3530_v11  ;;  %v3539_v43 = vadd.f32 %v3538_v60, %v3537_v38  ;;  %v3546_v34 = vadd.f32 %v3545_v57, %v3544_v62  ;;  %v3611_v25 = vadd.f32 %v7091_v6, %v3525_v14  ;;  %v3871_v63 = vld [vmem:[%s7827_s5 + $0x110] sm:$0xff] }
 0x4d2   : > { %3961 = vmatpush.msrb.mxu2 %v3871_v63 }
 0x4d3   : > { %v3612_v50 = vadd.f32 %v7091_v6, %v3532_v59  ;;  %v3613_v15 = vadd.f32 %v7091_v6, %v3539_v43  ;;  %v3614_v26 = vadd.f32 %v7091_v6, %v3546_v34  ;;  %v3627_v45 = vmax.f32 %v3611_v25, 0.0  ;;  %v3870_v34 = vld [vmem:[%s7827_s5 + $0x108] sm:$0xff] }
 0x4d4   : > { %3962 = vmatpush.msrb.mxu2 %v3870_v34 }
 0x4d5   : > { %v3628_v0 = vmax.f32 %v3612_v50, 0.0  ;;  %v3629_v61 = vmax.f32 %v3613_v15, 0.0  ;;  %v3630_v4 = vmax.f32 %v3614_v26, 0.0  ;;  %v3869_v26 = vld [vmem:[%s7827_s5 + $0x100] sm:$0xff] }
 0x4d6   : > { %3963 = vmatpush.msrb.mxu2 %v3869_v26 }
 0x4d7   : > { %v3668_v5 = vrot.slane %v3628_v0, 7  ;;  %v3670_v23 = vrot.slane %v3629_v61, 6  ;;  %v3672_v42 = vrot.slane %v3630_v4, 5 }
 0x4d9   : > { %v3669_v39 = vsel %vm8035_vm6, %v3668_v5, %v3627_v45 }
 0x4da   : > { %v3671_v55 = vsel %vm8036_vm8, %v3670_v23, %v3669_v39 }
 0x4db   : > { %v3673_v53 = vsel %vm2875_vm4, %v3672_v42, %v3671_v55 }
 0x4dc   : > { %3693 = vst.msk [vmem:[#allocation4 + $0x11] sm:$0xf] %vm3691_vm12, %v3673_v53 }
 0x4e3   : > { %v7187_v16 = vld [vmem:[#allocation4 + $0x10] sm:$0x3f] }
 0x4e4   : > { %3770 = vrot.lane.b32.xlu1 %v7187_v16, %s8016_s29  ;;  %v7192_v30 = vrot.slane %v7187_v16, 2 }
 0x4e6   : > { %3759 = vrot.lane.b32.xlu0 %v7192_v30, %s7999_s30  ;;  %3877 = vst [vmem:[#allocation1 + $0x10] ss:$2 sm:$0xff] %v7192_v30 }
 0x4ec   : > { %3712 = vrot.lane.b32.xlu1 %v3707_v27, %s7999_s30  ;;  %v3397_v9 = vpop.f32.mrf.mxu1 }
 0x4ed   : > { %v3439_v47 = vadd.f32 %v3438_v40, %v3397_v9 }
 0x4ee   : > { %3710 = vrot.lane.b32.xlu0 %v3706_v19, %s7999_s30 }
 0x4ef   : > { %v3456_v58 = vsel %vm3280_vm5, %v3439_v47, 0.0  ;;  %v3444_v47 = vpop.f32.mrf.mxu2 }
 0x4f4   : > { %3726 = vrot.lane.b32.xlu1 %v3722_v29, %s8016_s29  ;;  %v3400_v46 = vpop.f32.mrf.mxu1 }
 0x4f5   : > { %v3442_v37 = vadd.f32 %v3441_v10, %v3400_v46 }
 0x4f7   : > { %v3457_v54 = vsel %vm3280_vm5, %v3442_v37, 0.0  ;;  %v3447_v37 = vpop.f32.mrf.mxu2 }
 0x4f8   : > { %v3458_v21 = vadd.f32 %v3457_v54, %v3456_v58  ;;  %v7237_v58 = vld [vmem:[#allocation4 + $0x28] sm:$0x3f] }
 0x4fa   : > { %v3472_v17 = vrot.slane %v3458_v21, 2  ;;  %v3473_v24 = vrot.slane %v3458_v21, 4  ;;  %v3474_v12 = vrot.slane %v3458_v21, 6  ;;  %v3547_v51 = vsel %vm3490_vm9, %v3458_v21, 0.0 }
 0x4fb   : > { %v3548_v35 = vrot.slane %v3547_v51, 4 }
 0x4fc   : > { %3741 = vrot.lane.b32.xlu1 %v7187_v16, %s4779_s25  ;;  %v3554_v49 = vsel %vm3490_vm9, %v3472_v17, 0.0  ;;  %v3561_v56 = vsel %vm3490_vm9, %v3473_v24, 0.0  ;;  %v3568_v22 = vsel %vm3490_vm9, %v3474_v12, 0.0  ;;  %v3795_v24 = vrot.slane %v7237_v58, 2 }
 0x4fd   : > { %v3549_v3 = vadd.f32 %v3548_v35, %v3547_v51  ;;  %v3555_v1 = vrot.slane %v3554_v49, 4  ;;  %v3562_v36 = vrot.slane %v3561_v56, 4  ;;  %v3569_v41 = vrot.slane %v3568_v22, 4 }
 0x4fe   : > { %3887 = vst [vmem:[#allocation1 + $0x31] ss:$2 sm:$0xff] %v3795_v24 }
 0x4ff   : > { %v3550_v33 = vrot.slane %v3549_v3, 2  ;;  %v3556_v18 = vadd.f32 %v3555_v1, %v3554_v49  ;;  %v3563_v28 = vadd.f32 %v3562_v36, %v3561_v56  ;;  %v3570_v20 = vadd.f32 %v3569_v41, %v3568_v22 }
 0x500   : > { %v7254_v22 = vrot.slane %v7187_v16, 1 }
 0x501   : > { %v3551_v52 = vadd.f32 %v3550_v33, %v3549_v3  ;;  %v3557_v7 = vrot.slane %v3556_v18, 2  ;;  %v3564_v8 = vrot.slane %v3563_v28, 2  ;;  %v3571_v48 = vrot.slane %v3570_v20, 2 }
 0x503   : > { %v3552_v11 = vrot.slane %v3551_v52, 1  ;;  %v3558_v38 = vadd.f32 %v3557_v7, %v3556_v18  ;;  %v3565_v62 = vadd.f32 %v3564_v8, %v3563_v28  ;;  %v3572_v14 = vadd.f32 %v3571_v48, %v3570_v20 }
 0x505   : > { %v3553_v60 = vadd.f32 %v3552_v11, %v3551_v52  ;;  %v3559_v57 = vrot.slane %v3558_v38, 1  ;;  %v3566_v59 = vrot.slane %v3565_v62, 1  ;;  %v3573_v43 = vrot.slane %v3572_v14, 1 }
 0x507   : > { %v3560_v25 = vadd.f32 %v3559_v57, %v3558_v38  ;;  %v3567_v50 = vadd.f32 %v3566_v59, %v3565_v62  ;;  %v3574_v15 = vadd.f32 %v3573_v43, %v3572_v14  ;;  %v3615_v0 = vadd.f32 %v7091_v6, %v3553_v60 }
 0x509   : > { %v3616_v61 = vadd.f32 %v7091_v6, %v3560_v25  ;;  %v3617_v4 = vadd.f32 %v7091_v6, %v3567_v50  ;;  %v3618_v45 = vadd.f32 %v7091_v6, %v3574_v15  ;;  %v3631_v42 = vmax.f32 %v3615_v0, 0.0 }
 0x50b   : > { %v3632_v5 = vmax.f32 %v3616_v61, 0.0  ;;  %v3633_v23 = vmax.f32 %v3617_v4, 0.0  ;;  %v3634_v39 = vmax.f32 %v3618_v45, 0.0 }
 0x50d   : > { %v3674_v55 = vrot.slane %v3632_v5, 7  ;;  %v3676_v53 = vrot.slane %v3633_v23, 6  ;;  %v3678_v9 = vrot.slane %v3634_v39, 5 }
 0x50f   : > { %v3675_v40 = vsel %vm8022_vm0, %v3674_v55, %v3631_v42 }
 0x510   : > { %v3677_v29 = vsel %vm8037_vm11, %v3676_v53, %v3675_v40  ;;  %v3403_v46 = vpop.f32.mrf.mxu1 }
 0x511   : > { %v3679_v10 = vsel %vm2875_vm4, %v3678_v9, %v3677_v29  ;;  %v3445_v54 = vadd.f32 %v3444_v47, %v3403_v46 }
 0x512   : > { %3694 = vst.msk [vmem:[#allocation4 + $0x19] sm:$0xf] %vm3691_vm12, %v3679_v10 }
 0x513   : > { %v3459_v35 = vsel %vm3280_vm5, %v3445_v54, 0.0 }
 0x518   : > { %v3406_v12 = vpop.f32.mrf.mxu1 }
 0x519   : > { %v7235_v19 = vld [vmem:[#allocation4 + $0x18] sm:$0x3f]  ;;  %v3448_v51 = vadd.f32 %v3447_v37, %v3406_v12 }
 0x51a   : > { %3772 = vrot.lane.b32.xlu2 %v7235_v19, %s8016_s29  ;;  %v7242_v21 = vrot.slane %v7235_v19, 2  ;;  %v7245_v17 = vrot.slane %v7235_v19, 1 }
 0x51b   : > { %v3460_v49 = vsel %vm3280_vm5, %v3448_v51, 0.0 }
 0x51c   : > { %3879 = vst [vmem:[#allocation1 + $0x11] ss:$2 sm:$0xff] %v7242_v21  ;;  %3785 = vrot.lane.b32.xlu0 %v7245_v17, %s4779_s25  ;;  %v3461_v56 = vadd.f32 %v3460_v49, %v3459_v35  ;;  %v3782_v35 = vrot.slane %v7237_v58, 1  ;;  %v3852_v49 = vld [vmem:[%s7827_s5 + $0x78] sm:$0xff] }
 0x51d   : > { %3902 = vmatpush.msrb.mxu3 %v3852_v49 }
 0x51e   : > { %v3475_v3 = vrot.slane %v3461_v56, 2  ;;  %v3476_v1 = vrot.slane %v3461_v56, 4  ;;  %v3477_v36 = vrot.slane %v3461_v56, 6  ;;  %v3575_v41 = vsel %vm3490_vm9, %v3461_v56, 0.0  ;;  %v3848_v56 = vld [vmem:[%s7827_s5 + $0x58] sm:$0xff] }
 0x51f   : > { %v3576_v33 = vrot.slane %v3575_v41, 4 }
 0x520   : > { %v3582_v18 = vsel %vm3490_vm9, %v3475_v3, 0.0  ;;  %v3589_v28 = vsel %vm3490_vm9, %v3476_v1, 0.0  ;;  %v3596_v20 = vsel %vm3490_vm9, %v3477_v36, 0.0  ;;  %vm8038_vm9 = vmmov %vm8022_vm0  ;;  %v3847_v3 = vld [vmem:[%s7827_s5 + $0x50] sm:$0xff]  ;;  %v3846_v1 = vld [vmem:[%s7827_s5 + $0x48] sm:$0xff]  ;;  %v3758_v36 = vpop.permute.xlu2 %3757 }
 0x521   : > { %v3577_v7 = vadd.f32 %v3576_v33, %v3575_v41  ;;  %v3583_v8 = vrot.slane %v3582_v18, 4  ;;  %v3590_v48 = vrot.slane %v3589_v28, 4  ;;  %v3597_v44 = vrot.slane %v3596_v20, 4  ;;  %v3845_v33 = vld [vmem:[%s7827_s5 + $0x40] sm:$0xff] }
 0x522   : > { %3783 = vrot.lane.b32.xlu2 %v7254_v22, %s4779_s25 }
 0x523   : > { %v3890_v52 = vld.sshfl [vmem:[#allocation1 + $0x10] sm:$0xff pattern:$0x75316420]  ;;  %v3578_v11 = vrot.slane %v3577_v7, 2  ;;  %v3584_v38 = vadd.f32 %v3583_v8, %v3582_v18  ;;  %v3591_v62 = vadd.f32 %v3590_v48, %v3589_v28  ;;  %v3598_v14 = vadd.f32 %v3597_v44, %v3596_v20  ;;  %v3844_v18 = vld [vmem:[%s7827_s5 + $0x38] sm:$0xff] }
 0x524   : > { %4482 = vmatmul.msk.f32.vlgmr.msrb.gmra.mxu2 %vm3280_vm5, %v3890_v52  ;;  %3739 = vrot.lane.b32.xlu0 %v7117_v13, %s4779_s25  ;;  %v3843_v28 = vld [vmem:[%s7827_s5 + $0x30] sm:$0xff]  ;;  %v3842_v52 = vld [vmem:[%s7827_s5 + $0x28] sm:$0xff]  ;;  %v3840_v8 = vld [vmem:[%s7827_s5 + $0x18] sm:$0xff] }
 0x525   : > { %v3579_v63 = vadd.f32 %v3578_v11, %v3577_v7  ;;  %v3585_v60 = vrot.slane %v3584_v38, 2  ;;  %v3592_v57 = vrot.slane %v3591_v62, 2  ;;  %v3599_v59 = vrot.slane %v3598_v14, 2  ;;  %v3841_v7 = vld [vmem:[%s7827_s5 + $0x20] sm:$0xff]  ;;  %v3839_v11 = vld [vmem:[%s7827_s5 + $0x10] sm:$0xff] }
 0x527   : > { %v3580_v43 = vrot.slane %v3579_v63, 1  ;;  %v3586_v34 = vadd.f32 %v3585_v60, %v3584_v38  ;;  %v3593_v25 = vadd.f32 %v3592_v57, %v3591_v62  ;;  %v3600_v50 = vadd.f32 %v3599_v59, %v3598_v14  ;;  %v3838_v38 = vld [vmem:[%s7827_s5 + $0x8] sm:$0xff]  ;;  %v3837_v14 = vld [vmem:[%s7827_s5] sm:$0xff] }
 0x529   : > { %v3581_v15 = vadd.f32 %v3580_v43, %v3579_v63  ;;  %v3587_v26 = vrot.slane %v3586_v34, 1  ;;  %v3594_v0 = vrot.slane %v3593_v25, 1  ;;  %v3601_v61 = vrot.slane %v3600_v50, 1 }
 0x52a   : > { %3728 = vrot.lane.b32.xlu2 %v3723_v32, %s8016_s29 }
 0x52b   : > { %v3588_v4 = vadd.f32 %v3587_v26, %v3586_v34  ;;  %v3595_v45 = vadd.f32 %v3594_v0, %v3593_v25  ;;  %v3602_v5 = vadd.f32 %v3601_v61, %v3600_v50  ;;  %v3619_v23 = vadd.f32 %v7091_v6, %v3581_v15 }
 0x52c   : > { %v3808_v61 = vsel %vm3280_vm5, %v3707_v27, %v3758_v36 }
 0x52d   : > { %v3620_v39 = vadd.f32 %v7091_v6, %v3588_v4  ;;  %v3621_v42 = vadd.f32 %v7091_v6, %v3595_v45  ;;  %v3622_v55 = vadd.f32 %v7091_v6, %v3602_v5  ;;  %v3635_v32 = vmax.f32 %v3619_v23, 0.0 }
 0x52f   : > { %v3636_v53 = vmax.f32 %v3620_v39, 0.0  ;;  %v3637_v40 = vmax.f32 %v3621_v42, 0.0  ;;  %v3638_v9 = vmax.f32 %v3622_v55, 0.0 }
 0x531   : > { %v3680_v29 = vrot.slane %v3636_v53, 7  ;;  %v3682_v47 = vrot.slane %v3637_v40, 6  ;;  %v3684_v46 = vrot.slane %v3638_v9, 5  ;;  %v3867_v53 = vld [vmem:[%s7827_s5 + $0xf0] sm:$0xff]  ;;  %v3866_v9 = vld [vmem:[%s7827_s5 + $0xe8] sm:$0xff] }
 0x532   : > { %3761 = vrot.lane.b32.xlu2 %v7242_v21, %s7999_s30 }
 0x533   : > { %v3681_v10 = vsel %vm8038_vm9, %v3680_v29, %v3635_v32  ;;  %v3865_v32 = vld [vmem:[%s7827_s5 + $0xe0] sm:$0xff]  ;;  %v3864_v29 = vld [vmem:[%s7827_s5 + $0xd8] sm:$0xff] }
 0x534   : > { %v3683_v37 = vsel %vm8039_vm1, %v3682_v47, %v3681_v10  ;;  %v3863_v47 = vld [vmem:[%s7827_s5 + $0xd0] sm:$0xff] }
 0x535   : > { %v3685_v54 = vsel %vm2875_vm4, %v3684_v46, %v3683_v37  ;;  %vm3832_vm4 = vcmask 1043456   ;;  %v3862_v46 = vld [vmem:[%s7827_s5 + $0xc8] sm:$0xff]  ;;  %v3861_v37 = vld [vmem:[%s7827_s5 + $0xc0] sm:$0xff] }
 0x536   : > { %3695 = vst.msk [vmem:[#allocation4 + $0x21] sm:$0xf] %vm3691_vm12, %v3685_v54  ;;  %v3860_v54 = vld [vmem:[%s7827_s5 + $0xb8] sm:$0xff]  ;;  %vm8040_vm12 = vmmov %vm8022_vm0 }
 0x53a   : > { %3776 = vrot.lane.b32.xlu2 %v7237_v58, %s8016_s29  ;;  %v3849_v58 = vld [vmem:[%s7827_s5 + $0x60] sm:$0xff] }
 0x53d   : > { %v7280_v6 = vld [vmem:[#allocation4 + $0x20] sm:$0x3f] }
 0x53e   : > { %3774 = vrot.lane.b32.xlu1 %v7280_v6, %s8016_s29  ;;  %v3756_v24 = vrot.slane %v7280_v6, 2  ;;  %v3751_v12 = vrot.slane %v7280_v6, 1 }
 0x540   : > { %3763 = vrot.lane.b32.xlu0 %v3756_v24, %s7999_s30  ;;  %3885 = vst [vmem:[#allocation1 + $0x30] ss:$2 sm:$0xff] %v3756_v24  ;;  %v3859_v24 = vld [vmem:[%s7827_s5 + $0xb0] sm:$0xff] }
 0x542   : > { %3787 = vrot.lane.b32.xlu2 %v3751_v12, %s4779_s25 }
 0x546   : > { %3716 = vrot.lane.b32.xlu1 %v7245_v17, %s7999_s30 }
 0x547   : > { %v3893_v51 = vld.sshfl [vmem:[#allocation1 + $0x30] sm:$0xff pattern:$0x75316420] }
 0x548   : > { %3714 = vrot.lane.b32.xlu0 %v7254_v22, %s7999_s30  ;;  %4483 = vmatmul.msk.f32.gmra.mxu2 %vm3280_vm5, %v3893_v51  ;;  %s4376_s30 = scalar_lea.hbm %s7833_s11, %s4862_s21 }
 0x54a   : > { %3732 = vrot.lane.b32.xlu2 %v7242_v21, %s8016_s29  ;;  %v3851_v21 = vld [vmem:[%s7827_s5 + $0x70] sm:$0xff] }
 0x54b   : > { %3903 = vmatpush.msrb.mxu3 %v3851_v21  ;;  %v3857_v21 = vld [vmem:[%s7827_s5 + $0xa0] sm:$0xff] }
 0x54e   : > { %3730 = vrot.lane.b32.xlu1 %v7192_v30, %s8016_s29  ;;  %v3850_v30 = vld [vmem:[%s7827_s5 + $0x68] sm:$0xff] }
 0x54f   : > { %3904 = vmatpush.msrb.mxu3 %v3850_v30 }
 0x550   : > { %3789 = vrot.lane.b32.xlu0 %v3782_v35, %s4779_s25  ;;  %v3858_v35 = vld [vmem:[%s7827_s5 + $0xa8] sm:$0xff] }
 0x551   : > { %3905 = vmatpush.msrb.mxu3 %v3849_v58  ;;  %v3856_v58 = vld [vmem:[%s7827_s5 + $0x98] sm:$0xff] }
 0x553   : > { %3906 = vmatpush.msrb.mxu3 %v3848_v56  ;;  %v3855_v56 = vld [vmem:[%s7827_s5 + $0x90] sm:$0xff] }
 0x555   : > { %3907 = vmatpush.msrb.mxu3 %v3847_v3 }
 0x556   : > { %3745 = vrot.lane.b32.xlu1 %v7280_v6, %s4779_s25  ;;  %v3771_v41 = vpop.permute.xlu1 %3770 }
 0x557   : > { %3908 = vmatpush.msrb.mxu3 %v3846_v1  ;;  %v3812_v45 = vsel %vm3298_vm7, %v3808_v61, %v3771_v41  ;;  %v3854_v1 = vld [vmem:[%s7827_s5 + $0x88] sm:$0xff]  ;;  %v3853_v41 = vld [vmem:[%s7827_s5 + $0x80] sm:$0xff] }
 0x558   : > { %3743 = vrot.lane.b32.xlu0 %v7235_v19, %s4779_s25  ;;  %v3760_v48 = vpop.permute.xlu0 %3759 }
 0x559   : > { %3909 = vmatpush.msrb.mxu3 %v3845_v33  ;;  %v3809_v59 = vsel %vm3280_vm5, %v7254_v22, %v3760_v48 }
 0x55b   : > { %3910 = vmatpush.msrb.mxu3 %v3844_v18 }
 0x55d   : > { %3911 = vmatpush.msrb.mxu3 %v3843_v28 }
 0x55e   : > { %v3713_v44 = vpop.permute.xlu1 %3712 }
 0x55f   : > { %3912 = vmatpush.msrb.mxu3 %v3842_v52  ;;  %v3797_v43 = vsel %vm3280_vm5, %v7117_v13, %v3713_v44 }
 0x560   : > { %v3711_v63 = vpop.permute.xlu0 %3710 }
 0x561   : > { %3913 = vmatpush.msrb.mxu3 %v3841_v7  ;;  %v3796_v22 = vsel %vm3280_vm5, %v7201_v31, %v3711_v63  ;;  %v3868_v31 = vld [vmem:[%s7827_s5 + $0xf8] sm:$0xff] }
 0x563   : > { %3914 = vmatpush.msrb.mxu3 %v3840_v8 }
 0x565   : > { %3915 = vmatpush.msrb.mxu3 %v3839_v11 }
 0x566   : > { %v3727_v60 = vpop.permute.xlu1 %3726 }
 0x567   : > { %3916 = vmatpush.msrb.mxu3 %v3838_v38  ;;  %v3800_v39 = vsel %vm3298_vm7, %v3796_v22, %v3727_v60 }
 0x569   : > { %3917 = vmatpush.msrb.mxu3 %v3837_v14 }
 0x56b   : > { %3925 = vmatpush.msra.mxu3 %v3868_v31 }
 0x56d   : > { %3926 = vmatpush.msra.mxu3 %v3867_v53 }
 0x56e   : > { %v3742_v26 = vpop.permute.xlu1 %3741 }
 0x56f   : > { %3927 = vmatpush.msra.mxu3 %v3866_v9 }
 0x571   : > { %3928 = vmatpush.msra.mxu3 %v3865_v32 }
 0x573   : > { %3929 = vmatpush.msra.mxu3 %v3864_v29 }
 0x574   : > { %v3773_v20 = vpop.permute.xlu2 %3772 }
 0x575   : > { %v3813_v34 = vsel %vm3298_vm7, %v3809_v59, %v3773_v20  ;;  %3930 = vmatpush.msra.mxu3 %v3863_v47 }
 0x577   : > { %3931 = vmatpush.msra.mxu3 %v3862_v46 }
 0x579   : > { %3932 = vmatpush.msra.mxu3 %v3861_v37 }
 0x57b   : > { %3933 = vmatpush.msra.mxu3 %v3860_v54 }
 0x57c   : > { %v3784_v62 = vpop.permute.xlu2 %3783 }
 0x57d   : > { %v3816_v23 = vsel %vm3316_vm10, %v3812_v45, %v3784_v62  ;;  %3934 = vmatpush.msra.mxu3 %v3859_v24 }
 0x57e   : > { %v3828_v42 = vrot.slane %v3816_v23, 4 }
 0x57f   : > { %3935 = vmatpush.msra.mxu3 %v3858_v35 }
 0x581   : > { %3936 = vmatpush.msra.mxu3 %v3857_v21 }
 0x583   : > { %3937 = vmatpush.msra.mxu3 %v3856_v58 }
 0x584   : > { %v3729_v57 = vpop.permute.xlu2 %3728 }
 0x585   : > { %v3801_v25 = vsel %vm3298_vm7, %v3797_v43, %v3729_v57  ;;  %3938 = vmatpush.msra.mxu3 %v3855_v56 }
 0x586   : > { %v3805_v4 = vsel %vm3316_vm10, %v3801_v25, %v3742_v26 }
 0x587   : > { %3939 = vmatpush.msra.mxu3 %v3854_v1 }
 0x589   : > { %3940 = vmatpush.msra.mxu3 %v3853_v41  ;;  %v4674_v41 = vld [vmem:[%s7828_s6] ss:$0 sm:$0xff] }
 0x58c   : > { %v3762_v10 = vpop.permute.xlu2 %3761 }
 0x58d   : > { %v3810_v52 = vsel %vm3280_vm5, %v7245_v17, %v3762_v10 }
 0x58e   : > { %v3786_v50 = vpop.permute.xlu0 %3785 }
 0x58f   : > { %v3817_v15 = vsel %vm3316_vm10, %v3813_v34, %v3786_v50 }
 0x590   : > { %v3829_v0 = vrot.slane %v3817_v15, 4 }
 0x592   : > { %v3834_v5 = vsel %vm3832_vm4, %v3805_v4, %v3829_v0 }
 0x593   : > { %3875 = vst [vmem:[#allocation1 + $0x1] ss:$2 sm:$0xff] %v3834_v5 }
 0x594   : > { %v3777_v30 = vpop.permute.xlu2 %3776 }
 0x596   : > { %v3740_v55 = vpop.permute.xlu0 %3739 }
 0x597   : > { %v3804_v13 = vsel %vm3316_vm10, %v3800_v39, %v3740_v55 }
 0x598   : > { %v3833_v27 = vsel %vm3832_vm4, %v3804_v13, %v3828_v42 }
 0x599   : > { %3873 = vst [vmem:[#allocation1] ss:$2 sm:$0xff] %v3833_v27 }
 0x59c   : > { %v3788_v33 = vpop.permute.xlu2 %3787 }
 0x5a0   : > { %v3888_v40 = vld.sshfl [vmem:[#allocation1] sm:$0xff pattern:$0x75316420]  ;;  %v3889_v25 = vld.sshfl [vmem:[#allocation1 + $0x8] sm:$0xff pattern:$0x75316420] }
 0x5a1   : > { %3918 = vmatmul.f32.vlgmr.msrb.gmra.mxu3 %v3888_v40 }
 0x5a4   : > { %v3733_v11 = vpop.permute.xlu2 %3732 }
 0x5a7   : > { %v3965_v61 = vpop.f32.mrf.mxu2 }
 0x5b0   : > { %v3775_v51 = vpop.permute.xlu1 %3774 }
 0x5b1   : > { %v3814_v7 = vsel %vm3298_vm7, %v3810_v52, %v3775_v51 }
 0x5b2   : > { %v3764_v49 = vpop.permute.xlu0 %3763  ;;  %v3818_v38 = vsel %vm3316_vm10, %v3814_v7, %v3788_v33 }
 0x5b3   : > { %v3811_v28 = vsel %vm3280_vm5, %v3751_v12, %v3764_v49  ;;  %v3830_v63 = vrot.slane %v3818_v38, 4 }
 0x5b4   : > { %v3815_v8 = vsel %vm3298_vm7, %v3811_v28, %v3777_v30 }
 0x5b8   : > { %v3717_v3 = vpop.permute.xlu1 %3716 }
 0x5b9   : > { %v3799_v48 = vsel %vm3280_vm5, %v7235_v19, %v3717_v3 }
 0x5ba   : > { %v3715_v36 = vpop.permute.xlu0 %3714  ;;  %v3803_v12 = vsel %vm3298_vm7, %v3799_v48, %v3733_v11 }
 0x5bb   : > { %v3798_v14 = vsel %vm3280_vm5, %v7187_v16, %v3715_v36  ;;  %vm3977_vm5 = vcmask 519168  }
 0x5bc   : > { %4031 = vst.msk [vmem:[#allocation5] sm:$0xf] %vm3977_vm5, %v8021_v2 }
 0x5bd   : > { %4032 = vst.msk [vmem:[#allocation5 + $0x4] sm:$0xf] %vm3977_vm5, %v8021_v2 }
 0x5be   : > { %4034 = vst.msk [vmem:[#allocation5 + $0xc] sm:$0xf] %vm3977_vm5, %v8021_v2 }
 0x5bf   : > { %4033 = vst.msk [vmem:[#allocation5 + $0x8] sm:$0xf] %vm3977_vm5, %v8021_v2 }
 0x5c0   : > { %v3731_v18 = vpop.permute.xlu1 %3730 }
 0x5c1   : > { %v3802_v60 = vsel %vm3298_vm7, %v3798_v14, %v3731_v18 }
 0x5c2   : > { %v3790_v20 = vpop.permute.xlu0 %3789 }
 0x5c3   : > { %v3819_v44 = vsel %vm3316_vm10, %v3815_v8, %v3790_v20 }
 0x5c4   : > { %v3831_v62 = vrot.slane %v3819_v44, 4 }
 0x5c5   : > { %v7453_v54 = vld [vmem:[#allocation5 + $0xc] sm:$0xf] }
 0x5c6   : > { %v4091_v35 = vrot.slane %v7453_v54, 2 }
 0x5c8   : > { %v3746_v6 = vpop.permute.xlu1 %3745 }
 0x5c9   : > { %v3807_v17 = vsel %vm3316_vm10, %v3803_v12, %v3746_v6 }
 0x5ca   : > { %v3836_v57 = vsel %vm3832_vm4, %v3807_v17, %v3831_v62  ;;  %v3744_v19 = vpop.permute.xlu0 %3743 }
 0x5cb   : > { %3883 = vst [vmem:[#allocation1 + $0x21] ss:$2 sm:$0xff] %v3836_v57  ;;  %v3806_v59 = vsel %vm3316_vm10, %v3802_v60, %v3744_v19  ;;  %vm3990_vm10 = vcmask 517120   ;;  %v3968_v55 = vpop.f32.mrf.mxu2  ;;  %v4137_v57 = vld [vmem:[%s7829_s7 + $0x78] sm:$0xff] }
 0x5cc   : > { %v3835_v43 = vsel %vm3832_vm4, %v3806_v59, %v3830_v63  ;;  %4212 = vmatpush.msra.mxu1 %v4137_v57  ;;  %v4139_v57 = vld [vmem:[%s7829_s7 + $0x88] sm:$0xff] }
 0x5cd   : > { %3881 = vst [vmem:[#allocation1 + $0x20] ss:$2 sm:$0xff] %v3835_v43 }
 0x5d4   : > { %v3891_v34 = vld.sshfl [vmem:[#allocation1 + $0x20] sm:$0xff pattern:$0x75316420]  ;;  %v3892_v50 = vld.sshfl [vmem:[#allocation1 + $0x28] sm:$0xff pattern:$0x75316420] }
 0x5d5   : > { %3921 = vmatmul.f32.gmra.mxu3 %v3891_v34  ;;  %4200 = vst [vmem:[#allocation1 + $0x21] ss:$4 sm:$0xff] %v4091_v35  ;;  %v4124_v35 = vld [vmem:[%s7829_s7 + $0x10] sm:$0xff] }
 0x5dd   : > { %3941 = vmatmul.f32.vlgmr.msra.gmra.mxu3 %v3889_v25 }
 0x5e5   : > { %3944 = vmatmul.f32.gmra.mxu3 %v3892_v50 }
 0x624   : > { %v3919_v16 = vpop.f32.mrf.mxu3 }
 0x658   : > { %v3922_v15 = vpop.f32.mrf.mxu3 }
 0x660   : > { %v3942_v26 = vpop.f32.mrf.mxu3 }
 0x661   : > { %v3943_v0 = vadd.f32 %v3942_v26, %v3919_v16  ;;  %v4084_v26 = vrot.slane %v7453_v54, 1 }
 0x663   : > { %v3966_v4 = vadd.f32 %v3965_v61, %v3943_v0 }
 0x665   : > { %v3973_v22 = vrot.slane %v3966_v4, 4  ;;  %v3978_v45 = vsel %vm3977_vm5, %v3966_v4, 0.0  ;;  %v7484_v4 = vld [vmem:[#allocation5] sm:$0xf] }
 0x667   : > { %v3979_v5 = vsel %vm3977_vm5, %v3973_v22, 0.0 }
 0x668   : > { %v3980_v23 = vadd.f32 %v3979_v5, %v3978_v45  ;;  %v3945_v39 = vpop.f32.mrf.mxu3  ;;  %v4054_v45 = vrot.slane %v7484_v4, 1 }
 0x669   : > { %v3946_v42 = vadd.f32 %v3945_v39, %v3922_v15  ;;  %v4135_v39 = vld [vmem:[%s7829_s7 + $0x68] sm:$0xff] }
 0x66a   : > { %v3986_v13 = vrot.slane %v3980_v23, 2  ;;  %v3991_v27 = vsel %vm3990_vm10, %v3980_v23, 0.0  ;;  %v4136_v23 = vld [vmem:[%s7829_s7 + $0x70] sm:$0xff] }
 0x66b   : > { %v3992_v2 = vrot.slane %v3991_v27, 4  ;;  %v3969_v31 = vadd.f32 %v3968_v55, %v3946_v42  ;;  %4213 = vmatpush.msra.mxu1 %v4136_v23  ;;  %v4134_v42 = vld [vmem:[%s7829_s7 + $0x60] sm:$0xff]  ;;  %v4133_v55 = vld [vmem:[%s7829_s7 + $0x58] sm:$0xff]  ;;  %v4192_v23 = vld [vmem:[%s7829_s7 + $0x230] sm:$0xff] }
 0x66c   : > { %v3998_v53 = vsel %vm3990_vm10, %v3986_v13, 0.0  ;;  %v4132_v13 = vld [vmem:[%s7829_s7 + $0x50] sm:$0xff] }
 0x66d   : > { %v3993_v40 = vadd.f32 %v3992_v2, %v3991_v27  ;;  %v3999_v9 = vrot.slane %v3998_v53, 4  ;;  %v3974_v32 = vrot.slane %v3969_v31, 4  ;;  %v3981_v10 = vsel %vm3977_vm5, %v3969_v31, 0.0  ;;  %4214 = vmatpush.msra.mxu1 %v4135_v39  ;;  %v4131_v27 = vld [vmem:[%s7829_s7 + $0x48] sm:$0xff]  ;;  %v4130_v2 = vld [vmem:[%s7829_s7 + $0x40] sm:$0xff]  ;;  %v4129_v31 = vld [vmem:[%s7829_s7 + $0x38] sm:$0xff] }
 0x66e   : > { %v4155_v39 = vld [vmem:[%s7829_s7 + $0x108] sm:$0xff] }
 0x66f   : > { %v3994_v29 = vrot.slane %v3993_v40, 2  ;;  %v4000_v47 = vadd.f32 %v3999_v9, %v3998_v53  ;;  %v3982_v46 = vsel %vm3977_vm5, %v3974_v32, 0.0  ;;  %4215 = vmatpush.msra.mxu1 %v4134_v42  ;;  %v4153_v53 = vld [vmem:[%s7829_s7 + $0xf8] sm:$0xff]  ;;  %v4128_v9 = vld [vmem:[%s7829_s7 + $0x30] sm:$0xff]  ;;  %v4151_v32 = vld [vmem:[%s7829_s7 + $0xe8] sm:$0xff] }
 0x670   : > { %v3983_v37 = vadd.f32 %v3982_v46, %v3981_v10  ;;  %4232 = vmatpush.msrb.mxu3 %v4153_v53  ;;  %v4150_v10 = vld [vmem:[%s7829_s7 + $0xe0] sm:$0xff]  ;;  %v4169_v46 = vld [vmem:[%s7829_s7 + $0x178] sm:$0xff]  ;;  %v4175_v42 = vld [vmem:[%s7829_s7 + $0x1a8] sm:$0xff] }
 0x671   : > { %v3995_v24 = vadd.f32 %v3994_v29, %v3993_v40  ;;  %v4001_v51 = vrot.slane %v4000_v47, 2  ;;  %4216 = vmatpush.msra.mxu1 %v4133_v55  ;;  %v4152_v40 = vld [vmem:[%s7829_s7 + $0xf0] sm:$0xff]  ;;  %v4127_v29 = vld [vmem:[%s7829_s7 + $0x28] sm:$0xff]  ;;  %4252 = vmatpush.msra.mxu2 %v4169_v46  ;;  %v4173_v53 = vld [vmem:[%s7829_s7 + $0x198] sm:$0xff] }
 0x672   : > { %v3987_v49 = vrot.slane %v3983_v37, 2  ;;  %v4005_v21 = vsel %vm3990_vm10, %v3983_v37, 0.0  ;;  %4233 = vmatpush.msrb.mxu3 %v4152_v40  ;;  %v4125_v37 = vld [vmem:[%s7829_s7 + $0x18] sm:$0xff]  ;;  %v4191_v55 = vld [vmem:[%s7829_s7 + $0x228] sm:$0xff] }
 0x673   : > { %v3996_v30 = vrot.slane %v3995_v24, 1  ;;  %v4002_v58 = vadd.f32 %v4001_v51, %v4000_v47  ;;  %v4006_v56 = vrot.slane %v4005_v21, 4  ;;  %4217 = vmatpush.msra.mxu1 %v4132_v13  ;;  %v4126_v47 = vld [vmem:[%s7829_s7 + $0x20] sm:$0xff]  ;;  %v4168_v51 = vld [vmem:[%s7829_s7 + $0x170] sm:$0xff]  ;;  %v4189_v40 = vld [vmem:[%s7829_s7 + $0x218] sm:$0xff] }
 0x674   : > { %v4012_v3 = vsel %vm3990_vm10, %v3987_v49, 0.0  ;;  %4234 = vmatpush.msrb.mxu3 %v4151_v32  ;;  %v4148_v49 = vld [vmem:[%s7829_s7 + $0xd0] sm:$0xff]  ;;  %4253 = vmatpush.msra.mxu2 %v4168_v51  ;;  %v4154_v13 = vld [vmem:[%s7829_s7 + $0x100] sm:$0xff]  ;;  %v4187_v46 = vld [vmem:[%s7829_s7 + $0x208] sm:$0xff]  ;;  %v4062_v51 = vrot.slane %v7484_v4, 2 }
 0x675   : > { %v3997_v1 = vadd.f32 %v3996_v30, %v3995_v24  ;;  %v4003_v36 = vrot.slane %v4002_v58, 1  ;;  %v4007_v33 = vadd.f32 %v4006_v56, %v4005_v21  ;;  %v4013_v18 = vrot.slane %v4012_v3, 4  ;;  %4218 = vmatpush.msra.mxu1 %v4131_v27  ;;  %v4149_v24 = vld [vmem:[%s7829_s7 + $0xd8] sm:$0xff]  ;;  %v4167_v21 = vld [vmem:[%s7829_s7 + $0x168] sm:$0xff]  ;;  %v4166_v56 = vld [vmem:[%s7829_s7 + $0x160] sm:$0xff] }
 0x676   : > { %4235 = vmatpush.msrb.mxu3 %v4150_v10  ;;  %4254 = vmatpush.msra.mxu2 %v4167_v21  ;;  %v4123_v30 = vld [vmem:[%s7829_s7 + $0x8] sm:$0xff]  ;;  %v4174_v27 = vld [vmem:[%s7829_s7 + $0x1a0] sm:$0xff] }
 0x677   : > { %v4004_v28 = vadd.f32 %v4003_v36, %v4002_v58  ;;  %v4008_v20 = vrot.slane %v4007_v33, 2  ;;  %v4014_v52 = vadd.f32 %v4013_v18, %v4012_v3  ;;  %v4023_v7 = vadd.f32 %v4674_v41, %v3997_v1  ;;  %4219 = vmatpush.msra.mxu1 %v4130_v2  ;;  %v4147_v58 = vld [vmem:[%s7829_s7 + $0xc8] sm:$0xff]  ;;  %v4122_v3 = vld [vmem:[%s7829_s7] sm:$0xff]  ;;  %v4165_v36 = vld [vmem:[%s7829_s7 + $0x158] sm:$0xff] }
 0x678   : > { %4236 = vmatpush.msrb.mxu3 %v4149_v24  ;;  %4255 = vmatpush.msra.mxu2 %v4166_v56  ;;  %v4146_v1 = vld [vmem:[%s7829_s7 + $0xc0] sm:$0xff]  ;;  %v4164_v18 = vld [vmem:[%s7829_s7 + $0x150] sm:$0xff] }
 0x679   : > { %v4024_v8 = vadd.f32 %v4674_v41, %v4004_v28  ;;  %v4009_v48 = vadd.f32 %v4008_v20, %v4007_v33  ;;  %v4015_v44 = vrot.slane %v4014_v52, 2  ;;  %v4027_v6 = vmax.f32 %v4023_v7, 0.0  ;;  %4220 = vmatpush.msra.mxu1 %v4129_v31  ;;  %v4145_v33 = vld [vmem:[%s7829_s7 + $0xb8] sm:$0xff]  ;;  %v4184_v28 = vld [vmem:[%s7829_s7 + $0x1f0] sm:$0xff]  ;;  %v4183_v7 = vld [vmem:[%s7829_s7 + $0x1e8] sm:$0xff] }
 0x67a   : > { %4237 = vmatpush.msrb.mxu3 %v4148_v49  ;;  %4256 = vmatpush.msra.mxu2 %v4165_v36  ;;  %v4144_v20 = vld [vmem:[%s7829_s7 + $0xb0] sm:$0xff]  ;;  %v4190_v2 = vld [vmem:[%s7829_s7 + $0x220] sm:$0xff] }
 0x67b   : > { %v4028_v11 = vmax.f32 %v4024_v8, 0.0  ;;  %v4010_v38 = vrot.slane %v4009_v48, 1  ;;  %v4016_v62 = vadd.f32 %v4015_v44, %v4014_v52  ;;  %4221 = vmatpush.msra.mxu1 %v4128_v9  ;;  %v4163_v52 = vld [vmem:[%s7829_s7 + $0x148] sm:$0xff]  ;;  %v4182_v44 = vld [vmem:[%s7829_s7 + $0x1e0] sm:$0xff]  ;;  %v4172_v9 = vld [vmem:[%s7829_s7 + $0x190] sm:$0xff] }
 0x67c   : > { %4238 = vmatpush.msrb.mxu3 %v4147_v58  ;;  %4257 = vmatpush.msra.mxu2 %v4164_v18  ;;  %v4143_v8 = vld [vmem:[%s7829_s7 + $0xa8] sm:$0xff]  ;;  %v4186_v24 = vld [vmem:[%s7829_s7 + $0x200] sm:$0xff] }
 0x67d   : > { %v4039_v12 = vrot.slane %v4028_v11, 7  ;;  %v4011_v14 = vadd.f32 %v4010_v38, %v4009_v48  ;;  %v4017_v17 = vrot.slane %v4016_v62, 1  ;;  %4222 = vmatpush.msra.mxu1 %v4127_v29  ;;  %v4162_v48 = vld [vmem:[%s7829_s7 + $0x140] sm:$0xff]  ;;  %v4161_v38 = vld [vmem:[%s7829_s7 + $0x138] sm:$0xff]  ;;  %v4188_v29 = vld [vmem:[%s7829_s7 + $0x210] sm:$0xff] }
 0x67e   : > { %4239 = vmatpush.msrb.mxu3 %v4146_v1  ;;  %4258 = vmatpush.msra.mxu2 %v4163_v52  ;;  %v4142_v11 = vld [vmem:[%s7829_s7 + $0xa0] sm:$0xff] }
 0x67f   : > { %v4040_v63 = vsel %vm8040_vm12, %v4039_v12, %v4027_v6  ;;  %v4018_v60 = vadd.f32 %v4017_v17, %v4016_v62  ;;  %v4025_v19 = vadd.f32 %v4674_v41, %v4011_v14  ;;  %4223 = vmatpush.msra.mxu1 %v4126_v47  ;;  %v4181_v62 = vld [vmem:[%s7829_s7 + $0x1d8] sm:$0xff]  ;;  %v4160_v12 = vld [vmem:[%s7829_s7 + $0x130] sm:$0xff]  ;;  %v4171_v47 = vld [vmem:[%s7829_s7 + $0x188] sm:$0xff] }
 0x680   : > { %4046 = vst.msk [vmem:[#allocation5 + $0x5] sm:$0x3] %vm3990_vm10, %v4040_v63  ;;  %4240 = vmatpush.msrb.mxu3 %v4145_v33  ;;  %4259 = vmatpush.msra.mxu2 %v4162_v48  ;;  %v4141_v6 = vld [vmem:[%s7829_s7 + $0x98] sm:$0xff]  ;;  %v4180_v14 = vld [vmem:[%s7829_s7 + $0x1d0] sm:$0xff]  ;;  %v4159_v63 = vld [vmem:[%s7829_s7 + $0x128] sm:$0xff] }
 0x681   : > { %v4026_v59 = vadd.f32 %v4674_v41, %v4018_v60  ;;  %v4029_v34 = vmax.f32 %v4025_v19, 0.0  ;;  %4224 = vmatpush.msra.mxu1 %v4125_v37  ;;  %v4185_v41 = vld [vmem:[%s7829_s7 + $0x1f8] sm:$0xff]  ;;  %v4140_v17 = vld [vmem:[%s7829_s7 + $0x90] sm:$0xff]  ;;  %v4179_v60 = vld [vmem:[%s7829_s7 + $0x1c8] sm:$0xff] }
 0x682   : > { %4241 = vmatpush.msrb.mxu3 %v4144_v20  ;;  %4260 = vmatpush.msra.mxu2 %v4161_v38  ;;  %v4158_v19 = vld [vmem:[%s7829_s7 + $0x120] sm:$0xff] }
 0x683   : > { %v4030_v43 = vmax.f32 %v4026_v59, 0.0  ;;  %4225 = vmatpush.msra.mxu1 %v4124_v35  ;;  %v4178_v59 = vld [vmem:[%s7829_s7 + $0x1c0] sm:$0xff] }
 0x684   : > { %4242 = vmatpush.msrb.mxu3 %v4143_v8  ;;  %4261 = vmatpush.msra.mxu2 %v4160_v12  ;;  %v4170_v37 = vld [vmem:[%s7829_s7 + $0x180] sm:$0xff]  ;;  %v4342_v12 = vld [vmem:[%s7831_s9 + $0x70] sm:$0xff] }
 0x685   : > { %v4041_v25 = vrot.slane %v4030_v43, 7  ;;  %4226 = vmatpush.msra.mxu1 %v4123_v30 }
 0x686   : > { %4243 = vmatpush.msrb.mxu3 %v4142_v11  ;;  %4262 = vmatpush.msra.mxu2 %v4159_v63  ;;  %v4339_v63 = vld [vmem:[%s7831_s9 + $0x58] sm:$0xff] }
 0x687   : > { %v4042_v50 = vsel %vm8041_vm15, %v4041_v25, %v4029_v34  ;;  %v7467_v16 = vld [vmem:[#allocation5 + $0x4] sm:$0xf]  ;;  %4227 = vmatpush.msra.mxu1 %v4122_v3  ;;  %v4138_v34 = vld [vmem:[%s7829_s7 + $0x80] sm:$0xff]  ;;  %v4157_v25 = vld [vmem:[%s7829_s7 + $0x118] sm:$0xff] }
 0x688   : > { %4047 = vst.msk [vmem:[#allocation5 + $0x9] sm:$0x3] %vm3990_vm10, %v4042_v50  ;;  %4067 = vrot.lane.b32.xlu2 %v7467_v16, %s8016_s29  ;;  %v4063_v15 = vrot.slane %v7467_v16, 2  ;;  %v4055_v5 = vrot.slane %v7467_v16, 1  ;;  %4244 = vmatpush.msrb.mxu3 %v4141_v6  ;;  %v4177_v50 = vld [vmem:[%s7829_s7 + $0x1b8] sm:$0xff] }
 0x689   : > { %4272 = vmatpush.msrb.mxu1 %v4185_v41  ;;  %4263 = vmatpush.msra.mxu2 %v4158_v19  ;;  %v4336_v19 = vld [vmem:[%s7831_s9 + $0x40] sm:$0xff] }
 0x68a   : > { %4077 = vrot.lane.b32.xlu1 %v4063_v15, %s8016_s29  ;;  %4245 = vmatpush.msrb.mxu3 %v4140_v17  ;;  %v4340_v17 = vld [vmem:[%s7831_s9 + $0x60] sm:$0xff] }
 0x68b   : > { %4273 = vmatpush.msrb.mxu1 %v4184_v28  ;;  %4264 = vmatpush.msra.mxu2 %v4157_v25  ;;  %v4332_v25 = vld [vmem:[%s7831_s9 + $0x20] sm:$0xff] }
 0x68c   : > { %4246 = vmatpush.msrb.mxu3 %v4139_v57  ;;  %v4337_v57 = vld [vmem:[%s7831_s9 + $0x48] sm:$0xff] }
 0x68d   : > { %4274 = vmatpush.msrb.mxu1 %v4183_v7 }
 0x68e   : > { %4247 = vmatpush.msrb.mxu3 %v4138_v34  ;;  %v4333_v34 = vld [vmem:[%s7831_s9 + $0x28] sm:$0xff] }
 0x68f   : > { %v7477_v0 = vld [vmem:[#allocation5 + $0x8] sm:$0xf]  ;;  %4275 = vmatpush.msrb.mxu1 %v4182_v44 }
 0x690   : > { %4069 = vrot.lane.b32.xlu0 %v7477_v0, %s8016_s29  ;;  %v4076_v61 = vrot.slane %v7477_v0, 2  ;;  %v4073_v22 = vrot.slane %v7477_v0, 1 }
 0x691   : > { %4276 = vmatpush.msrb.mxu1 %v4181_v62 }
 0x692   : > { %4198 = vst [vmem:[#allocation1 + $0x20] ss:$4 sm:$0xff] %v4076_v61  ;;  %4079 = vrot.lane.b32.xlu2 %v4076_v61, %s8016_s29  ;;  %4087 = vrot.lane.b32.xlu1 %v4084_v26, %s8016_s29  ;;  %v4193_v26 = vld [vmem:[%s7829_s7 + $0x238] sm:$0xff]  ;;  %v4156_v61 = vld [vmem:[%s7829_s7 + $0x110] sm:$0xff] }
 0x693   : > { %4277 = vmatpush.msrb.mxu1 %v4180_v14  ;;  %4300 = vmatpush.msra.mxu3 %v4193_v26  ;;  %v4341_v14 = vld [vmem:[%s7831_s9 + $0x68] sm:$0xff]  ;;  %v4330_v26 = vld [vmem:[%s7831_s9 + $0x10] sm:$0xff] }
 0x694   : > { %4265 = vmatpush.msra.mxu2 %v4156_v61 }
 0x695   : > { %4278 = vmatpush.msrb.mxu1 %v4179_v60  ;;  %4301 = vmatpush.msra.mxu3 %v4192_v23  ;;  %v4338_v60 = vld [vmem:[%s7831_s9 + $0x50] sm:$0xff]  ;;  %v4328_v23 = vld [vmem:[%s7831_s9] sm:$0xff] }
 0x696   : > { %4266 = vmatpush.msra.mxu2 %v4155_v39 }
 0x697   : > { %4279 = vmatpush.msrb.mxu1 %v4178_v59  ;;  %4302 = vmatpush.msra.mxu3 %v4191_v55  ;;  %v4335_v59 = vld [vmem:[%s7831_s9 + $0x38] sm:$0xff] }
 0x698   : > { %4085 = vrot.lane.b32.xlu0 %v4073_v22, %s8016_s29  ;;  %4267 = vmatpush.msra.mxu2 %v4154_v13 }
 0x699   : > { %4280 = vmatpush.msrb.mxu1 %v4177_v50  ;;  %4303 = vmatpush.msra.mxu3 %v4190_v2  ;;  %v4205_v6 = vld.sshfl [vmem:[#allocation1 + $0x20] sm:$0xff pattern:$0x73625140]  ;;  %v4331_v50 = vld [vmem:[%s7831_s9 + $0x18] sm:$0xff] }
 0x69a   : > { %4056 = vrot.lane.b32.xlu2 %v4054_v45, %s8016_s29  ;;  %v4176_v45 = vld [vmem:[%s7829_s7 + $0x1b0] sm:$0xff] }
 0x69b   : > { %4281 = vmatpush.msrb.mxu1 %v4176_v45  ;;  %4304 = vmatpush.msra.mxu3 %v4189_v40  ;;  %v4329_v45 = vld [vmem:[%s7831_s9 + $0x8] sm:$0xff] }
 0x69d   : > { %4282 = vmatpush.msrb.mxu1 %v4175_v42  ;;  %4305 = vmatpush.msra.mxu3 %v4188_v29 }
 0x69f   : > { %4283 = vmatpush.msrb.mxu1 %v4174_v27  ;;  %4306 = vmatpush.msra.mxu3 %v4187_v46 }
 0x6a0   : > { %4058 = vrot.lane.b32.xlu0 %v4055_v5, %s8016_s29  ;;  %s4380_s29 = sshll.u32 %s4376_s30, 4  ;;  %s4381_s29 = int_to_ptr.hbm [resolvable:$true] %s4380_s29 }
 0x6a1   : > { %4284 = vmatpush.msrb.mxu1 %v4173_v53  ;;  %4307 = vmatpush.msra.mxu3 %v4186_v24  ;;  %s4715_s16 = sshra.s32 %s4381_s29, 4  ;;  %s4716_s16 = int_to_ptr.hbm [resolvable:$true] %s4715_s16 }
 0x6a2   : > { %s4717_s1 = scalar_lea.hbm %s4716_s16, 1  ;;  %p4722_p0 = scmp.lt.s32.totalorder %s4716_s16, %s7833_s11 }
 0x6a3   : > { %4285 = vmatpush.msrb.mxu1 %v4172_v9  ;;  %p4718_p11 = scmp.ne.s32.totalorder %s4716_s16, %s4717_s1  ;;  %p4723_p1 = scmp.lt.s32.totalorder %s4721_s24, %s4717_s1 }
 0x6a5   : > { %4286 = vmatpush.msrb.mxu1 %v4171_v47  ;;  %p4719_p12 = pnand %p4718_p11, %p4879_p5  ;;  %p4724_p2 = por %p4723_p1, %p4722_p0 }
 0x6a7   : > { %4287 = vmatpush.msrb.mxu1 %v4170_v37  ;;  %p4720_p13 = pneg %p4719_p12 }
 0x6a9   : > { %p4725_p3 = pnand %p4724_p2, %p4720_p13 }
 0x6e2   : > { %v4068_v43 = vpop.permute.xlu2 %4067 }
 0x6e3   : > { %v4094_v49 = vsel %vm3298_vm7, %v4062_v51, %v4068_v43  ;;  %v4334_v43 = vld [vmem:[%s7831_s9 + $0x30] sm:$0xff] }
 0x6e4   : > { %v4108_v1 = vrot.slane %v4094_v49, 6 }
 0x6ec   : > { %v4080_v31 = vpop.permute.xlu2 %4079 }
 0x6f4   : > { %v4057_v35 = vpop.permute.xlu2 %4056 }
 0x6f5   : > { %v4092_v56 = vsel %vm3298_vm7, %v7484_v4, %v4057_v35  ;;  %v4325_v35 = vld [vmem:[%s7830_s8] sm:$0x1] }
 0x6f6   : > { %v4115_v18 = vsel %vm4114_vm3, %v4092_v56, %v4108_v1 }
 0x6fc   : > { %v4078_v32 = vpop.permute.xlu1 %4077 }
 0x6fd   : > { %v4096_v21 = vsel %vm3298_vm7, %v4055_v5, %v4078_v32  ;;  %v4097_v5 = vsel %vm3298_vm7, %v4073_v22, %v4080_v31 }
 0x6fe   : > { %v4109_v36 = vrot.slane %v4096_v21, 4  ;;  %v4112_v7 = vrot.slane %v4097_v5, 4 }
 0x702   : > { %v4070_v10 = vpop.permute.xlu0 %4069 }
 0x703   : > { %v4095_v4 = vsel %vm3298_vm7, %v4063_v15, %v4070_v10 }
 0x704   : > { %v4088_v30 = vpop.permute.xlu1 %4087  ;;  %v4111_v8 = vrot.slane %v4095_v4, 6 }
 0x705   : > { %v4099_v33 = vsel %vm3298_vm7, %v7453_v54, %v4088_v30 }
 0x706   : > { %v4113_v52 = vrot.slane %v4099_v33, 2 }
 0x708   : > { %v4120_v44 = vsel %vm4116_vm14, %v4112_v7, %v4113_v52 }
 0x70a   : > { %v4086_v58 = vpop.permute.xlu0 %4085 }
 0x70b   : > { %v4098_v3 = vsel %vm3298_vm7, %v7477_v0, %v4086_v58  ;;  %v4344_v58 = vld [vmem:[%s7832_s10] sm:$0x1] }
 0x70c   : > { %v4110_v41 = vrot.slane %v4098_v3, 2 }
 0x70e   : > { %v4117_v28 = vsel %vm4116_vm14, %v4109_v36, %v4110_v41 }
 0x70f   : > { %v4118_v20 = vsel %vm3832_vm4, %v4115_v18, %v4117_v28 }
 0x710   : > { %4194 = vst [vmem:[#allocation1] ss:$4 sm:$0xff] %v4118_v20 }
 0x712   : > { %v4059_v48 = vpop.permute.xlu0 %4058 }
 0x713   : > { %v4093_v54 = vsel %vm3298_vm7, %v7467_v16, %v4059_v48  ;;  %v4343_v16 = vld [vmem:[%s7831_s9 + $0x78] sm:$0xff] }
 0x714   : > { %v4119_v11 = vsel %vm4114_vm3, %v4093_v54, %v4111_v8  ;;  %4345 = vmatpush.msrb.mxu2 %v4343_v16 }
 0x715   : > { %v4121_v0 = vsel %vm3832_vm4, %v4119_v11, %v4120_v44 }
 0x716   : > { %4196 = vst [vmem:[#allocation1 + $0x1] ss:$4 sm:$0xff] %v4121_v0  ;;  %4346 = vmatpush.msrb.mxu2 %v4342_v12 }
 0x718   : > { %4347 = vmatpush.msrb.mxu2 %v4341_v14 }
 0x71a   : > { %4348 = vmatpush.msrb.mxu2 %v4340_v17 }
 0x71c   : > { %4349 = vmatpush.msrb.mxu2 %v4339_v63 }
 0x71d   : > { %v4201_v22 = vld.sshfl [vmem:[#allocation1] sm:$0xff pattern:$0x73625140]  ;;  %v4202_v38 = vld.sshfl [vmem:[#allocation1 + $0x8] sm:$0xff pattern:$0x73625140] }
 0x71e   : > { %4228 = vmatmul.f32.vlgmr.msra.gmra.mxu1 %v4201_v22  ;;  %4248 = vmatmul.f32.vlgmr.msrb.gmra.mxu3 %v4202_v38  ;;  %v4203_v15 = vld.sshfl [vmem:[#allocation1 + $0x10] sm:$0xff pattern:$0x73625140]  ;;  %v4204_v62 = vld.sshfl [vmem:[#allocation1 + $0x18] sm:$0xff pattern:$0x73625140] }
 0x71f   : > { %4268 = vmatmul.f32.vlgmr.msra.gmra.mxu2 %v4203_v15 }
 0x720   : > { %4350 = vmatpush.msrb.mxu2 %v4338_v60 }
 0x722   : > { %4351 = vmatpush.msrb.mxu2 %v4337_v57 }
 0x724   : > { %4352 = vmatpush.msrb.mxu2 %v4336_v19 }
 0x726   : > { %4288 = vmatmul.f32.vlgmr.msrb.gmra.mxu1 %v4204_v62  ;;  %4484 = vmatmul.msk.f32.vlgmr.msra.gmra.mxu3 %vm3298_vm7, %v4205_v6  ;;  %vm4365_vm7 = vcmask 16384  }
 0x727   : > { %4353 = vmatpush.msrb.mxu2 %v4335_v59 }
 0x729   : > { %4354 = vmatpush.msrb.mxu2 %v4334_v43 }
 0x72b   : > { %4355 = vmatpush.msrb.mxu2 %v4333_v34 }
 0x72d   : > { %4356 = vmatpush.msrb.mxu2 %v4332_v25 }
 0x72f   : > { %4357 = vmatpush.msrb.mxu2 %v4331_v50 }
 0x731   : > { %4358 = vmatpush.msrb.mxu2 %v4330_v26 }
 0x733   : > { %4359 = vmatpush.msrb.mxu2 %v4329_v45 }
 0x735   : > { %4360 = vmatpush.msrb.mxu2 %v4328_v23 }
 0x79b   : > { %v4229_v61 = vpop.f32.mrf.mxu1 }
 0x7a1   : > { %v4249_v39 = vpop.f32.mrf.mxu3 }
 0x7a2   : > { %v4250_v42 = vadd.f32 %v4249_v39, %v4229_v61  ;;  %v4269_v55 = vpop.f32.mrf.mxu2 }
 0x7a3   : > { %v4289_v27 = vpop.f32.mrf.mxu1 }
 0x7a4   : > { %v4270_v13 = vadd.f32 %v4269_v55, %v4250_v42 }
 0x7a6   : > { %v4290_v2 = vadd.f32 %v4289_v27, %v4270_v13 }
 0x7a9   : > { %v4309_v31 = vpop.f32.mrf.mxu3 }
 0x7aa   : > { %v4310_v53 = vadd.f32 %v4309_v31, %v4290_v2 }
 0x7ac   : > { %v4313_v40 = vrot.slane %v4310_v53, 2  ;;  %v4315_v9 = vsel %vm4114_vm3, %v4310_v53, 0.0 }
 0x7ae   : > { %v4316_v32 = vsel %vm4114_vm3, %v4313_v40, 0.0 }
 0x7af   : > { %v4317_v29 = vadd.f32 %v4316_v32, %v4315_v9 }
 0x7b1   : > { %v4318_v47 = vsel %vm4114_vm3, %v4317_v29, 0.0 }
 0x7b2   : > { %v4319_v10 = vrot.slane %v4318_v47, 4 }
 0x7b4   : > { %v4320_v46 = vadd.f32 %v4319_v10, %v4318_v47 }
 0x7b6   : > { %v4321_v37 = vrot.slane %v4320_v46, 2 }
 0x7b8   : > { %v4322_v24 = vadd.f32 %v4321_v37, %v4320_v46 }
 0x7ba   : > { %v4323_v51 = vrot.slane %v4322_v24, 1 }
 0x7bc   : > { %v4324_v49 = vadd.f32 %v4323_v51, %v4322_v24 }
 0x7be   : > { %v4326_v21 = vadd.f32 %v4325_v35, %v4324_v49 }
 0x7c0   : > { %v4327_v30 = vmax.f32 %v4326_v21, 0.0 }
 0x7c2   : > { %4361 = vmatmul.f32.vlgmr.msrb.gmra.mxu2 %v4327_v30 }
 0x845   : > { %v4362_v56 = vpop.f32.mrf.mxu2 }
 0x846   : > { %v4363_v3 = vadd.f32 %v4362_v56, %v4344_v58 }
 0x848   : > { %4366 = vst.msk [vmem:[%s378_s14] sm:$0x1] %vm4365_vm7, %v4363_v3 }
 0x849   : > { %4728 = shalt.err (!%p4725_p3)
}
 0x84a   : > { %4492 = dma.vmem_to_hbm [thread:$0]  (%p4879_p5), %s4379_s13, 16, %s4381_s29, %s4368_s0  }
 0x84b PF: > { %p4498_p4 = scmp.ge.s32.totalorder %s4763_s20, 2  ;;  %s4392_s12 = sand.u32 1, %s4751_s17  }
 0x84c   : > { %s4393_s22 = scalar_lea.sflag [#allocation7], %s4392_s12 }
 0x84d   : > { %p4495_p7 = pnand %p4498_p4, %p4883_p6 }
 0x84f   : > { %p4496_p8 = pneg %p4495_p7 }
 0x851   : > { %4746 = dma.done.wait (%p4496_p8), %s4393_s22, 16  }
 0x852   : > { %4748 = vsyncadd (%p4496_p8), %s4393_s22, 4294967280  ;;  %p21_p9 = scmp.ge.s32.totalorder %s4866_s23, 4   ;;  %s8042_s17 = smov %s4755_s18 }
 0x853   : > { %s8043_s18 = smov %s4759_s19  ;;  %s8044_s19 = smov %s4877_s26 }
 0x854   : > { %s8045_s20 = smov %s4866_s23  ;;  %23 = sbr.rel (!%p21_p9) target bundleno = 6 (0x6), region = 113 }
 0x859   :  { %4398 = vsyncpa [#allocation7], 1 }
 0x85a   :  { %4400 = vsyncpa [#allocation7 + $0x1], 1 }

</bundles_post_ra>
